<compile_context>
chip_gen: v5e
topology: v5e:2x2
jax: 0.10.0
libtpu: 0.0.40
codegen_flags: <defaults>
</compile_context>

<pallas_src>
import functools

import numpy as np
import jax
import jax.numpy as jnp
from jax import lax
from jax.experimental import pallas as pl
from jax.experimental.pallas import tpu as pltpu

TEMP = 0.5
ALPHA_FGD = 0.001
BETA_FGD = 0.0005
GAMMA_FGD = 0.001
LAMBDA_FGD = 5e-06
LN_EPS = 1e-5
MIN_SIZE = 2
MAX_SIZE = 5
NB_DOWNSAMPLE = 2
NEG_BIG = -1e30   # "-inf" stand-in that never produces NaN in (a - b)


# ----------------------------------------------------------------------------
# Pallas kernel: grid = (batch, HW-tile).  Per batch element the HW tiles are
# streamed, all softmax-weighted reductions are kept online in VMEM scratch,
# and the four partial loss sums are written once on the last tile.
# ----------------------------------------------------------------------------
def _fgd_kernel(s_ref, t_ref, mask_ref,
                wm_ref, bm_ref, w1_ref, b1_ref, g_ref, be_ref, w2_ref, b2_ref,
                out_ref,
                zt_buf, zs_buf,
                abs_t_sum, abs_s_sum, a_fgbg, row_diff,
                ctx_s, ctx_t, sumsq_c,
                m_spt, m_cms, l_cms, m_cmt, l_cmt,
                *, C, HW, HW_TILE, temp):
    k = pl.program_id(1)
    K = pl.num_programs(1)

    # ---- per-batch-element state reset (first HW tile) ----------------------
    @pl.when(k == 0)
    def _reset():
        abs_t_sum[...] = jnp.zeros_like(abs_t_sum)
        abs_s_sum[...] = jnp.zeros_like(abs_s_sum)
        a_fgbg[...] = jnp.zeros_like(a_fgbg)
        row_diff[...] = jnp.zeros_like(row_diff)
        ctx_s[...] = jnp.zeros_like(ctx_s)
        ctx_t[...] = jnp.zeros_like(ctx_t)
        sumsq_c[...] = jnp.zeros_like(sumsq_c)
        m_spt[...] = jnp.full_like(m_spt, NEG_BIG)
        m_cms[...] = jnp.full_like(m_cms, NEG_BIG)
        m_cmt[...] = jnp.full_like(m_cmt, NEG_BIG)
        l_cms[...] = jnp.zeros_like(l_cms)
        l_cmt[...] = jnp.zeros_like(l_cmt)

    # ---- load current tile; stream native dtype --------------------------------
    s_nat = s_ref[0]                              # (C, T) native dtype (bf16/f32)
    t_nat = t_ref[0]
    m2 = mask_ref[0].astype(jnp.float32)          # (2, T): [fg ; bg]
    mfg = m2[0:1, :]
    mbg = m2[1:2, :]

    s = s_nat.astype(jnp.float32)                 # f32 only where needed (d2, ctx)
    t = t_nat.astype(jnp.float32)

    # lanes beyond the true HW (host-side zero padding) must not leak into the
    # softmaxes -> mask their logits to a huge negative value.
    col = lax.broadcasted_iota(jnp.int32, (1, HW_TILE), 1)
    valid = col < (HW - k * HW_TILE)

    nat = s_nat.dtype
    ones_T_nat = jnp.ones((1, HW_TILE), nat)
    ones_C_nat = jnp.ones((1, C), nat)
    ones_T_f = jnp.ones((1, HW_TILE), jnp.float32)

    def redT(mat, rows):
        # (C, T) . (R, T) -> (C, R); contraction over the HW lanes runs on the MXU.
        return lax.dot_general(mat, rows, (((1,), (1,)), ((), ())),
                               preferred_element_type=jnp.float32)

    # |x| stays in the streamed dtype; products exact, accumulation f32 on MXU.
    abs_s = jnp.abs(s_nat)
    abs_t = jnp.abs(t_nat)
    abs_t_sum[...] += redT(abs_t, ones_T_nat)
    abs_s_sum[...] += redT(abs_s, ones_T_nat)

    # ---- spatial-attention logits (mean_c |x| / temp), buffered for finalize
    inv_ct = 1.0 / (C * temp)
    zt_row = jnp.where(valid,
                       jnp.dot(ones_C_nat, abs_t,
                               preferred_element_type=jnp.float32) * inv_ct,
                       NEG_BIG)
    zs_row = jnp.where(valid,
                       jnp.dot(ones_C_nat, abs_s,
                               preferred_element_type=jnp.float32) * inv_ct,
                       NEG_BIG)
    zt_buf[pl.ds(k, 1), :] = zt_row
    zs_buf[pl.ds(k, 1), :] = zs_row

    # ---- online (flash-style) fg/bg accumulators + sumsq, one fused dot -----
    d2 = (s - t) * (s - t)
    m_old = m_spt[...]                                        # (1, 1)
    m_new = jnp.maximum(m_old, jnp.max(zt_row, keepdims=True))
    rescale = jnp.exp(m_old - m_new)
    w_sp = jnp.exp(zt_row - m_new)                            # (1, T); pads -> 0
    rhs3 = jnp.concatenate([w_sp * mfg, w_sp * mbg, ones_T_f], axis=0)   # (3, T)
    res3 = redT(d2, rhs3)                                                # (C, 3)
    a_fgbg[...] = a_fgbg[...] * rescale + res3[:, 0:2]
    sumsq_c[...] += res3[:, 2:3]
    m_spt[...] = m_new

    # ---- online spatial_pool (GC-block context); the `ones` column gives the
    # per-channel rowsum needed by the closed-form relation loss for free.
    wm = wm_ref[...].astype(jnp.float32)      # (2, C)
    bm = bm_ref[...].astype(jnp.float32)      # (2, 1, 1)

    def ctx_update(x, idx, m_ref, l_ref, ctx_ref):
        cm = jnp.dot(wm[idx:idx + 1, :], x,
                     preferred_element_type=jnp.float32) + bm[idx]   # (1, T)
        cm = jnp.where(valid, cm, NEG_BIG)
        mo = m_ref[...]
        mn = jnp.maximum(mo, jnp.max(cm, keepdims=True))
        r = jnp.exp(mo - mn)
        w = jnp.exp(cm - mn)                                         # (1, T)
        l_ref[...] = l_ref[...] * r + jnp.sum(w, keepdims=True)
        res = redT(x, jnp.concatenate([w, ones_T_f], axis=0))        # (C, 2)
        ctx_ref[...] = ctx_ref[...] * r + res[:, 0:1]
        m_ref[...] = mn
        return res[:, 1:2]                                           # rowsum(x)

    rs_s = ctx_update(s, 0, m_cms, l_cms, ctx_s)
    rs_t = ctx_update(t, 1, m_cmt, l_cmt, ctx_t)
    row_diff[...] += rs_s - rs_t

    # ---- finalize this batch element on the last HW tile --------------------
    @pl.when(k == K - 1)
    def _finalize():
        # channel attention:  C * softmax(mean_HW |x| / temp)   over channels
        def chan_attn(acc):
            zc = acc[...] * (1.0 / (HW * temp))                      # (C, 1)
            e = jnp.exp(zc - jnp.max(zc, axis=0, keepdims=True))
            return C * e / jnp.sum(e, axis=0, keepdims=True)

        c_t = chan_attn(abs_t_sum)
        c_s = chan_attn(abs_s_sum)

        # spatial attention:  HW * softmax(z)  from the buffered logit rows
        zt = zt_buf[...]                                             # (K, T)
        zs = zs_buf[...]
        m_t = jnp.max(zt)
        e_t = jnp.exp(zt - m_t)
        l_t = jnp.sum(e_t)
        m_s = jnp.max(zs)
        e_s = jnp.exp(zs - m_s)
        l_s = jnp.sum(e_s)
        s_att_t = HW * e_t / l_t
        s_att_s = HW * e_s / l_s

        # attention (mask) loss — summed here, divided by N on the host
        mask_c = (jnp.sum(jnp.abs(c_s - c_t))
                  + jnp.sum(jnp.abs(s_att_s - s_att_t)))

        # focal fg / bg losses:  sum (s-t)^2 * S_t * C_t * mask
        fg_c = (HW / l_t) * jnp.sum(c_t * a_fgbg[:, 0:1])
        bg_c = (HW / l_t) * jnp.sum(c_t * a_fgbg[:, 1:2])

        # relation loss in closed form:  ||(s + add_s) - (t + add_t)||^2
        w1 = w1_ref[...].astype(jnp.float32)
        b1 = b1_ref[...].astype(jnp.float32)
        g = g_ref[...].astype(jnp.float32)
        be = be_ref[...].astype(jnp.float32)
        w2 = w2_ref[...].astype(jnp.float32)
        b2 = b2_ref[...].astype(jnp.float32)

        def channel_add(idx, context):
            hidden = jnp.dot(w1[idx], context,
                             preferred_element_type=jnp.float32) + b1[idx]   # (C/2, 1)
            mu = jnp.mean(hidden, axis=0, keepdims=True)
            var = jnp.mean((hidden - mu) ** 2, axis=0, keepdims=True)
            normed = (hidden - mu) / jnp.sqrt(var + LN_EPS) * g[idx] + be[idx]
            act = jnp.maximum(normed, 0.0)
            return jnp.dot(w2[idx], act,
                           preferred_element_type=jnp.float32) + b2[idx]     # (C, 1)

        add_s = channel_add(0, ctx_s[...] / l_cms[...])
        add_t = channel_add(1, ctx_t[...] / l_cmt[...])
        a_vec = add_s - add_t                                        # (C, 1)
        rela_c = (jnp.sum(sumsq_c[...])
                  + 2.0 * jnp.sum(a_vec * row_diff[...])
                  + HW * jnp.sum(a_vec * a_vec))

        # pack the four partial sums into one small lane-packed output block
        lane = lax.broadcasted_iota(jnp.int32, (1, 1, 4), 2)
        out_ref[...] = (jnp.where(lane == 0, fg_c, 0.0)
                        + jnp.where(lane == 1, bg_c, 0.0)
                        + jnp.where(lane == 2, mask_c, 0.0)
                        + jnp.where(lane == 3, rela_c, 0.0))


# ----------------------------------------------------------------------------
# Host-side mask generation (get_mask_lvl) — faithful to the PyTorch code,
# including the early `return` inside the batch loop (only image 0 processed).
# ----------------------------------------------------------------------------
def get_mask_lvl_host(gt_bboxes, img_metas, N, H, W):
    assert H == W and H in (25, 50, 100, 200)
    lvl = {200: 0, 100: 1, 50: 2, 25: 3}[H]
    mask_fg = np.zeros((N, H, W), np.float32)
    mask_bg = np.ones((N, H, W), np.float32)

    i = 0  # original code returns at the end of the first loop iteration
    height, width = img_metas[i]['img_shape'][0], img_metas[i]['img_shape'][1]
    gt_mp = np.zeros((height, width), np.float32)
    min_area = 2 ** (lvl + MIN_SIZE)
    max_area = 2 ** (lvl + MAX_SIZE)
    for j in range(len(gt_bboxes[i])):
        x1, y1, x2, y2 = np.asarray(gt_bboxes[i][j], dtype=np.float64)
        left, top = int(x1), int(y1)
        right = int(np.clip(np.ceil(x2), 0, width - 1))
        down = int(np.clip(np.ceil(y2), 0, height - 1))
        w_box, h_box = right - left, down - top
        area = np.sqrt(w_box * h_box)
        if min_area < area < max_area:
            value = 1.0
        elif lvl == 0 and area < min_area:
            value = 1.0
        elif lvl == 3 and area > max_area:
            value = 1.0
        else:
            value = 0.0
        gt_mp[top:down, left:right] = np.maximum(gt_mp[top:down, left:right], value)

    Hd = height // 2 ** (lvl + NB_DOWNSAMPLE)
    Wd = width // 2 ** (lvl + NB_DOWNSAMPLE)
    # TODO(synk): cv2.resize(INTER_LINEAR) approximated with jax.image.resize('linear', antialias=False)
    resized = np.asarray(jax.image.resize(jnp.asarray(gt_mp), (Hd, Wd),
                                          method='linear', antialias=False))
    mask_fg[i] = resized
    mask_bg[i] = np.where(mask_fg[i] > 0, 0.0, 1.0).astype(np.float32)
    ssum = mask_bg[i].sum()
    if ssum:
        mask_bg[i] /= ssum
    return jnp.asarray(mask_fg), jnp.asarray(mask_bg)


# ----------------------------------------------------------------------------
# Chip-aware helpers
# ----------------------------------------------------------------------------
def _vmem_capacity_bytes():
    try:
        info = pltpu.get_tpu_info()
        cap = getattr(info, "vmem_capacity_bytes", None)
        if cap:
            return int(cap)
    except Exception:
        pass
    return 64 << 20   # conservative fallback (v7x-sized VMEM)


def _pick_hw_tile(HW, vmem_cap):
    # 128-MiB parts (v5e/v6e): fat 8192-lane tiles (fewer grid steps, fatter
    # DMAs towards the HBM roofline); 64-MiB parts (v7x): 4096.
    max_tile = 8192 if vmem_cap >= (96 << 20) else 4096
    if HW <= max_tile:
        return HW, 1
    n_tiles = -(-HW // max_tile)
    tile = -(-HW // n_tiles)
    tile = ((tile + 127) // 128) * 128          # balanced tiles, lane-aligned
    n_tiles = -(-HW // tile)
    return tile, n_tiles


# ----------------------------------------------------------------------------
# Wrapper
# ----------------------------------------------------------------------------
def feature_loss1(preds_stu, preds_teac, gt_bboxes, img_metas, params, hw_tile=None):
    # student_channels == teacher_channels here, so self.align is None.
    N, C, H, W = preds_stu.shape
    HW = H * W
    C2 = C // 2

    mask_fg, mask_bg = get_mask_lvl_host(gt_bboxes, img_metas, N, H, W)

    vmem_cap = _vmem_capacity_bytes()
    if hw_tile is None:
        hw_tile, n_tiles = _pick_hw_tile(HW, vmem_cap)
    elif hw_tile >= HW:
        hw_tile, n_tiles = HW, 1
    else:
        assert hw_tile % 128 == 0, "HW tile must be a multiple of 128 when tiling"
        n_tiles = -(-HW // hw_tile)
    hw_pad = n_tiles * hw_tile

    # NOTE: no host-side f32 upcast — features stream in their native dtype
    # (bf16 halves the HBM traffic); the kernel upcasts to f32 only where needed.
    s = preds_stu.reshape(N, C, HW)
    t = preds_teac.reshape(N, C, HW)
    masks = jnp.stack([mask_fg.reshape(N, HW), mask_bg.reshape(N, HW)],
                      axis=1).astype(jnp.float32)                    # (N, 2, HW)
    if hw_pad != HW:
        pad = ((0, 0), (0, 0), (0, hw_pad - HW))
        s = jnp.pad(s, pad)
        t = jnp.pad(t, pad)
        masks = jnp.pad(masks, pad)

    kernel = functools.partial(_fgd_kernel, C=C, HW=HW, HW_TILE=hw_tile, temp=TEMP)

    feat_spec = pl.BlockSpec((1, C, hw_tile), lambda b, k: (b, 0, k))
    mask_spec = pl.BlockSpec((1, 2, hw_tile), lambda b, k: (b, 0, k))

    def param_spec(shape):
        return pl.BlockSpec(shape, lambda b, k, _n=len(shape): (0,) * _n)

    out_spec = pl.BlockSpec((1, 1, 4), lambda b, k: (b, 0, 0))

    scratch = [
        pltpu.VMEM((n_tiles, hw_tile), jnp.float32),   # zt_buf  (teacher spatial logits)
        pltpu.VMEM((n_tiles, hw_tile), jnp.float32),   # zs_buf  (student spatial logits)
        pltpu.VMEM((C, 1), jnp.float32),               # abs_t_sum
        pltpu.VMEM((C, 1), jnp.float32),               # abs_s_sum
        pltpu.VMEM((C, 2), jnp.float32),               # a_fgbg  (fg | bg accumulators)
        pltpu.VMEM((C, 1), jnp.float32),               # row_diff
        pltpu.VMEM((C, 1), jnp.float32),               # ctx_s
        pltpu.VMEM((C, 1), jnp.float32),               # ctx_t
        pltpu.VMEM((C, 1), jnp.float32),               # sumsq_c
        pltpu.VMEM((1, 1), jnp.float32),               # m_spt
        pltpu.VMEM((1, 1), jnp.float32),               # m_cms
        pltpu.VMEM((1, 1), jnp.float32),               # l_cms
        pltpu.VMEM((1, 1), jnp.float32),               # m_cmt
        pltpu.VMEM((1, 1), jnp.float32),               # l_cmt
    ]

    # scoped-VMEM budget: pipeline buffers + logit scratch + in-kernel temporaries
    elt = s.dtype.itemsize
    feat = C * hw_tile
    param_bytes = 4 * (2 * C + 2 + 2 * C2 * C + 6 * C2 + 2 * C * C2 + 2 * C)
    est = (2 * 2 * feat * elt                       # s, t blocks (double-buffered)
           + 2 * 8 * hw_tile * 4                    # packed mask block (sublane-padded, x2)
           + 2 * max(n_tiles, 8) * hw_tile * 4      # zt / zs logit scratch
           + feat * (3 * 4 + 2 * elt)               # in-kernel temps: s,t,d2 (f32) + abs (native)
           + feat * 4                               # slack for fused element-wise temps
           + 14 * max(C, 8) * 128 * 4               # column scratches (lane-padded)
           + 2 * param_bytes                        # parameter blocks (double-buffered)
           + (2 << 20))
    vmem_limit = int(min(max(est * 5 // 4, 32 << 20), vmem_cap - (8 << 20)))

    partials = pl.pallas_call(
        kernel,
        out_shape=jax.ShapeDtypeStruct((N, 1, 4), jnp.float32),
        grid=(N, n_tiles),
        in_specs=[feat_spec, feat_spec, mask_spec,
                  param_spec((2, C)), param_spec((2, 1, 1)),
                  param_spec((2, C2, C)), param_spec((2, C2, 1)),
                  param_spec((2, C2, 1)), param_spec((2, C2, 1)),
                  param_spec((2, C, C2)), param_spec((2, C, 1))],
        out_specs=out_spec,
        scratch_shapes=scratch,
        compiler_params=pltpu.CompilerParams(
            dimension_semantics=("parallel", "arbitrary"),
            vmem_limit_bytes=vmem_limit),
    )(s, t, masks,
      params['wm'], params['bm'], params['w1'], params['b1'],
      params['ln_g'], params['ln_b'], params['w2'], params['b2'])

    sums = jnp.sum(partials.astype(jnp.float32), axis=(0, 1))    # (4,)
    n = jnp.float32(N)
    fg_loss = sums[0] / n
    bg_loss = sums[1] / n
    mask_loss = sums[2] / n       # reference divides each mask-loss term by N (=len)
    rela_loss = sums[3] / n
    return (ALPHA_FGD * fg_loss + BETA_FGD * bg_loss
            + GAMMA_FGD * mask_loss + LAMBDA_FGD * rela_loss)


# ----------------------------------------------------------------------------
# Pure-JAX reference mirroring the PyTorch module math (validation only).
# ----------------------------------------------------------------------------
def reference_loss(preds_stu, preds_teac, mask_fg, mask_bg, params):
    N, C, H, W = preds_stu.shape
    HW = H * W
    s = preds_stu.astype(jnp.float32)
    t = preds_teac.astype(jnp.float32)

    def get_attention(x):
        value = jnp.abs(x)
        fea_map = jnp.mean(value, axis=1)                                      # (N,H,W)
        s_att = HW * jax.nn.softmax((fea_map / TEMP).reshape(N, -1), axis=1).reshape(N, H, W)
        channel_map = jnp.mean(value, axis=(2, 3))                             # (N,C)
        c_att = C * jax.nn.softmax(channel_map / TEMP, axis=1)
        return s_att, c_att

    s_att_t, c_att_t = get_attention(t)
    s_att_s, c_att_s = get_attention(s)

    mfg = mask_fg[:, None, :, :]
    mbg = mask_bg[:, None, :, :]
    ct4 = c_att_t[:, :, None, None]
    st4 = s_att_t[:, None, :, :]
    fea_t = t * jnp.sqrt(st4) * jnp.sqrt(ct4)
    fea_s = s * jnp.sqrt(st4) * jnp.sqrt(ct4)
    fg_loss = jnp.sum((fea_s * jnp.sqrt(mfg) - fea_t * jnp.sqrt(mfg)) ** 2) / N
    bg_loss = jnp.sum((fea_s * jnp.sqrt(mbg) - fea_t * jnp.sqrt(mbg)) ** 2) / N

    mask_loss = (jnp.sum(jnp.abs(c_att_s - c_att_t)) / N
                 + jnp.sum(jnp.abs(s_att_s - s_att_t)) / N)

    def spatial_pool(x, idx):
        xf = x.reshape(N, C, HW)
        cm = (jnp.einsum('c,ncl->nl', params['wm'][idx].astype(jnp.float32), xf)
              + params['bm'][idx, 0, 0])
        p = jax.nn.softmax(cm, axis=1)
        return jnp.einsum('ncl,nl->nc', xf, p)[:, :, None]                     # (N,C,1)

    def channel_add(idx, ctx):
        h = jnp.einsum('oc,nci->noi', params['w1'][idx], ctx) + params['b1'][idx][None]
        mu = jnp.mean(h, axis=(1, 2), keepdims=True)
        var = jnp.mean((h - mu) ** 2, axis=(1, 2), keepdims=True)
        hn = ((h - mu) / jnp.sqrt(var + LN_EPS) * params['ln_g'][idx][None]
              + params['ln_b'][idx][None])
        hr = jnp.maximum(hn, 0.0)
        return jnp.einsum('oc,nci->noi', params['w2'][idx], hr) + params['b2'][idx][None]

    add_s = channel_add(0, spatial_pool(s, 0))[:, :, :, None]                  # (N,C,1,1)
    add_t = channel_add(1, spatial_pool(t, 1))[:, :, :, None]
    rela_loss = jnp.sum(((s + add_s) - (t + add_t)) ** 2) / N

    return (ALPHA_FGD * fg_loss + BETA_FGD * bg_loss
            + GAMMA_FGD * mask_loss + LAMBDA_FGD * rela_loss)


# ----------------------------------------------------------------------------
# Deterministic parameter init (synthetic; shapes from the module's __init__).
# Note: reset_parameters zero-inits the last channel_add conv; we use small
# random weights instead so the full compute path is exercised.
# ----------------------------------------------------------------------------
def init_params(key, C):
    C2 = C // 2
    ks = jax.random.split(key, 8)
    return {
        'wm':   0.1 * jax.random.normal(ks[0], (2, C), jnp.float32),            # conv_mask_{s,t}.weight
        'bm':   0.1 * jax.random.normal(ks[1], (2, 1, 1), jnp.float32),         # conv_mask_{s,t}.bias
        'w1':   0.1 * jax.random.normal(ks[2], (2, C2, C), jnp.float32),        # channel_add conv1 weight
        'b1':   0.1 * jax.random.normal(ks[3], (2, C2, 1), jnp.float32),        # channel_add conv1 bias
        'ln_g': 1.0 + 0.1 * jax.random.normal(ks[4], (2, C2, 1), jnp.float32),  # LayerNorm gamma
        'ln_b': 0.1 * jax.random.normal(ks[5], (2, C2, 1), jnp.float32),        # LayerNorm beta
        'w2':   0.1 * jax.random.normal(ks[6], (2, C, C2), jnp.float32),        # channel_add conv2 weight
        'b2':   0.1 * jax.random.normal(ks[7], (2, C, 1), jnp.float32),         # channel_add conv2 bias
    }


if __name__ == "__main__":
    key = jax.random.PRNGKey(0)
    k1, k2, k3 = jax.random.split(key, 3)

    # Spatial size must be in {25, 50, 100, 200} per get_mask_lvl; 25 -> lvl 3.
    N, C, H, W = 2, 8, 25, 25
    preds_stu = jax.random.normal(k1, (N, C, H, W), jnp.float32)
    preds_teac = jax.random.normal(k2, (N, C, H, W), jnp.float32)

    gt_bboxes = [
        np.array([[100.0, 120.0, 300.0, 400.0],
                  [50.0, 60.0, 650.0, 700.0]], np.float32),
        np.array([[10.0, 10.0, 200.0, 200.0]], np.float32),
    ]
    img_metas = [{'img_shape': (800, 800, 3)}, {'img_shape': (800, 800, 3)}]

    params = init_params(k3, C)

    # 1) f32 single-tile path (exact module semantics)
    loss = feature_loss1(preds_stu, preds_teac, gt_bboxes, img_metas, params)
    loss = jax.block_until_ready(loss)
    assert loss.shape == () and bool(jnp.isfinite(loss))

    # 2) pure-JAX reference check (same host-generated masks)
    mask_fg, mask_bg = get_mask_lvl_host(gt_bboxes, img_metas, N, H, W)
    ref = jax.block_until_ready(
        reference_loss(preds_stu, preds_teac, mask_fg, mask_bg, params))
    assert jnp.allclose(loss, ref, rtol=2e-2, atol=1e-5), (float(loss), float(ref))

    # 3) forced HW-tiled path (exercises lane padding + online softmax, K=5)
    loss_tiled = jax.block_until_ready(
        feature_loss1(preds_stu, preds_teac, gt_bboxes, img_metas, params, hw_tile=128))
    assert jnp.allclose(loss_tiled, loss, rtol=5e-3, atol=1e-5), (float(loss_tiled), float(loss))

    # 4) bf16 streaming path (halved HBM traffic; accumulation still f32 in-kernel)
    loss_bf16 = jax.block_until_ready(
        feature_loss1(preds_stu.astype(jnp.bfloat16), preds_teac.astype(jnp.bfloat16),
                      gt_bboxes, img_metas, params))
    assert bool(jnp.isfinite(loss_bf16))
    assert abs(float(loss_bf16) - float(loss)) <= 0.1 * abs(float(loss)) + 1e-3

    print("KERNEL_OK")
</pallas_src>

<mosaic_0001>
module attributes {stable_mosaic.version = 11 : i64} {
  func.func @_fgd_kernel(%arg0: i32, %arg1: i32, %arg2: memref<1x8x625xf32, #tpu.memory_space<vmem>>, %arg3: memref<1x8x625xf32, #tpu.memory_space<vmem>>, %arg4: memref<1x2x625xf32, #tpu.memory_space<vmem>>, %arg5: memref<2x8xf32, #tpu.memory_space<vmem>>, %arg6: memref<2x1x1xf32, #tpu.memory_space<vmem>>, %arg7: memref<2x4x8xf32, #tpu.memory_space<vmem>>, %arg8: memref<2x4x1xf32, #tpu.memory_space<vmem>>, %arg9: memref<2x4x1xf32, #tpu.memory_space<vmem>>, %arg10: memref<2x4x1xf32, #tpu.memory_space<vmem>>, %arg11: memref<2x8x4xf32, #tpu.memory_space<vmem>>, %arg12: memref<2x8x1xf32, #tpu.memory_space<vmem>>, %arg13: memref<1x1x4xf32, #tpu.memory_space<vmem>>, %arg14: memref<1x625xf32, #tpu.memory_space<vmem>>, %arg15: memref<1x625xf32, #tpu.memory_space<vmem>>, %arg16: memref<8x1xf32, #tpu.memory_space<vmem>>, %arg17: memref<8x1xf32, #tpu.memory_space<vmem>>, %arg18: memref<8x2xf32, #tpu.memory_space<vmem>>, %arg19: memref<8x1xf32, #tpu.memory_space<vmem>>, %arg20: memref<8x1xf32, #tpu.memory_space<vmem>>, %arg21: memref<8x1xf32, #tpu.memory_space<vmem>>, %arg22: memref<8x1xf32, #tpu.memory_space<vmem>>, %arg23: memref<1x1xf32, #tpu.memory_space<vmem>>, %arg24: memref<1x1xf32, #tpu.memory_space<vmem>>, %arg25: memref<1x1xf32, #tpu.memory_space<vmem>>, %arg26: memref<1x1xf32, #tpu.memory_space<vmem>>, %arg27: memref<1x1xf32, #tpu.memory_space<vmem>>) attributes {dimension_semantics = [#tpu.dimension_semantics<parallel>, #tpu.dimension_semantics<arbitrary>], iteration_bounds = array<i64: 2, 1>, scalar_prefetch = 0 : i64, scratch_operands = 14 : i64, tpu.core_type = #tpu.core_type<tc>, window_params = [{transform_indices = @transform_0, window_bounds = array<i64: 1, 8, 625>}, {transform_indices = @transform_1, window_bounds = array<i64: 1, 8, 625>}, {transform_indices = @transform_2, window_bounds = array<i64: 1, 2, 625>}, {pipeline_mode = #tpu.pipeline_mode<synchronous>, transform_indices = @transform_3, window_bounds = array<i64: 2, 8>}, {pipeline_mode = #tpu.pipeline_mode<synchronous>, transform_indices = @transform_4, window_bounds = array<i64: 2, 1, 1>}, {pipeline_mode = #tpu.pipeline_mode<synchronous>, transform_indices = @transform_5, window_bounds = array<i64: 2, 4, 8>}, {pipeline_mode = #tpu.pipeline_mode<synchronous>, transform_indices = @transform_6, window_bounds = array<i64: 2, 4, 1>}, {pipeline_mode = #tpu.pipeline_mode<synchronous>, transform_indices = @transform_7, window_bounds = array<i64: 2, 4, 1>}, {pipeline_mode = #tpu.pipeline_mode<synchronous>, transform_indices = @transform_8, window_bounds = array<i64: 2, 4, 1>}, {pipeline_mode = #tpu.pipeline_mode<synchronous>, transform_indices = @transform_9, window_bounds = array<i64: 2, 8, 4>}, {pipeline_mode = #tpu.pipeline_mode<synchronous>, transform_indices = @transform_10, window_bounds = array<i64: 2, 8, 1>}, {transform_indices = @transform_11, window_bounds = array<i64: 1, 1, 4>}]} {
    %c0_i32 = arith.constant 0 : i32
    %0 = arith.cmpi eq, %arg1, %c0_i32 : i32
    %1 = arith.extui %0 : i1 to i32
    %c0_i32_0 = arith.constant 0 : i32
    %2 = arith.cmpi ne, %1, %c0_i32_0 : i32
    scf.if %2 {
      %cst_89 = arith.constant 0.000000e+00 : f32
      %160 = vector.broadcast %cst_89 : f32 to vector<8x1xf32>
      %c0_90 = arith.constant 0 : index
      %c0_91 = arith.constant 0 : index
      %161 = vector.load %arg16[%c0_90, %c0_91] : memref<8x1xf32, #tpu.memory_space<vmem>>, vector<8x1xf32>
      tpu.vector_store %arg16[%c0_90, %c0_91], %160 {strides = array<i32>} : memref<8x1xf32, #tpu.memory_space<vmem>>, vector<8x1xf32>,
      %cst_92 = arith.constant 0.000000e+00 : f32
      %162 = vector.broadcast %cst_92 : f32 to vector<8x1xf32>
      %c0_93 = arith.constant 0 : index
      %c0_94 = arith.constant 0 : index
      %163 = vector.load %arg17[%c0_93, %c0_94] : memref<8x1xf32, #tpu.memory_space<vmem>>, vector<8x1xf32>
      tpu.vector_store %arg17[%c0_93, %c0_94], %162 {strides = array<i32>} : memref<8x1xf32, #tpu.memory_space<vmem>>, vector<8x1xf32>,
      %cst_95 = arith.constant 0.000000e+00 : f32
      %164 = vector.broadcast %cst_95 : f32 to vector<8x2xf32>
      %c0_96 = arith.constant 0 : index
      %c0_97 = arith.constant 0 : index
      %165 = vector.load %arg18[%c0_96, %c0_97] : memref<8x2xf32, #tpu.memory_space<vmem>>, vector<8x2xf32>
      tpu.vector_store %arg18[%c0_96, %c0_97], %164 {strides = array<i32>} : memref<8x2xf32, #tpu.memory_space<vmem>>, vector<8x2xf32>,
      %cst_98 = arith.constant 0.000000e+00 : f32
      %166 = vector.broadcast %cst_98 : f32 to vector<8x1xf32>
      %c0_99 = arith.constant 0 : index
      %c0_100 = arith.constant 0 : index
      %167 = vector.load %arg19[%c0_99, %c0_100] : memref<8x1xf32, #tpu.memory_space<vmem>>, vector<8x1xf32>
      tpu.vector_store %arg19[%c0_99, %c0_100], %166 {strides = array<i32>} : memref<8x1xf32, #tpu.memory_space<vmem>>, vector<8x1xf32>,
      %cst_101 = arith.constant 0.000000e+00 : f32
      %168 = vector.broadcast %cst_101 : f32 to vector<8x1xf32>
      %c0_102 = arith.constant 0 : index
      %c0_103 = arith.constant 0 : index
      %169 = vector.load %arg20[%c0_102, %c0_103] : memref<8x1xf32, #tpu.memory_space<vmem>>, vector<8x1xf32>
      tpu.vector_store %arg20[%c0_102, %c0_103], %168 {strides = array<i32>} : memref<8x1xf32, #tpu.memory_space<vmem>>, vector<8x1xf32>,
      %cst_104 = arith.constant 0.000000e+00 : f32
      %170 = vector.broadcast %cst_104 : f32 to vector<8x1xf32>
      %c0_105 = arith.constant 0 : index
      %c0_106 = arith.constant 0 : index
      %171 = vector.load %arg21[%c0_105, %c0_106] : memref<8x1xf32, #tpu.memory_space<vmem>>, vector<8x1xf32>
      tpu.vector_store %arg21[%c0_105, %c0_106], %170 {strides = array<i32>} : memref<8x1xf32, #tpu.memory_space<vmem>>, vector<8x1xf32>,
      %cst_107 = arith.constant 0.000000e+00 : f32
      %172 = vector.broadcast %cst_107 : f32 to vector<8x1xf32>
      %c0_108 = arith.constant 0 : index
      %c0_109 = arith.constant 0 : index
      %173 = vector.load %arg22[%c0_108, %c0_109] : memref<8x1xf32, #tpu.memory_space<vmem>>, vector<8x1xf32>
      tpu.vector_store %arg22[%c0_108, %c0_109], %172 {strides = array<i32>} : memref<8x1xf32, #tpu.memory_space<vmem>>, vector<8x1xf32>,
      %cst_110 = arith.constant -1.000000e+30 : f32
      %174 = vector.broadcast %cst_110 : f32 to vector<1x1xf32>
      %c0_111 = arith.constant 0 : index
      %c0_112 = arith.constant 0 : index
      %175 = vector.load %arg23[%c0_111, %c0_112] : memref<1x1xf32, #tpu.memory_space<vmem>>, vector<1x1xf32>
      tpu.vector_store %arg23[%c0_111, %c0_112], %174 {strides = array<i32>} : memref<1x1xf32, #tpu.memory_space<vmem>>, vector<1x1xf32>,
      %cst_113 = arith.constant -1.000000e+30 : f32
      %176 = vector.broadcast %cst_113 : f32 to vector<1x1xf32>
      %c0_114 = arith.constant 0 : index
      %c0_115 = arith.constant 0 : index
      %177 = vector.load %arg24[%c0_114, %c0_115] : memref<1x1xf32, #tpu.memory_space<vmem>>, vector<1x1xf32>
      tpu.vector_store %arg24[%c0_114, %c0_115], %176 {strides = array<i32>} : memref<1x1xf32, #tpu.memory_space<vmem>>, vector<1x1xf32>,
      %cst_116 = arith.constant -1.000000e+30 : f32
      %178 = vector.broadcast %cst_116 : f32 to vector<1x1xf32>
      %c0_117 = arith.constant 0 : index
      %c0_118 = arith.constant 0 : index
      %179 = vector.load %arg26[%c0_117, %c0_118] : memref<1x1xf32, #tpu.memory_space<vmem>>, vector<1x1xf32>
      tpu.vector_store %arg26[%c0_117, %c0_118], %178 {strides = array<i32>} : memref<1x1xf32, #tpu.memory_space<vmem>>, vector<1x1xf32>,
      %cst_119 = arith.constant 0.000000e+00 : f32
      %180 = vector.broadcast %cst_119 : f32 to vector<1x1xf32>
      %c0_120 = arith.constant 0 : index
      %c0_121 = arith.constant 0 : index
      %181 = vector.load %arg25[%c0_120, %c0_121] : memref<1x1xf32, #tpu.memory_space<vmem>>, vector<1x1xf32>
      tpu.vector_store %arg25[%c0_120, %c0_121], %180 {strides = array<i32>} : memref<1x1xf32, #tpu.memory_space<vmem>>, vector<1x1xf32>,
      %cst_122 = arith.constant 0.000000e+00 : f32
      %182 = vector.broadcast %cst_122 : f32 to vector<1x1xf32>
      %c0_123 = arith.constant 0 : index
      %c0_124 = arith.constant 0 : index
      %183 = vector.load %arg27[%c0_123, %c0_124] : memref<1x1xf32, #tpu.memory_space<vmem>>, vector<1x1xf32>
      tpu.vector_store %arg27[%c0_123, %c0_124], %182 {strides = array<i32>} : memref<1x1xf32, #tpu.memory_space<vmem>>, vector<1x1xf32>,
    } else {
    }
    %c0 = arith.constant 0 : index
    %c0_1 = arith.constant 0 : index
    %c0_2 = arith.constant 0 : index
    %3 = vector.load %arg2[%c0, %c0_1, %c0_2] : memref<1x8x625xf32, #tpu.memory_space<vmem>>, vector<1x8x625xf32>
    %4 = vector.shape_cast %3 : vector<1x8x625xf32> to vector<8x625xf32>
    %c0_3 = arith.constant 0 : index
    %c0_4 = arith.constant 0 : index
    %c0_5 = arith.constant 0 : index
    %5 = vector.load %arg3[%c0_3, %c0_4, %c0_5] : memref<1x8x625xf32, #tpu.memory_space<vmem>>, vector<1x8x625xf32>
    %6 = vector.shape_cast %5 : vector<1x8x625xf32> to vector<8x625xf32>
    %c0_6 = arith.constant 0 : index
    %c0_7 = arith.constant 0 : index
    %c0_8 = arith.constant 0 : index
    %7 = vector.load %arg4[%c0_6, %c0_7, %c0_8] : memref<1x2x625xf32, #tpu.memory_space<vmem>>, vector<1x2x625xf32>
    %8 = vector.shape_cast %7 : vector<1x2x625xf32> to vector<2x625xf32>
    %9 = vector.extract_strided_slice %8 {offsets = [0, 0], sizes = [1, 625], strides = [1, 1]} : vector<2x625xf32> to vector<1x625xf32>
    %10 = vector.extract_strided_slice %8 {offsets = [1, 0], sizes = [1, 625], strides = [1, 1]} : vector<2x625xf32> to vector<1x625xf32>
    %11 = tpu.iota {dimensions = array<i32: 1>} : vector<1x625xi32>
    %c625_i32 = arith.constant 625 : i32
    %12 = arith.muli %arg1, %c625_i32 : i32
    %c625_i32_9 = arith.constant 625 : i32
    %13 = arith.subi %c625_i32_9, %12 : i32
    %14 = vector.broadcast %13 : i32 to vector<1x625xi32>
    %15 = arith.cmpi slt, %11, %14 : vector<1x625xi32>
    %cst = arith.constant 1.000000e+00 : f32
    %16 = vector.broadcast %cst : f32 to vector<1x625xf32>
    %cst_10 = arith.constant 1.000000e+00 : f32
    %17 = vector.broadcast %cst_10 : f32 to vector<1x8xf32>
    %cst_11 = arith.constant 1.000000e+00 : f32
    %18 = vector.broadcast %cst_11 : f32 to vector<1x625xf32>
    %19 = math.absf %4 : vector<8x625xf32>
    %20 = math.absf %6 : vector<8x625xf32>
    %c0_12 = arith.constant 0 : index
    %c0_13 = arith.constant 0 : index
    %21 = vector.load %arg16[%c0_12, %c0_13] : memref<8x1xf32, #tpu.memory_space<vmem>>, vector<8x1xf32>
    %cst_14 = arith.constant dense<0.000000e+00> : vector<8x1xf32>
    %22 = tpu.matmul %20, %16, %cst_14 {dimension_numbers = #tpu.dot_dimension_numbers<[1], [1], [0], [0], [0, 0, 1, 0], [], []>} : vector<8x625xf32>, vector<1x625xf32>, vector<8x1xf32> -> vector<8x1xf32>
    %23 = arith.addf %21, %22 : vector<8x1xf32>
    %c0_15 = arith.constant 0 : index
    %c0_16 = arith.constant 0 : index
    %24 = vector.load %arg16[%c0_15, %c0_16] : memref<8x1xf32, #tpu.memory_space<vmem>>, vector<8x1xf32>
    tpu.vector_store %arg16[%c0_15, %c0_16], %23 {strides = array<i32>} : memref<8x1xf32, #tpu.memory_space<vmem>>, vector<8x1xf32>,
    %c0_17 = arith.constant 0 : index
    %c0_18 = arith.constant 0 : index
    %25 = vector.load %arg17[%c0_17, %c0_18] : memref<8x1xf32, #tpu.memory_space<vmem>>, vector<8x1xf32>
    %cst_19 = arith.constant dense<0.000000e+00> : vector<8x1xf32>
    %26 = tpu.matmul %19, %16, %cst_19 {dimension_numbers = #tpu.dot_dimension_numbers<[1], [1], [0], [0], [0, 0, 1, 0], [], []>} : vector<8x625xf32>, vector<1x625xf32>, vector<8x1xf32> -> vector<8x1xf32>
    %27 = arith.addf %25, %26 : vector<8x1xf32>
    %c0_20 = arith.constant 0 : index
    %c0_21 = arith.constant 0 : index
    %28 = vector.load %arg17[%c0_20, %c0_21] : memref<8x1xf32, #tpu.memory_space<vmem>>, vector<8x1xf32>
    tpu.vector_store %arg17[%c0_20, %c0_21], %27 {strides = array<i32>} : memref<8x1xf32, #tpu.memory_space<vmem>>, vector<8x1xf32>,
    %cst_22 = arith.constant dense<0.000000e+00> : vector<1x625xf32>
    %29 = tpu.matmul %17, %20, %cst_22 {dimension_numbers = #tpu.dot_dimension_numbers<[1], [0], [0], [1], [0, 0, 1, 1], [], []>} : vector<1x8xf32>, vector<8x625xf32>, vector<1x625xf32> -> vector<1x625xf32>
    %cst_23 = arith.constant 2.500000e-01 : f32
    %30 = vector.broadcast %cst_23 : f32 to vector<1x625xf32>
    %31 = arith.mulf %29, %30 : vector<1x625xf32>
    %cst_24 = arith.constant -1.000000e+30 : f32
    %32 = vector.broadcast %cst_24 : f32 to vector<1x625xf32>
    %33 = arith.select %15, %31, %32 : vector<1x625xi1>, vector<1x625xf32>
    %cst_25 = arith.constant dense<0.000000e+00> : vector<1x625xf32>
    %34 = tpu.matmul %17, %19, %cst_25 {dimension_numbers = #tpu.dot_dimension_numbers<[1], [0], [0], [1], [0, 0, 1, 1], [], []>} : vector<1x8xf32>, vector<8x625xf32>, vector<1x625xf32> -> vector<1x625xf32>
    %cst_26 = arith.constant 2.500000e-01 : f32
    %35 = vector.broadcast %cst_26 : f32 to vector<1x625xf32>
    %36 = arith.mulf %34, %35 : vector<1x625xf32>
    %cst_27 = arith.constant -1.000000e+30 : f32
    %37 = vector.broadcast %cst_27 : f32 to vector<1x625xf32>
    %38 = arith.select %15, %36, %37 : vector<1x625xi1>, vector<1x625xf32>
    %39 = arith.index_cast %arg1 : i32 to index
    %c0_28 = arith.constant 0 : index
    %40 = vector.load %arg14[%39, %c0_28] : memref<1x625xf32, #tpu.memory_space<vmem>>, vector<1x625xf32>
    tpu.vector_store %arg14[%39, %c0_28], %33 {strides = array<i32>} : memref<1x625xf32, #tpu.memory_space<vmem>>, vector<1x625xf32>,
    %41 = arith.index_cast %arg1 : i32 to index
    %c0_29 = arith.constant 0 : index
    %42 = vector.load %arg15[%41, %c0_29] : memref<1x625xf32, #tpu.memory_space<vmem>>, vector<1x625xf32>
    tpu.vector_store %arg15[%41, %c0_29], %38 {strides = array<i32>} : memref<1x625xf32, #tpu.memory_space<vmem>>, vector<1x625xf32>,
    %43 = arith.subf %4, %6 : vector<8x625xf32>
    %44 = arith.subf %4, %6 : vector<8x625xf32>
    %45 = arith.mulf %43, %44 : vector<8x625xf32>
    %c0_30 = arith.constant 0 : index
    %c0_31 = arith.constant 0 : index
    %46 = vector.load %arg23[%c0_30, %c0_31] : memref<1x1xf32, #tpu.memory_space<vmem>>, vector<1x1xf32>
    %47 = vector.shape_cast %33 : vector<1x625xf32> to vector<1x1x625xf32>
    %cst_32 = arith.constant dense<0xFF800000> : vector<1xf32>
    %48 = vector.multi_reduction <maximumf>, %47, %cst_32 [1, 2] : vector<1x1x625xf32> to vector<1xf32>
    %49 = vector.shape_cast %48 : vector<1xf32> to vector<1x1x1xf32>
    %50 = vector.extract %49[0, 0, 0] : f32 from vector<1x1x1xf32>
    %51 = vector.broadcast %50 : f32 to vector<1x1xf32>
    %52 = arith.maximumf %46, %51 : vector<1x1xf32>
    %53 = arith.subf %46, %52 : vector<1x1xf32>
    %54 = math.exp %53 : vector<1x1xf32>
    %55 = vector.broadcast %52 : vector<1x1xf32> to vector<1x625xf32>
    %56 = arith.subf %33, %55 : vector<1x625xf32>
    %57 = math.exp %56 : vector<1x625xf32>
    %58 = arith.mulf %57, %9 : vector<1x625xf32>
    %59 = arith.mulf %57, %10 : vector<1x625xf32>
    %60 = tpu.concatenate %58, %59, %18 in 0 : vector<1x625xf32>, vector<1x625xf32>, vector<1x625xf32> -> vector<3x625xf32>
    %cst_33 = arith.constant dense<0.000000e+00> : vector<8x3xf32>
    %61 = tpu.matmul %45, %60, %cst_33 {dimension_numbers = #tpu.dot_dimension_numbers<[1], [1], [0], [0], [0, 0, 1, 0], [], []>} : vector<8x625xf32>, vector<3x625xf32>, vector<8x3xf32> -> vector<8x3xf32>
    %c0_34 = arith.constant 0 : index
    %c0_35 = arith.constant 0 : index
    %62 = vector.load %arg18[%c0_34, %c0_35] : memref<8x2xf32, #tpu.memory_space<vmem>>, vector<8x2xf32>
    %63 = vector.broadcast %54 : vector<1x1xf32> to vector<8x2xf32>
    %64 = arith.mulf %62, %63 : vector<8x2xf32>
    %65 = vector.extract_strided_slice %61 {offsets = [0, 0], sizes = [8, 2], strides = [1, 1]} : vector<8x3xf32> to vector<8x2xf32>
    %66 = arith.addf %64, %65 : vector<8x2xf32>
    %c0_36 = arith.constant 0 : index
    %c0_37 = arith.constant 0 : index
    %67 = vector.load %arg18[%c0_36, %c0_37] : memref<8x2xf32, #tpu.memory_space<vmem>>, vector<8x2xf32>
    tpu.vector_store %arg18[%c0_36, %c0_37], %66 {strides = array<i32>} : memref<8x2xf32, #tpu.memory_space<vmem>>, vector<8x2xf32>,
    %c0_38 = arith.constant 0 : index
    %c0_39 = arith.constant 0 : index
    %68 = vector.load %arg22[%c0_38, %c0_39] : memref<8x1xf32, #tpu.memory_space<vmem>>, vector<8x1xf32>
    %69 = vector.extract_strided_slice %61 {offsets = [0, 2], sizes = [8, 1], strides = [1, 1]} : vector<8x3xf32> to vector<8x1xf32>
    %70 = arith.addf %68, %69 : vector<8x1xf32>
    %c0_40 = arith.constant 0 : index
    %c0_41 = arith.constant 0 : index
    %71 = vector.load %arg22[%c0_40, %c0_41] : memref<8x1xf32, #tpu.memory_space<vmem>>, vector<8x1xf32>
    tpu.vector_store %arg22[%c0_40, %c0_41], %70 {strides = array<i32>} : memref<8x1xf32, #tpu.memory_space<vmem>>, vector<8x1xf32>,
    %c0_42 = arith.constant 0 : index
    %c0_43 = arith.constant 0 : index
    %72 = vector.load %arg23[%c0_42, %c0_43] : memref<1x1xf32, #tpu.memory_space<vmem>>, vector<1x1xf32>
    tpu.vector_store %arg23[%c0_42, %c0_43], %52 {strides = array<i32>} : memref<1x1xf32, #tpu.memory_space<vmem>>, vector<1x1xf32>,
    %c0_44 = arith.constant 0 : index
    %c0_45 = arith.constant 0 : index
    %73 = vector.load %arg5[%c0_44, %c0_45] : memref<2x8xf32, #tpu.memory_space<vmem>>, vector<2x8xf32>
    %c0_46 = arith.constant 0 : index
    %c0_47 = arith.constant 0 : index
    %c0_48 = arith.constant 0 : index
    %74 = vector.load %arg6[%c0_46, %c0_47, %c0_48] : memref<2x1x1xf32, #tpu.memory_space<vmem>>, vector<2x1x1xf32>
    %75 = vector.extract_strided_slice %73 {offsets = [0, 0], sizes = [1, 8], strides = [1, 1]} : vector<2x8xf32> to vector<1x8xf32>
    %cst_49 = arith.constant dense<0.000000e+00> : vector<1x625xf32>
    %76 = tpu.matmul %75, %4, %cst_49 {dimension_numbers = #tpu.dot_dimension_numbers<[1], [0], [0], [1], [0, 0, 1, 1], [], []>} : vector<1x8xf32>, vector<8x625xf32>, vector<1x625xf32> -> vector<1x625xf32>
    %77 = vector.extract_strided_slice %74 {offsets = [0, 0, 0], sizes = [1, 1, 1], strides = [1, 1, 1]} : vector<2x1x1xf32> to vector<1x1x1xf32>
    %78 = vector.shape_cast %77 : vector<1x1x1xf32> to vector<1x1xf32>
    %79 = vector.broadcast %78 : vector<1x1xf32> to vector<1x625xf32>
    %80 = arith.addf %76, %79 : vector<1x625xf32>
    %cst_50 = arith.constant -1.000000e+30 : f32
    %81 = vector.broadcast %cst_50 : f32 to vector<1x625xf32>
    %82 = arith.select %15, %80, %81 : vector<1x625xi1>, vector<1x625xf32>
    %c0_51 = arith.constant 0 : index
    %c0_52 = arith.constant 0 : index
    %83 = vector.load %arg24[%c0_51, %c0_52] : memref<1x1xf32, #tpu.memory_space<vmem>>, vector<1x1xf32>
    %84 = vector.shape_cast %82 : vector<1x625xf32> to vector<1x1x625xf32>
    %cst_53 = arith.constant dense<0xFF800000> : vector<1xf32>
    %85 = vector.multi_reduction <maximumf>, %84, %cst_53 [1, 2] : vector<1x1x625xf32> to vector<1xf32>
    %86 = vector.shape_cast %85 : vector<1xf32> to vector<1x1x1xf32>
    %87 = vector.extract %86[0, 0, 0] : f32 from vector<1x1x1xf32>
    %88 = vector.broadcast %87 : f32 to vector<1x1xf32>
    %89 = arith.maximumf %83, %88 : vector<1x1xf32>
    %90 = arith.subf %83, %89 : vector<1x1xf32>
    %91 = math.exp %90 : vector<1x1xf32>
    %92 = vector.broadcast %89 : vector<1x1xf32> to vector<1x625xf32>
    %93 = arith.subf %82, %92 : vector<1x625xf32>
    %94 = math.exp %93 : vector<1x625xf32>
    %c0_54 = arith.constant 0 : index
    %c0_55 = arith.constant 0 : index
    %95 = vector.load %arg25[%c0_54, %c0_55] : memref<1x1xf32, #tpu.memory_space<vmem>>, vector<1x1xf32>
    %96 = arith.mulf %95, %91 : vector<1x1xf32>
    %97 = vector.shape_cast %94 : vector<1x625xf32> to vector<1x1x625xf32>
    %cst_56 = arith.constant dense<0.000000e+00> : vector<1xf32>
    %98 = vector.multi_reduction <add>, %97, %cst_56 [1, 2] : vector<1x1x625xf32> to vector<1xf32>
    %99 = vector.shape_cast %98 : vector<1xf32> to vector<1x1x1xf32>
    %100 = vector.extract %99[0, 0, 0] : f32 from vector<1x1x1xf32>
    %101 = vector.broadcast %100 : f32 to vector<1x1xf32>
    %102 = arith.addf %96, %101 : vector<1x1xf32>
    %c0_57 = arith.constant 0 : index
    %c0_58 = arith.constant 0 : index
    %103 = vector.load %arg25[%c0_57, %c0_58] : memref<1x1xf32, #tpu.memory_space<vmem>>, vector<1x1xf32>
    tpu.vector_store %arg25[%c0_57, %c0_58], %102 {strides = array<i32>} : memref<1x1xf32, #tpu.memory_space<vmem>>, vector<1x1xf32>,
    %104 = tpu.concatenate %94, %18 in 0 : vector<1x625xf32>, vector<1x625xf32> -> vector<2x625xf32>
    %cst_59 = arith.constant dense<0.000000e+00> : vector<8x2xf32>
    %105 = tpu.matmul %4, %104, %cst_59 {dimension_numbers = #tpu.dot_dimension_numbers<[1], [1], [0], [0], [0, 0, 1, 0], [], []>} : vector<8x625xf32>, vector<2x625xf32>, vector<8x2xf32> -> vector<8x2xf32>
    %c0_60 = arith.constant 0 : index
    %c0_61 = arith.constant 0 : index
    %106 = vector.load %arg20[%c0_60, %c0_61] : memref<8x1xf32, #tpu.memory_space<vmem>>, vector<8x1xf32>
    %107 = vector.broadcast %91 : vector<1x1xf32> to vector<8x1xf32>
    %108 = arith.mulf %106, %107 : vector<8x1xf32>
    %109 = vector.extract_strided_slice %105 {offsets = [0, 0], sizes = [8, 1], strides = [1, 1]} : vector<8x2xf32> to vector<8x1xf32>
    %110 = arith.addf %108, %109 : vector<8x1xf32>
    %c0_62 = arith.constant 0 : index
    %c0_63 = arith.constant 0 : index
    %111 = vector.load %arg20[%c0_62, %c0_63] : memref<8x1xf32, #tpu.memory_space<vmem>>, vector<8x1xf32>
    tpu.vector_store %arg20[%c0_62, %c0_63], %110 {strides = array<i32>} : memref<8x1xf32, #tpu.memory_space<vmem>>, vector<8x1xf32>,
    %c0_64 = arith.constant 0 : index
    %c0_65 = arith.constant 0 : index
    %112 = vector.load %arg24[%c0_64, %c0_65] : memref<1x1xf32, #tpu.memory_space<vmem>>, vector<1x1xf32>
    tpu.vector_store %arg24[%c0_64, %c0_65], %89 {strides = array<i32>} : memref<1x1xf32, #tpu.memory_space<vmem>>, vector<1x1xf32>,
    %113 = vector.extract_strided_slice %105 {offsets = [0, 1], sizes = [8, 1], strides = [1, 1]} : vector<8x2xf32> to vector<8x1xf32>
    %114 = vector.extract_strided_slice %73 {offsets = [1, 0], sizes = [1, 8], strides = [1, 1]} : vector<2x8xf32> to vector<1x8xf32>
    %cst_66 = arith.constant dense<0.000000e+00> : vector<1x625xf32>
    %115 = tpu.matmul %114, %6, %cst_66 {dimension_numbers = #tpu.dot_dimension_numbers<[1], [0], [0], [1], [0, 0, 1, 1], [], []>} : vector<1x8xf32>, vector<8x625xf32>, vector<1x625xf32> -> vector<1x625xf32>
    %116 = vector.extract_strided_slice %74 {offsets = [1, 0, 0], sizes = [1, 1, 1], strides = [1, 1, 1]} : vector<2x1x1xf32> to vector<1x1x1xf32>
    %117 = vector.shape_cast %116 : vector<1x1x1xf32> to vector<1x1xf32>
    %118 = vector.broadcast %117 : vector<1x1xf32> to vector<1x625xf32>
    %119 = arith.addf %115, %118 : vector<1x625xf32>
    %cst_67 = arith.constant -1.000000e+30 : f32
    %120 = vector.broadcast %cst_67 : f32 to vector<1x625xf32>
    %121 = arith.select %15, %119, %120 : vector<1x625xi1>, vector<1x625xf32>
    %c0_68 = arith.constant 0 : index
    %c0_69 = arith.constant 0 : index
    %122 = vector.load %arg26[%c0_68, %c0_69] : memref<1x1xf32, #tpu.memory_space<vmem>>, vector<1x1xf32>
    %123 = vector.shape_cast %121 : vector<1x625xf32> to vector<1x1x625xf32>
    %cst_70 = arith.constant dense<0xFF800000> : vector<1xf32>
    %124 = vector.multi_reduction <maximumf>, %123, %cst_70 [1, 2] : vector<1x1x625xf32> to vector<1xf32>
    %125 = vector.shape_cast %124 : vector<1xf32> to vector<1x1x1xf32>
    %126 = vector.extract %125[0, 0, 0] : f32 from vector<1x1x1xf32>
    %127 = vector.broadcast %126 : f32 to vector<1x1xf32>
    %128 = arith.maximumf %122, %127 : vector<1x1xf32>
    %129 = arith.subf %122, %128 : vector<1x1xf32>
    %130 = math.exp %129 : vector<1x1xf32>
    %131 = vector.broadcast %128 : vector<1x1xf32> to vector<1x625xf32>
    %132 = arith.subf %121, %131 : vector<1x625xf32>
    %133 = math.exp %132 : vector<1x625xf32>
    %c0_71 = arith.constant 0 : index
    %c0_72 = arith.constant 0 : index
    %134 = vector.load %arg27[%c0_71, %c0_72] : memref<1x1xf32, #tpu.memory_space<vmem>>, vector<1x1xf32>
    %135 = arith.mulf %134, %130 : vector<1x1xf32>
    %136 = vector.shape_cast %133 : vector<1x625xf32> to vector<1x1x625xf32>
    %cst_73 = arith.constant dense<0.000000e+00> : vector<1xf32>
    %137 = vector.multi_reduction <add>, %136, %cst_73 [1, 2] : vector<1x1x625xf32> to vector<1xf32>
    %138 = vector.shape_cast %137 : vector<1xf32> to vector<1x1x1xf32>
    %139 = vector.extract %138[0, 0, 0] : f32 from vector<1x1x1xf32>
    %140 = vector.broadcast %139 : f32 to vector<1x1xf32>
    %141 = arith.addf %135, %140 : vector<1x1xf32>
    %c0_74 = arith.constant 0 : index
    %c0_75 = arith.constant 0 : index
    %142 = vector.load %arg27[%c0_74, %c0_75] : memref<1x1xf32, #tpu.memory_space<vmem>>, vector<1x1xf32>
    tpu.vector_store %arg27[%c0_74, %c0_75], %141 {strides = array<i32>} : memref<1x1xf32, #tpu.memory_space<vmem>>, vector<1x1xf32>,
    %143 = tpu.concatenate %133, %18 in 0 : vector<1x625xf32>, vector<1x625xf32> -> vector<2x625xf32>
    %cst_76 = arith.constant dense<0.000000e+00> : vector<8x2xf32>
    %144 = tpu.matmul %6, %143, %cst_76 {dimension_numbers = #tpu.dot_dimension_numbers<[1], [1], [0], [0], [0, 0, 1, 0], [], []>} : vector<8x625xf32>, vector<2x625xf32>, vector<8x2xf32> -> vector<8x2xf32>
    %c0_77 = arith.constant 0 : index
    %c0_78 = arith.constant 0 : index
    %145 = vector.load %arg21[%c0_77, %c0_78] : memref<8x1xf32, #tpu.memory_space<vmem>>, vector<8x1xf32>
    %146 = vector.broadcast %130 : vector<1x1xf32> to vector<8x1xf32>
    %147 = arith.mulf %145, %146 : vector<8x1xf32>
    %148 = vector.extract_strided_slice %144 {offsets = [0, 0], sizes = [8, 1], strides = [1, 1]} : vector<8x2xf32> to vector<8x1xf32>
    %149 = arith.addf %147, %148 : vector<8x1xf32>
    %c0_79 = arith.constant 0 : index
    %c0_80 = arith.constant 0 : index
    %150 = vector.load %arg21[%c0_79, %c0_80] : memref<8x1xf32, #tpu.memory_space<vmem>>, vector<8x1xf32>
    tpu.vector_store %arg21[%c0_79, %c0_80], %149 {strides = array<i32>} : memref<8x1xf32, #tpu.memory_space<vmem>>, vector<8x1xf32>,
    %c0_81 = arith.constant 0 : index
    %c0_82 = arith.constant 0 : index
    %151 = vector.load %arg26[%c0_81, %c0_82] : memref<1x1xf32, #tpu.memory_space<vmem>>, vector<1x1xf32>
    tpu.vector_store %arg26[%c0_81, %c0_82], %128 {strides = array<i32>} : memref<1x1xf32, #tpu.memory_space<vmem>>, vector<1x1xf32>,
    %152 = vector.extract_strided_slice %144 {offsets = [0, 1], sizes = [8, 1], strides = [1, 1]} : vector<8x2xf32> to vector<8x1xf32>
    %c0_83 = arith.constant 0 : index
    %c0_84 = arith.constant 0 : index
    %153 = vector.load %arg19[%c0_83, %c0_84] : memref<8x1xf32, #tpu.memory_space<vmem>>, vector<8x1xf32>
    %154 = arith.subf %113, %152 : vector<8x1xf32>
    %155 = arith.addf %153, %154 : vector<8x1xf32>
    %c0_85 = arith.constant 0 : index
    %c0_86 = arith.constant 0 : index
    %156 = vector.load %arg19[%c0_85, %c0_86] : memref<8x1xf32, #tpu.memory_space<vmem>>, vector<8x1xf32>
    tpu.vector_store %arg19[%c0_85, %c0_86], %155 {strides = array<i32>} : memref<8x1xf32, #tpu.memory_space<vmem>>, vector<8x1xf32>,
    %c0_i32_87 = arith.constant 0 : i32
    %157 = arith.cmpi eq, %arg1, %c0_i32_87 : i32
    %158 = arith.extui %157 : i1 to i32
    %c0_i32_88 = arith.constant 0 : i32
    %159 = arith.cmpi ne, %158, %c0_i32_88 : i32
    scf.if %159 {
      %c0_89 = arith.constant 0 : index
      %c0_90 = arith.constant 0 : index
      %160 = vector.load %arg16[%c0_89, %c0_90] : memref<8x1xf32, #tpu.memory_space<vmem>>, vector<8x1xf32>
      %cst_91 = arith.constant 3.200000e-03 : f32
      %161 = vector.broadcast %cst_91 : f32 to vector<8x1xf32>
      %162 = arith.mulf %160, %161 : vector<8x1xf32>
      %cst_92 = arith.constant dense<0xFF800000> : vector<1xf32>
      %163 = vector.multi_reduction <maximumf>, %162, %cst_92 [0] : vector<8x1xf32> to vector<1xf32>
      %164 = vector.shape_cast %163 : vector<1xf32> to vector<1x1xf32>
      %165 = vector.broadcast %164 : vector<1x1xf32> to vector<8x1xf32>
      %166 = arith.subf %162, %165 : vector<8x1xf32>
      %167 = math.exp %166 : vector<8x1xf32>
      %cst_93 = arith.constant 8.000000e+00 : f32
      %168 = vector.broadcast %cst_93 : f32 to vector<8x1xf32>
      %169 = arith.mulf %168, %167 : vector<8x1xf32>
      %cst_94 = arith.constant dense<0.000000e+00> : vector<1xf32>
      %170 = vector.multi_reduction <add>, %167, %cst_94 [0] : vector<8x1xf32> to vector<1xf32>
      %171 = vector.shape_cast %170 : vector<1xf32> to vector<1x1xf32>
      %172 = vector.broadcast %171 : vector<1x1xf32> to vector<8x1xf32>
      %173 = arith.divf %169, %172 : vector<8x1xf32>
      %c0_95 = arith.constant 0 : index
      %c0_96 = arith.constant 0 : index
      %174 = vector.load %arg17[%c0_95, %c0_96] : memref<8x1xf32, #tpu.memory_space<vmem>>, vector<8x1xf32>
      %cst_97 = arith.constant 3.200000e-03 : f32
      %175 = vector.broadcast %cst_97 : f32 to vector<8x1xf32>
      %176 = arith.mulf %174, %175 : vector<8x1xf32>
      %cst_98 = arith.constant dense<0xFF800000> : vector<1xf32>
      %177 = vector.multi_reduction <maximumf>, %176, %cst_98 [0] : vector<8x1xf32> to vector<1xf32>
      %178 = vector.shape_cast %177 : vector<1xf32> to vector<1x1xf32>
      %179 = vector.broadcast %178 : vector<1x1xf32> to vector<8x1xf32>
      %180 = arith.subf %176, %179 : vector<8x1xf32>
      %181 = math.exp %180 : vector<8x1xf32>
      %cst_99 = arith.constant 8.000000e+00 : f32
      %182 = vector.broadcast %cst_99 : f32 to vector<8x1xf32>
      %183 = arith.mulf %182, %181 : vector<8x1xf32>
      %cst_100 = arith.constant dense<0.000000e+00> : vector<1xf32>
      %184 = vector.multi_reduction <add>, %181, %cst_100 [0] : vector<8x1xf32> to vector<1xf32>
      %185 = vector.shape_cast %184 : vector<1xf32> to vector<1x1xf32>
      %186 = vector.broadcast %185 : vector<1x1xf32> to vector<8x1xf32>
      %187 = arith.divf %183, %186 : vector<8x1xf32>
      %c0_101 = arith.constant 0 : index
      %c0_102 = arith.constant 0 : index
      %188 = vector.load %arg14[%c0_101, %c0_102] : memref<1x625xf32, #tpu.memory_space<vmem>>, vector<1x625xf32>
      %c0_103 = arith.constant 0 : index
      %c0_104 = arith.constant 0 : index
      %189 = vector.load %arg15[%c0_103, %c0_104] : memref<1x625xf32, #tpu.memory_space<vmem>>, vector<1x625xf32>
      %190 = vector.shape_cast %188 : vector<1x625xf32> to vector<1x1x625xf32>
      %cst_105 = arith.constant dense<0xFF800000> : vector<1xf32>
      %191 = vector.multi_reduction <maximumf>, %190, %cst_105 [1, 2] : vector<1x1x625xf32> to vector<1xf32>
      %192 = vector.shape_cast %191 : vector<1xf32> to vector<1x1x1xf32>
      %193 = vector.extract %192[0, 0, 0] : f32 from vector<1x1x1xf32>
      %194 = vector.broadcast %193 : f32 to vector<1x625xf32>
      %195 = arith.subf %188, %194 : vector<1x625xf32>
      %196 = math.exp %195 : vector<1x625xf32>
      %197 = vector.shape_cast %196 : vector<1x625xf32> to vector<1x1x625xf32>
      %cst_106 = arith.constant dense<0.000000e+00> : vector<1xf32>
      %198 = vector.multi_reduction <add>, %197, %cst_106 [1, 2] : vector<1x1x625xf32> to vector<1xf32>
      %199 = vector.shape_cast %198 : vector<1xf32> to vector<1x1x1xf32>
      %200 = vector.extract %199[0, 0, 0] : f32 from vector<1x1x1xf32>
      %201 = vector.shape_cast %189 : vector<1x625xf32> to vector<1x1x625xf32>
      %cst_107 = arith.constant dense<0xFF800000> : vector<1xf32>
      %202 = vector.multi_reduction <maximumf>, %201, %cst_107 [1, 2] : vector<1x1x625xf32> to vector<1xf32>
      %203 = vector.shape_cast %202 : vector<1xf32> to vector<1x1x1xf32>
      %204 = vector.extract %203[0, 0, 0] : f32 from vector<1x1x1xf32>
      %205 = vector.broadcast %204 : f32 to vector<1x625xf32>
      %206 = arith.subf %189, %205 : vector<1x625xf32>
      %207 = math.exp %206 : vector<1x625xf32>
      %208 = vector.shape_cast %207 : vector<1x625xf32> to vector<1x1x625xf32>
      %cst_108 = arith.constant dense<0.000000e+00> : vector<1xf32>
      %209 = vector.multi_reduction <add>, %208, %cst_108 [1, 2] : vector<1x1x625xf32> to vector<1xf32>
      %210 = vector.shape_cast %209 : vector<1xf32> to vector<1x1x1xf32>
      %211 = vector.extract %210[0, 0, 0] : f32 from vector<1x1x1xf32>
      %cst_109 = arith.constant 6.250000e+02 : f32
      %212 = vector.broadcast %cst_109 : f32 to vector<1x625xf32>
      %213 = arith.mulf %212, %196 : vector<1x625xf32>
      %214 = vector.broadcast %200 : f32 to vector<1x625xf32>
      %215 = arith.divf %213, %214 : vector<1x625xf32>
      %cst_110 = arith.constant 6.250000e+02 : f32
      %216 = vector.broadcast %cst_110 : f32 to vector<1x625xf32>
      %217 = arith.mulf %216, %207 : vector<1x625xf32>
      %218 = vector.broadcast %211 : f32 to vector<1x625xf32>
      %219 = arith.divf %217, %218 : vector<1x625xf32>
      %220 = arith.subf %187, %173 : vector<8x1xf32>
      %221 = math.absf %220 : vector<8x1xf32>
      %222 = vector.shape_cast %221 : vector<8x1xf32> to vector<1x8x1xf32>
      %cst_111 = arith.constant dense<0.000000e+00> : vector<1xf32>
      %223 = vector.multi_reduction <add>, %222, %cst_111 [1, 2] : vector<1x8x1xf32> to vector<1xf32>
      %224 = vector.shape_cast %223 : vector<1xf32> to vector<1x1x1xf32>
      %225 = vector.extract %224[0, 0, 0] : f32 from vector<1x1x1xf32>
      %226 = arith.subf %219, %215 : vector<1x625xf32>
      %227 = math.absf %226 : vector<1x625xf32>
      %228 = vector.shape_cast %227 : vector<1x625xf32> to vector<1x1x625xf32>
      %cst_112 = arith.constant dense<0.000000e+00> : vector<1xf32>
      %229 = vector.multi_reduction <add>, %228, %cst_112 [1, 2] : vector<1x1x625xf32> to vector<1xf32>
      %230 = vector.shape_cast %229 : vector<1xf32> to vector<1x1x1xf32>
      %231 = vector.extract %230[0, 0, 0] : f32 from vector<1x1x1xf32>
      %232 = arith.addf %225, %231 : f32
      %cst_113 = arith.constant 6.250000e+02 : f32
      %233 = arith.divf %cst_113, %200 : f32
      %c0_114 = arith.constant 0 : index
      %c0_115 = arith.constant 0 : index
      %234 = vector.load %arg18[%c0_114, %c0_115] : memref<8x2xf32, #tpu.memory_space<vmem>>, vector<8x1xf32>
      %235 = arith.mulf %173, %234 : vector<8x1xf32>
      %236 = vector.shape_cast %235 : vector<8x1xf32> to vector<1x8x1xf32>
      %cst_116 = arith.constant dense<0.000000e+00> : vector<1xf32>
      %237 = vector.multi_reduction <add>, %236, %cst_116 [1, 2] : vector<1x8x1xf32> to vector<1xf32>
      %238 = vector.shape_cast %237 : vector<1xf32> to vector<1x1x1xf32>
      %239 = vector.extract %238[0, 0, 0] : f32 from vector<1x1x1xf32>
      %240 = arith.mulf %233, %239 : f32
      %cst_117 = arith.constant 6.250000e+02 : f32
      %241 = arith.divf %cst_117, %200 : f32
      %c0_118 = arith.constant 0 : index
      %c1 = arith.constant 1 : index
      %242 = vector.load %arg18[%c0_118, %c1] : memref<8x2xf32, #tpu.memory_space<vmem>>, vector<8x1xf32>
      %243 = arith.mulf %173, %242 : vector<8x1xf32>
      %244 = vector.shape_cast %243 : vector<8x1xf32> to vector<1x8x1xf32>
      %cst_119 = arith.constant dense<0.000000e+00> : vector<1xf32>
      %245 = vector.multi_reduction <add>, %244, %cst_119 [1, 2] : vector<1x8x1xf32> to vector<1xf32>
      %246 = vector.shape_cast %245 : vector<1xf32> to vector<1x1x1xf32>
      %247 = vector.extract %246[0, 0, 0] : f32 from vector<1x1x1xf32>
      %248 = arith.mulf %241, %247 : f32
      %c0_120 = arith.constant 0 : index
      %c0_121 = arith.constant 0 : index
      %c0_122 = arith.constant 0 : index
      %249 = vector.load %arg7[%c0_120, %c0_121, %c0_122] : memref<2x4x8xf32, #tpu.memory_space<vmem>>, vector<2x4x8xf32>
      %c0_123 = arith.constant 0 : index
      %c0_124 = arith.constant 0 : index
      %c0_125 = arith.constant 0 : index
      %250 = vector.load %arg8[%c0_123, %c0_124, %c0_125] : memref<2x4x1xf32, #tpu.memory_space<vmem>>, vector<2x4x1xf32>
      %c0_126 = arith.constant 0 : index
      %c0_127 = arith.constant 0 : index
      %c0_128 = arith.constant 0 : index
      %251 = vector.load %arg9[%c0_126, %c0_127, %c0_128] : memref<2x4x1xf32, #tpu.memory_space<vmem>>, vector<2x4x1xf32>
      %c0_129 = arith.constant 0 : index
      %c0_130 = arith.constant 0 : index
      %c0_131 = arith.constant 0 : index
      %252 = vector.load %arg10[%c0_129, %c0_130, %c0_131] : memref<2x4x1xf32, #tpu.memory_space<vmem>>, vector<2x4x1xf32>
      %c0_132 = arith.constant 0 : index
      %c0_133 = arith.constant 0 : index
      %c0_134 = arith.constant 0 : index
      %253 = vector.load %arg11[%c0_132, %c0_133, %c0_134] : memref<2x8x4xf32, #tpu.memory_space<vmem>>, vector<2x8x4xf32>
      %c0_135 = arith.constant 0 : index
      %c0_136 = arith.constant 0 : index
      %c0_137 = arith.constant 0 : index
      %254 = vector.load %arg12[%c0_135, %c0_136, %c0_137] : memref<2x8x1xf32, #tpu.memory_space<vmem>>, vector<2x8x1xf32>
      %c0_138 = arith.constant 0 : index
      %c0_139 = arith.constant 0 : index
      %255 = vector.load %arg20[%c0_138, %c0_139] : memref<8x1xf32, #tpu.memory_space<vmem>>, vector<8x1xf32>
      %c0_140 = arith.constant 0 : index
      %c0_141 = arith.constant 0 : index
      %256 = vector.load %arg25[%c0_140, %c0_141] : memref<1x1xf32, #tpu.memory_space<vmem>>, vector<1x1xf32>
      %257 = vector.broadcast %256 : vector<1x1xf32> to vector<8x1xf32>
      %258 = arith.divf %255, %257 : vector<8x1xf32>
      %259 = vector.extract_strided_slice %249 {offsets = [0, 0, 0], sizes = [1, 4, 8], strides = [1, 1, 1]} : vector<2x4x8xf32> to vector<1x4x8xf32>
      %260 = vector.shape_cast %259 : vector<1x4x8xf32> to vector<4x8xf32>
      %cst_142 = arith.constant dense<0.000000e+00> : vector<4x1xf32>
      %261 = tpu.matmul %260, %258, %cst_142 {dimension_numbers = #tpu.dot_dimension_numbers<[1], [0], [0], [1], [0, 0, 1, 1], [], []>} : vector<4x8xf32>, vector<8x1xf32>, vector<4x1xf32> -> vector<4x1xf32>
      %262 = vector.extract_strided_slice %250 {offsets = [0, 0, 0], sizes = [1, 4, 1], strides = [1, 1, 1]} : vector<2x4x1xf32> to vector<1x4x1xf32>
      %263 = vector.shape_cast %262 : vector<1x4x1xf32> to vector<4x1xf32>
      %264 = arith.addf %261, %263 : vector<4x1xf32>
      %cst_143 = arith.constant dense<0.000000e+00> : vector<1xf32>
      %265 = vector.multi_reduction <add>, %264, %cst_143 [0] : vector<4x1xf32> to vector<1xf32>
      %266 = vector.shape_cast %265 : vector<1xf32> to vector<1x1xf32>
      %cst_144 = arith.constant 4.000000e+00 : f32
      %267 = vector.broadcast %cst_144 : f32 to vector<1x1xf32>
      %268 = arith.divf %266, %267 : vector<1x1xf32>
      %269 = vector.broadcast %268 : vector<1x1xf32> to vector<4x1xf32>
      %270 = arith.subf %264, %269 : vector<4x1xf32>
      %271 = arith.mulf %270, %270 : vector<4x1xf32>
      %cst_145 = arith.constant dense<0.000000e+00> : vector<1xf32>
      %272 = vector.multi_reduction <add>, %271, %cst_145 [0] : vector<4x1xf32> to vector<1xf32>
      %273 = vector.shape_cast %272 : vector<1xf32> to vector<1x1xf32>
      %cst_146 = arith.constant 4.000000e+00 : f32
      %274 = vector.broadcast %cst_146 : f32 to vector<1x1xf32>
      %275 = arith.divf %273, %274 : vector<1x1xf32>
      %276 = vector.broadcast %268 : vector<1x1xf32> to vector<4x1xf32>
      %277 = arith.subf %264, %276 : vector<4x1xf32>
      %cst_147 = arith.constant 9.99999974E-6 : f32
      %278 = vector.broadcast %cst_147 : f32 to vector<1x1xf32>
      %279 = arith.addf %275, %278 : vector<1x1xf32>
      %280 = math.sqrt %279 : vector<1x1xf32>
      %281 = vector.broadcast %280 : vector<1x1xf32> to vector<4x1xf32>
      %282 = arith.divf %277, %281 : vector<4x1xf32>
      %283 = vector.extract_strided_slice %251 {offsets = [0, 0, 0], sizes = [1, 4, 1], strides = [1, 1, 1]} : vector<2x4x1xf32> to vector<1x4x1xf32>
      %284 = vector.shape_cast %283 : vector<1x4x1xf32> to vector<4x1xf32>
      %285 = arith.mulf %282, %284 : vector<4x1xf32>
      %286 = vector.extract_strided_slice %252 {offsets = [0, 0, 0], sizes = [1, 4, 1], strides = [1, 1, 1]} : vector<2x4x1xf32> to vector<1x4x1xf32>
      %287 = vector.shape_cast %286 : vector<1x4x1xf32> to vector<4x1xf32>
      %288 = arith.addf %285, %287 : vector<4x1xf32>
      %cst_148 = arith.constant 0.000000e+00 : f32
      %289 = vector.broadcast %cst_148 : f32 to vector<4x1xf32>
      %290 = arith.maximumf %288, %289 : vector<4x1xf32>
      %291 = vector.extract_strided_slice %253 {offsets = [0, 0, 0], sizes = [1, 8, 4], strides = [1, 1, 1]} : vector<2x8x4xf32> to vector<1x8x4xf32>
      %292 = vector.shape_cast %291 : vector<1x8x4xf32> to vector<8x4xf32>
      %cst_149 = arith.constant dense<0.000000e+00> : vector<8x1xf32>
      %293 = tpu.matmul %292, %290, %cst_149 {dimension_numbers = #tpu.dot_dimension_numbers<[1], [0], [0], [1], [0, 0, 1, 1], [], []>} : vector<8x4xf32>, vector<4x1xf32>, vector<8x1xf32> -> vector<8x1xf32>
      %294 = vector.extract_strided_slice %254 {offsets = [0, 0, 0], sizes = [1, 8, 1], strides = [1, 1, 1]} : vector<2x8x1xf32> to vector<1x8x1xf32>
      %295 = vector.shape_cast %294 : vector<1x8x1xf32> to vector<8x1xf32>
      %296 = arith.addf %293, %295 : vector<8x1xf32>
      %c0_150 = arith.constant 0 : index
      %c0_151 = arith.constant 0 : index
      %297 = vector.load %arg21[%c0_150, %c0_151] : memref<8x1xf32, #tpu.memory_space<vmem>>, vector<8x1xf32>
      %c0_152 = arith.constant 0 : index
      %c0_153 = arith.constant 0 : index
      %298 = vector.load %arg27[%c0_152, %c0_153] : memref<1x1xf32, #tpu.memory_space<vmem>>, vector<1x1xf32>
      %299 = vector.broadcast %298 : vector<1x1xf32> to vector<8x1xf32>
      %300 = arith.divf %297, %299 : vector<8x1xf32>
      %301 = vector.extract_strided_slice %249 {offsets = [1, 0, 0], sizes = [1, 4, 8], strides = [1, 1, 1]} : vector<2x4x8xf32> to vector<1x4x8xf32>
      %302 = vector.shape_cast %301 : vector<1x4x8xf32> to vector<4x8xf32>
      %cst_154 = arith.constant dense<0.000000e+00> : vector<4x1xf32>
      %303 = tpu.matmul %302, %300, %cst_154 {dimension_numbers = #tpu.dot_dimension_numbers<[1], [0], [0], [1], [0, 0, 1, 1], [], []>} : vector<4x8xf32>, vector<8x1xf32>, vector<4x1xf32> -> vector<4x1xf32>
      %304 = vector.extract_strided_slice %250 {offsets = [1, 0, 0], sizes = [1, 4, 1], strides = [1, 1, 1]} : vector<2x4x1xf32> to vector<1x4x1xf32>
      %305 = vector.shape_cast %304 : vector<1x4x1xf32> to vector<4x1xf32>
      %306 = arith.addf %303, %305 : vector<4x1xf32>
      %cst_155 = arith.constant dense<0.000000e+00> : vector<1xf32>
      %307 = vector.multi_reduction <add>, %306, %cst_155 [0] : vector<4x1xf32> to vector<1xf32>
      %308 = vector.shape_cast %307 : vector<1xf32> to vector<1x1xf32>
      %cst_156 = arith.constant 4.000000e+00 : f32
      %309 = vector.broadcast %cst_156 : f32 to vector<1x1xf32>
      %310 = arith.divf %308, %309 : vector<1x1xf32>
      %311 = vector.broadcast %310 : vector<1x1xf32> to vector<4x1xf32>
      %312 = arith.subf %306, %311 : vector<4x1xf32>
      %313 = arith.mulf %312, %312 : vector<4x1xf32>
      %cst_157 = arith.constant dense<0.000000e+00> : vector<1xf32>
      %314 = vector.multi_reduction <add>, %313, %cst_157 [0] : vector<4x1xf32> to vector<1xf32>
      %315 = vector.shape_cast %314 : vector<1xf32> to vector<1x1xf32>
      %cst_158 = arith.constant 4.000000e+00 : f32
      %316 = vector.broadcast %cst_158 : f32 to vector<1x1xf32>
      %317 = arith.divf %315, %316 : vector<1x1xf32>
      %318 = vector.broadcast %310 : vector<1x1xf32> to vector<4x1xf32>
      %319 = arith.subf %306, %318 : vector<4x1xf32>
      %cst_159 = arith.constant 9.99999974E-6 : f32
      %320 = vector.broadcast %cst_159 : f32 to vector<1x1xf32>
      %321 = arith.addf %317, %320 : vector<1x1xf32>
      %322 = math.sqrt %321 : vector<1x1xf32>
      %323 = vector.broadcast %322 : vector<1x1xf32> to vector<4x1xf32>
      %324 = arith.divf %319, %323 : vector<4x1xf32>
      %325 = vector.extract_strided_slice %251 {offsets = [1, 0, 0], sizes = [1, 4, 1], strides = [1, 1, 1]} : vector<2x4x1xf32> to vector<1x4x1xf32>
      %326 = vector.shape_cast %325 : vector<1x4x1xf32> to vector<4x1xf32>
      %327 = arith.mulf %324, %326 : vector<4x1xf32>
      %328 = vector.extract_strided_slice %252 {offsets = [1, 0, 0], sizes = [1, 4, 1], strides = [1, 1, 1]} : vector<2x4x1xf32> to vector<1x4x1xf32>
      %329 = vector.shape_cast %328 : vector<1x4x1xf32> to vector<4x1xf32>
      %330 = arith.addf %327, %329 : vector<4x1xf32>
      %cst_160 = arith.constant 0.000000e+00 : f32
      %331 = vector.broadcast %cst_160 : f32 to vector<4x1xf32>
      %332 = arith.maximumf %330, %331 : vector<4x1xf32>
      %333 = vector.extract_strided_slice %253 {offsets = [1, 0, 0], sizes = [1, 8, 4], strides = [1, 1, 1]} : vector<2x8x4xf32> to vector<1x8x4xf32>
      %334 = vector.shape_cast %333 : vector<1x8x4xf32> to vector<8x4xf32>
      %cst_161 = arith.constant dense<0.000000e+00> : vector<8x1xf32>
      %335 = tpu.matmul %334, %332, %cst_161 {dimension_numbers = #tpu.dot_dimension_numbers<[1], [0], [0], [1], [0, 0, 1, 1], [], []>} : vector<8x4xf32>, vector<4x1xf32>, vector<8x1xf32> -> vector<8x1xf32>
      %336 = vector.extract_strided_slice %254 {offsets = [1, 0, 0], sizes = [1, 8, 1], strides = [1, 1, 1]} : vector<2x8x1xf32> to vector<1x8x1xf32>
      %337 = vector.shape_cast %336 : vector<1x8x1xf32> to vector<8x1xf32>
      %338 = arith.addf %335, %337 : vector<8x1xf32>
      %339 = arith.subf %296, %338 : vector<8x1xf32>
      %c0_162 = arith.constant 0 : index
      %c0_163 = arith.constant 0 : index
      %340 = vector.load %arg22[%c0_162, %c0_163] : memref<8x1xf32, #tpu.memory_space<vmem>>, vector<8x1xf32>
      %341 = vector.shape_cast %340 : vector<8x1xf32> to vector<1x8x1xf32>
      %cst_164 = arith.constant dense<0.000000e+00> : vector<1xf32>
      %342 = vector.multi_reduction <add>, %341, %cst_164 [1, 2] : vector<1x8x1xf32> to vector<1xf32>
      %343 = vector.shape_cast %342 : vector<1xf32> to vector<1x1x1xf32>
      %344 = vector.extract %343[0, 0, 0] : f32 from vector<1x1x1xf32>
      %c0_165 = arith.constant 0 : index
      %c0_166 = arith.constant 0 : index
      %345 = vector.load %arg19[%c0_165, %c0_166] : memref<8x1xf32, #tpu.memory_space<vmem>>, vector<8x1xf32>
      %346 = arith.mulf %339, %345 : vector<8x1xf32>
      %347 = vector.shape_cast %346 : vector<8x1xf32> to vector<1x8x1xf32>
      %cst_167 = arith.constant dense<0.000000e+00> : vector<1xf32>
      %348 = vector.multi_reduction <add>, %347, %cst_167 [1, 2] : vector<1x8x1xf32> to vector<1xf32>
      %349 = vector.shape_cast %348 : vector<1xf32> to vector<1x1x1xf32>
      %350 = vector.extract %349[0, 0, 0] : f32 from vector<1x1x1xf32>
      %cst_168 = arith.constant 2.000000e+00 : f32
      %351 = arith.mulf %cst_168, %350 : f32
      %352 = arith.addf %344, %351 : f32
      %353 = arith.mulf %339, %339 : vector<8x1xf32>
      %354 = vector.shape_cast %353 : vector<8x1xf32> to vector<1x8x1xf32>
      %cst_169 = arith.constant dense<0.000000e+00> : vector<1xf32>
      %355 = vector.multi_reduction <add>, %354, %cst_169 [1, 2] : vector<1x8x1xf32> to vector<1xf32>
      %356 = vector.shape_cast %355 : vector<1xf32> to vector<1x1x1xf32>
      %357 = vector.extract %356[0, 0, 0] : f32 from vector<1x1x1xf32>
      %cst_170 = arith.constant 6.250000e+02 : f32
      %358 = arith.mulf %cst_170, %357 : f32
      %359 = arith.addf %352, %358 : f32
      %360 = tpu.iota {dimensions = array<i32: 2>} : vector<1x1x4xi32>
      %c0_i32_171 = arith.constant 0 : i32
      %361 = vector.broadcast %c0_i32_171 : i32 to vector<1x1x4xi32>
      %362 = arith.cmpi eq, %360, %361 : vector<1x1x4xi32>
      %cst_172 = arith.constant 0.000000e+00 : f32
      %363 = vector.broadcast %240 : f32 to vector<1x1x4xf32>
      %364 = vector.broadcast %cst_172 : f32 to vector<1x1x4xf32>
      %365 = arith.select %362, %363, %364 : vector<1x1x4xi1>, vector<1x1x4xf32>
      %c1_i32 = arith.constant 1 : i32
      %366 = vector.broadcast %c1_i32 : i32 to vector<1x1x4xi32>
      %367 = arith.cmpi eq, %360, %366 : vector<1x1x4xi32>
      %cst_173 = arith.constant 0.000000e+00 : f32
      %368 = vector.broadcast %248 : f32 to vector<1x1x4xf32>
      %369 = vector.broadcast %cst_173 : f32 to vector<1x1x4xf32>
      %370 = arith.select %367, %368, %369 : vector<1x1x4xi1>, vector<1x1x4xf32>
      %371 = arith.addf %365, %370 : vector<1x1x4xf32>
      %c2_i32 = arith.constant 2 : i32
      %372 = vector.broadcast %c2_i32 : i32 to vector<1x1x4xi32>
      %373 = arith.cmpi eq, %360, %372 : vector<1x1x4xi32>
      %cst_174 = arith.constant 0.000000e+00 : f32
      %374 = vector.broadcast %232 : f32 to vector<1x1x4xf32>
      %375 = vector.broadcast %cst_174 : f32 to vector<1x1x4xf32>
      %376 = arith.select %373, %374, %375 : vector<1x1x4xi1>, vector<1x1x4xf32>
      %377 = arith.addf %371, %376 : vector<1x1x4xf32>
      %c3_i32 = arith.constant 3 : i32
      %378 = vector.broadcast %c3_i32 : i32 to vector<1x1x4xi32>
      %379 = arith.cmpi eq, %360, %378 : vector<1x1x4xi32>
      %cst_175 = arith.constant 0.000000e+00 : f32
      %380 = vector.broadcast %359 : f32 to vector<1x1x4xf32>
      %381 = vector.broadcast %cst_175 : f32 to vector<1x1x4xf32>
      %382 = arith.select %379, %380, %381 : vector<1x1x4xi1>, vector<1x1x4xf32>
      %383 = arith.addf %377, %382 : vector<1x1x4xf32>
      %c0_176 = arith.constant 0 : index
      %c0_177 = arith.constant 0 : index
      %c0_178 = arith.constant 0 : index
      %384 = vector.load %arg13[%c0_176, %c0_177, %c0_178] : memref<1x1x4xf32, #tpu.memory_space<vmem>>, vector<1x1x4xf32>
      tpu.vector_store %arg13[%c0_176, %c0_177, %c0_178], %383 {strides = array<i32>} : memref<1x1x4xf32, #tpu.memory_space<vmem>>, vector<1x1x4xf32>,
    } else {
    }
    return
  }
  func.func @transform_0(%arg0: i32, %arg1: i32) -> (i32, i32, i32) {
    %c0_i32 = arith.constant 0 : i32
    %c0_i32_0 = arith.constant 0 : i32
    return %arg0, %c0_i32, %arg1 : i32, i32, i32
  }
  func.func @transform_1(%arg0: i32, %arg1: i32) -> (i32, i32, i32) {
    %c0_i32 = arith.constant 0 : i32
    %c0_i32_0 = arith.constant 0 : i32
    return %arg0, %c0_i32, %arg1 : i32, i32, i32
  }
  func.func @transform_2(%arg0: i32, %arg1: i32) -> (i32, i32, i32) {
    %c0_i32 = arith.constant 0 : i32
    %c0_i32_0 = arith.constant 0 : i32
    return %arg0, %c0_i32, %arg1 : i32, i32, i32
  }
  func.func @transform_3(%arg0: i32, %arg1: i32) -> (i32, i32) {
    %c0_i32 = arith.constant 0 : i32
    %c0_i32_0 = arith.constant 0 : i32
    %c0_i32_1 = arith.constant 0 : i32
    return %c0_i32, %c0_i32_0 : i32, i32
  }
  func.func @transform_4(%arg0: i32, %arg1: i32) -> (i32, i32, i32) {
    %c0_i32 = arith.constant 0 : i32
    %c0_i32_0 = arith.constant 0 : i32
    %c0_i32_1 = arith.constant 0 : i32
    %c0_i32_2 = arith.constant 0 : i32
    return %c0_i32, %c0_i32_0, %c0_i32_1 : i32, i32, i32
  }
  func.func @transform_5(%arg0: i32, %arg1: i32) -> (i32, i32, i32) {
    %c0_i32 = arith.constant 0 : i32
    %c0_i32_0 = arith.constant 0 : i32
    %c0_i32_1 = arith.constant 0 : i32
    %c0_i32_2 = arith.constant 0 : i32
    return %c0_i32, %c0_i32_0, %c0_i32_1 : i32, i32, i32
  }
  func.func @transform_6(%arg0: i32, %arg1: i32) -> (i32, i32, i32) {
    %c0_i32 = arith.constant 0 : i32
    %c0_i32_0 = arith.constant 0 : i32
    %c0_i32_1 = arith.constant 0 : i32
    %c0_i32_2 = arith.constant 0 : i32
    return %c0_i32, %c0_i32_0, %c0_i32_1 : i32, i32, i32
  }
  func.func @transform_7(%arg0: i32, %arg1: i32) -> (i32, i32, i32) {
    %c0_i32 = arith.constant 0 : i32
    %c0_i32_0 = arith.constant 0 : i32
    %c0_i32_1 = arith.constant 0 : i32
    %c0_i32_2 = arith.constant 0 : i32
    return %c0_i32, %c0_i32_0, %c0_i32_1 : i32, i32, i32
  }
  func.func @transform_8(%arg0: i32, %arg1: i32) -> (i32, i32, i32) {
    %c0_i32 = arith.constant 0 : i32
    %c0_i32_0 = arith.constant 0 : i32
    %c0_i32_1 = arith.constant 0 : i32
    %c0_i32_2 = arith.constant 0 : i32
    return %c0_i32, %c0_i32_0, %c0_i32_1 : i32, i32, i32
  }
  func.func @transform_9(%arg0: i32, %arg1: i32) -> (i32, i32, i32) {
    %c0_i32 = arith.constant 0 : i32
    %c0_i32_0 = arith.constant 0 : i32
    %c0_i32_1 = arith.constant 0 : i32
    %c0_i32_2 = arith.constant 0 : i32
    return %c0_i32, %c0_i32_0, %c0_i32_1 : i32, i32, i32
  }
  func.func @transform_10(%arg0: i32, %arg1: i32) -> (i32, i32, i32) {
    %c0_i32 = arith.constant 0 : i32
    %c0_i32_0 = arith.constant 0 : i32
    %c0_i32_1 = arith.constant 0 : i32
    %c0_i32_2 = arith.constant 0 : i32
    return %c0_i32, %c0_i32_0, %c0_i32_1 : i32, i32, i32
  }
  func.func @transform_11(%arg0: i32, %arg1: i32) -> (i32, i32, i32) {
    %c0_i32 = arith.constant 0 : i32
    %c0_i32_0 = arith.constant 0 : i32
    %c0_i32_1 = arith.constant 0 : i32
    return %arg0, %c0_i32, %c0_i32_0 : i32, i32, i32
  }
}

</mosaic_0001>

<bundles_post_ra>
// kernel: tpu_custom_call.1
= control target key start
LH: loop header
LB: loop body
LE: loop exit
PB: predicated region body
PF: predicated region fallthrough
CT: control target
= control target key end

     0   :  { %s3571_s0 = inlined_call_operand.hbm [shape: f32[2,8,625], index: 0, kind: input, shape index: {}]   ;;  %s3572_s1 = inlined_call_operand.hbm [shape: f32[2,8,625], index: 1, kind: input, shape index: {}]   ;;  %s3573_s2 = inlined_call_operand.vmem [shape: f32[2,2,625], index: 2, kind: input, shape index: {}]   ;;  %s3574_s3 = inlined_call_operand.vmem [shape: f32[2,8], index: 3, kind: input, shape index: {}]   ;;  %s3575_s4 = inlined_call_operand.vmem [shape: f32[2,1,1], index: 4, kind: input, shape index: {}]   ;;  %s3576_s5 = inlined_call_operand.vmem [shape: f32[2,4,8], index: 5, kind: input, shape index: {}]   ;;  %s3577_s6 = inlined_call_operand.vmem [shape: f32[2,4,1], index: 6, kind: input, shape index: {}]   ;;  %s3578_s7 = inlined_call_operand.vmem [shape: f32[2,4,1], index: 7, kind: input, shape index: {}]   ;;  %s3579_s8 = inlined_call_operand.vmem [shape: f32[2,4,1], index: 8, kind: input, shape index: {}]   ;;  %s3580_s9 = inlined_call_operand.vmem [shape: f32[2,8,4], index: 9, kind: input, shape index: {}]   ;;  %s3581_s10 = inlined_call_operand.vmem [shape: f32[2,8,1], index: 10, kind: input, shape index: {}]   ;;  %s3582_s11 = inlined_call_operand.hbm [shape: f32[2,1,4], index: 11, kind: output, shape index: {}]  }
   0x1   :  { %3591 = sst [smem:[#allocation32_spill]] %s3571_s0 }
   0x2   :  { %3592 = sst [smem:[#allocation33_spill]] %s3582_s11 }
   0x3   :  { %16 = vsyncpa [#allocation17], 0 }
   0x4   :  { %18 = vsyncpa [#allocation17 + $0x1], 0 }
   0x5   :  { %19 = vsyncpa [#allocation20], 0 }
   0x6   :  { %21 = vsyncpa [#allocation20 + $0x1], 0 }
   0x7   :  { %22 = vsyncpa [#allocation18], 0 }
   0x8   :  { %24 = vsyncpa [#allocation18 + $0x1], 0  ;;  %s2913_s17 = smov 0   ;;  %s2915_s18 = smov 0  }
   0x9   :  { %s2917_s19 = smov 0   ;;  %s2919_s20 = smov 0  }
   0xa   :  { %s2921_s21 = smov 0   ;;  %s2923_s22 = smov 0  }
   0xb LB: > { %3593 = sst [smem:[#allocation25_spill]] %s2824_s17  ;;  %s2471_s23 = sadd.s32 4294967295, %s2844_s22   ;;  %s2844_s22 = sphi %s2923_s22, %s30_s22   ;;  %s2840_s21 = sphi %s2921_s21, %s3620_s21   ;;  %s2836_s20 = sphi %s2919_s20, %s3619_s20   ;;  %s2832_s19 = sphi %s2917_s19, %s3618_s19   ;;  %s2828_s18 = sphi %s2915_s18, %s3622_s18   ;;  %s2824_s17 = sphi %s2913_s17, %s3621_s17  }
   0xc   : > { %3594 = sst [smem:[#allocation26_spill]] %s2832_s19  ;;  %s2472_s24 = sadd.s32 4294967294, %s2844_s22  }
   0xd   : > { %3595 = sst [smem:[#allocation27_spill]] %s2840_s21  ;;  %s42_s25 = sadd.s32 1, %s2840_s21 }
   0xe   : > { %s51_s26 = sadd.s32 1, %s2832_s19  ;;  %p44_p0 = scmp.ge.s32.totalorder %s42_s25, 2 }
   0xf   : > { %p58_p1 = scmp.ne.s32.totalorder %s2832_s19, %s2828_s18  ;;  %p59_p2 = scmp.eq.s32.totalorder %s2844_s22, 0 }
  0x10   : > { %p64_p3 = scmp.ne.s32.totalorder %s2828_s18, %s2824_s17  ;;  %s3624_s25 = smov (%p44_p0, %s42_s25), 0 }
  0x11   : > { %3596 = sst [smem:[#allocation28_spill]] %s3624_s25  ;;  %p2954_p4 = por %p59_p2, %p58_p1 }
  0x12   : > { %p65_p5 = scmp.eq.s32.totalorder %s2471_s23, 0  ;;  %s46_s28 = ssub.s32 %s2840_s21, %s3624_s25 }
  0x13   : > { %p312_p6 = scmp.eq.s32.totalorder %s2471_s23, 1  ;;  %p49_p7 = scmp.eq.s32.totalorder %s46_s28, 0 }
  0x14   : > { %p2960_p8 = por %p65_p5, %p64_p3  ;;  %p318_p10 = scmp.eq.s32.totalorder %s2472_s24, 1 }
  0x15   : > { %p2964_p9 = por %p312_p6, %p58_p1  ;;  %p2474_p12 = scmp.ge.s32.totalorder %s2844_s22, 2 }
  0x16   : > { %s2969_s12 = scalar_select %p49_p7, %s2832_s19, %s51_s26  }
  0x17   : > { %s3599_s30 = scalar_select %p2964_p9, 1, 0 }
  0x18   : > { %3601 = sst [smem:[#allocation30_spill]] %s2969_s12  ;;  %p2971_p11 = por %p318_p10, %p64_p3 }
  0x19   : > { %3600 = sst [smem:[#allocation29_spill]] %s3599_s30  ;;  %p2570_p13 = scmp.lt.s32.totalorder %s2844_s22, 2 }
  0x1a   : > { %s3602_s13 = scalar_select %p2971_p11, 1, 0 }
  0x1b   : > { %s362_s14 = sand.u32 1, %s2832_s19   ;;  %s2514_s16 = smul.u32 40, %s2840_s21 }
  0x1c   : > { %3603 = sst [smem:[#allocation31_spill]] %s3602_s13  ;;  %s2513_s15 = smul.u32 40, %s362_s14 }
  0x1d   : > { %p2981_p0 = pnand %p2570_p13, %p2954_p4  ;;  %p2477_p1 = scmp.ge.s32.totalorder %s2844_s22, 1 }
  0x1e   : > { %s3605_s0 = sld [smem:[#allocation32_spill]]  ;;  %s366_s25 = scalar_lea.vmem [#allocation16], %s2513_s15 }
  0x1f   : > { %s377_s12 = sshll.u32 %s366_s25, 4  ;;  %s363_s19 = scalar_lea.sflag [#allocation17], %s362_s14  ;;  %s378_s12 = int_to_ptr.vmem [resolvable:$true] %s377_s12 }
  0x20   : > { %p417_p2 = scmp.lt.s32.totalorder %s2844_s22, 3  ;;  %s395_s17 = scalar_lea.hbm %s3572_s1, %s2514_s16 }
  0x21   : > { %s397_s30 = sshll.u32 %s395_s17, 4  ;;  %s388_s11 = scalar_lea.vmem [#allocation19], %s2513_s15  ;;  %s398_s30 = int_to_ptr.hbm [resolvable:$true] %s397_s30 }
  0x22   : > { %p418_p3 = pnand %p2477_p1, %p417_p2  ;;  %s399_s24 = sshll.u32 %s388_s11, 4  ;;  %s400_s24 = int_to_ptr.vmem [resolvable:$true] %s399_s24 }
  0x23   : > { %s385_s26 = scalar_lea.sflag [#allocation20], %s362_s14  ;;  %s2998_s25 = sand.u32 (!%p418_p3), 1, %s2828_s18  }
  0x24   : > { %s373_s28 = scalar_lea.hbm %s3605_s0, %s2514_s16  ;;  %421 = sbr.rel (%p418_p3) target bundleno = 2304 (0x900), region = 64 }
  0x25   : > { %s375_s13 = sshll.u32 %s373_s28, 4  ;;  %s376_s13 = int_to_ptr.hbm [resolvable:$true] %s375_s13 }
  0x26   : > { %2562 = dma.hbm_to_vmem [thread:$0]  (!%p2981_p0), %s376_s13, 640, %s378_s12, %s363_s19  }
  0x27   : > { %2565 = dma.hbm_to_vmem [thread:$0]  (!%p2981_p0), %s398_s30, 640, %s400_s24, %s385_s26  }
  0x28   : > { %s2517_s19 = smul.u32 (!%p418_p3), 40, %s2998_s25  ;;  %s424_s12 = scalar_lea.sflag (!%p418_p3), [#allocation17], %s2998_s25 }
  0x2a   : > { %s3002_s21 = scalar_lea.vmem [#allocation16], %s2517_s19 }
  0x2b   : > { %2811 = dma.done.wait (%p2960_p8), %s424_s12, 640  }
  0x2c   : > { %2813 = vsyncadd (%p2960_p8), %s424_s12, 4294966656  ;;  %s434_s11 = scalar_lea.sflag [#allocation20], %s2998_s25  ;;  %s437_s17 = scalar_lea.vmem [#allocation19], %s2517_s19 }
  0x2d   : > { %2815 = dma.done.wait (%p2960_p8), %s434_s11, 640  }
  0x2e   : > { %2817 = vsyncadd (%p2960_p8), %s434_s11, 4294966656  ;;  %v3013_v0 = vld [vmem:[%s437_s17] sm:$0xff]  ;;  %v3015_v1 = vld [vmem:[%s437_s17 + $0x8] sm:$0xff]  ;;  %vm579_vm0 = vcmask 64512   ;;  %v2846_v11 = vmov 1.0   ;;  %v533_v13 = vlaneseq  ;;  %vm812_vm1 = vcmask 1040384  }
  0x2f   : > { %v3017_v2 = vld [vmem:[%s437_s17 + $0x10] sm:$0xff]  ;;  %v552_v3 = vand.u32 2147483647, %v3013_v0  ;;  %v553_v4 = vand.u32 2147483647, %v3015_v1  ;;  %v3022_v6 = vld [vmem:[%s437_s17 + $0x18] sm:$0xff] }
  0x30   : > { %v554_v5 = vand.u32 2147483647, %v3017_v2  ;;  %v3024_v7 = vld [vmem:[%s437_s17 + $0x20] sm:$0xff]  ;;  %v555_v9 = vand.u32 2147483647, %v3022_v6  ;;  %v3044_v15 = vand.u32 127, %v533_v13 }
  0x31   : > { %598 = vmatpush.msra.mxu0 %v552_v3  ;;  %v558_v8 = vadd.f32 %v553_v4, %v552_v3  ;;  %618 = vmatpush.msra.mxu1 %v553_v4  ;;  %v556_v10 = vand.u32 2147483647, %v3024_v7  ;;  %vm859_vm3 = vcmask 917504   ;;  %vm814_vm4 = vcmask 1041408   ;;  %v3101_v58 = vld [vmem:[%s3002_s21 + $0x20] sm:$0xff]  ;;  %v3108_v61 = vld [vmem:[%s3002_s21 + $0x8] sm:$0xff] }
  0x32   : > { %638 = vmatpush.msra.mxu2 %v554_v5  ;;  %2479 = vmatmul.msk.f32.vlgmr.msra.gmra.mxu0 %vm579_vm0, %v2846_v11  ;;  %v3047_v17 = vadd.s32 512, %v3044_v15  ;;  %vm816_vm5 = vcmask 1043459   ;;  %vm818_vm6 = vcmask 1042432   ;;  %vm3078_vm7 = vcmp.lt.s32.totalorder %v533_v13, 625  ;;  %v3104_v59 = vld [vmem:[%s3002_s21] sm:$0xff]  ;;  %v3111_v62 = vld [vmem:[%s3002_s21 + $0x10] sm:$0xff] }
  0x33   : > { %v3030_v12 = vadd.f32 %v558_v8, %v554_v5  ;;  %2480 = vmatmul.msk.f32.vlgmr.msra.gmra.mxu1 %vm579_vm0, %v2846_v11  ;;  %2481 = vmatmul.msk.f32.vlgmr.msra.gmra.mxu2 %vm579_vm0, %v2846_v11  ;;  %vm515_vm8 = vcmask 0   ;;  %v2847_v45 = vmov -1e+30   ;;  %v2848_v53 = vmov 0   ;;  %v3117_v5 = vld [vmem:[%s3002_s21 + $0x18] sm:$0xff]  ;;  %p493_p4 = scmp.lt.s32.totalorder %s2836_s20, 1 }
  0x34   : > { %658 = vmatpush.msra.mxu3 %v555_v9  ;;  %678 = vmatpush.msrb.mxu0 %v556_v10  ;;  %vm546_vm2 = vcmp.lt.s32.totalorder %v3047_v17, 625  ;;  %516 = vst.msk [vmem:[#allocation11] sm:$0x1] %vm515_vm8, %v2847_v45  ;;  %v547_v60 = vand.u32 2147483647, %v3104_v59  ;;  %vm561_vm9 = vcmask 924672  }
  0x35   : > { %2482 = vmatmul.msk.f32.vlgmr.msra.gmra.mxu3 %vm579_vm0, %v2846_v11  ;;  %517 = vst.msk [vmem:[#allocation12] sm:$0x1] %vm515_vm8, %v2847_v45  ;;  %2627 = vset.pattern.permute.xlu0 %v2848_v53  ;;  %v551_v63 = vand.u32 2147483647, %v3101_v58  ;;  %v548_v3 = vand.u32 2147483647, %v3108_v61 }
  0x36   : > { %518 = vst.msk [vmem:[#allocation14] sm:$0x1] %vm515_vm8, %v2847_v45  ;;  %2628 = vset.pattern.permute.xlu1 %v2848_v53  ;;  %2629 = vset.pattern.permute.xlu2 %v2848_v53  ;;  %v549_v4 = vand.u32 2147483647, %v3111_v62  ;;  %v550_v8 = vand.u32 2147483647, %v3117_v5 }
  0x37   : > { %708 = vmatpush.msrb.mxu1 %v547_v60  ;;  %v570_v13 = vadd.f32 %v548_v3, %v547_v60  ;;  %728 = vmatpush.msrb.mxu2 %v548_v3  ;;  %s494_s30 = scalar_select %p493_p4, %s2836_s20, 1  ;;  %vm506_vm10 = vcmask 7168  }
  0x38   : > { %748 = vmatpush.msrb.mxu3 %v549_v4  ;;  %768 = vmatpush.msra.mxu0 %v550_v8  ;;  %s2850_s17 = smov 126  }
  0x39   : > { %788 = vmatpush.msra.mxu1 %v551_v63  ;;  %s2518_s13 = smul.u32 10, %s494_s30 }
  0x3a   : > { %2483 = vmatmul.msk.f32.vlgmr.msrb.gmra.mxu0 %vm579_vm0, %v2846_v11 }
  0x3b   : > { %v3090_v54 = vld [vmem:[#allocation11] sm:$0x1]  ;;  %2484 = vmatmul.msk.f32.vlgmr.msrb.gmra.mxu1 %vm579_vm0, %v2846_v11  ;;  %2485 = vmatmul.msk.f32.vlgmr.msrb.gmra.mxu2 %vm579_vm0, %v2846_v11  ;;  %s500_s16 = scalar_lea.vmem %s3573_s2, %s2518_s13 }
  0x3d   : > { %2486 = vmatmul.msk.f32.vlgmr.msrb.gmra.mxu3 %vm579_vm0, %v2846_v11 }
  0x42   : > { %2487 = vmatmul.msk.f32.vlgmr.msra.gmra.mxu0 %vm579_vm0, %v2846_v11 }
  0x43   : > { %2488 = vmatmul.msk.f32.vlgmr.msra.gmra.mxu1 %vm579_vm0, %v2846_v11 }
  0xaf   : > { %v600_v14 = vpop.f32.mrf.mxu0 }
  0xb0   : > { %v620_v16 = vpop.f32.mrf.mxu1  ;;  %v3051_v19 = vmul.f32 0.25, %v600_v14  ;;  %v3124_v14 = vadd.f32 %v570_v13, %v549_v4 }
  0xb1   : > { %v3049_v18 = vmul.f32 0.25, %v620_v16 }
  0xb2   : > { %v855_v29 = vsel %vm812_vm1, %v3051_v19, -inf }
  0xb3   : > { %v808_v23 = vrot.slane %v3049_v18, 7  ;;  %v856_v34 = vsel %vm812_vm1, %v3049_v18, -inf }
  0xb5   : > { %v813_v35 = vsel %vm812_vm1, %v3051_v19, %v808_v23 }
  0xb6   : > { %v640_v20 = vpop.f32.mrf.mxu2 }
  0xb7   : > { %v3053_v21 = vmul.f32 0.25, %v640_v20  ;;  %v680_v22 = vpop.f32.mrf.mxu0 }
  0xb8   : > { %v687_v24 = vmul.f32 0.25, %v680_v22  ;;  %v660_v25 = vpop.f32.mrf.mxu3 }
  0xb9   : > { %v809_v26 = vrot.slane %v3053_v21, 6  ;;  %v3058_v27 = vmul.f32 0.25, %v660_v25  ;;  %v857_v30 = vsel %vm812_vm1, %v3053_v21, -inf }
  0xba   : > { %v3062_v28 = vsel %vm546_vm2, %v687_v24, -1e+30 }
  0xbb   : > { %v811_v31 = vrot.slane %v3062_v28, 4  ;;  %v860_v32 = vsel %vm859_vm3, %v3062_v28, -inf  ;;  %v810_v33 = vrot.slane %v3058_v27, 5  ;;  %v858_v36 = vsel %vm812_vm1, %v3058_v27, -inf }
  0xbc   : > { %v861_v37 = vmax.f32 %v855_v29, %v860_v32  ;;  %v815_v39 = vsel %vm814_vm4, %v813_v35, %v809_v26  ;;  %v863_v40 = vmax.f32 %v857_v30, %v858_v36  ;;  %v845_v36 = vsub.f32 %v3108_v61, %v3015_v1 }
  0xbd   : > { %v817_v41 = vsel %vm816_vm5, %v810_v33, %v811_v31  ;;  %v531_v33 = vld [vmem:[%s500_s16] sm:$0xff] }
  0xbe   : > { %v862_v42 = vmax.f32 %v861_v37, %v856_v34  ;;  %v819_v43 = vsel %vm818_vm6, %v815_v39, %v817_v41  ;;  %v902_v34 = vperm.slane %v531_v33, 0  ;;  %v919_v35 = vperm.slane %v531_v33, 5 }
  0xbf   : > { %827 = vst.msk [vmem:[#allocation2] sm:$0x1f] %vm3078_vm7, %v819_v43  ;;  %v903_v39 = vperm.slane %v531_v33, 2  ;;  %v904_v43 = vperm.slane %v531_v33, 4  ;;  %v850_v60 = vmul.f32 %v845_v36, %v845_v36  ;;  %v848_v36 = vsub.f32 %v3101_v58, %v3024_v7 }
  0xc0   : > { %v864_v44 = vmax.f32 %v862_v42, %v863_v40  ;;  %v920_v40 = vperm.slane %v531_v33, 7 }
  0xc2   : > { %865 = vmax.xlane.f32.xlu0 %v864_v44  ;;  %v905_v44 = vperm.slane %v531_v33, 6 }
 0x135   : > { %v866_v46 = vpop.xlane.xlu0 %865 }
 0x136   : > { %v867_v47 = vrot.slane %v866_v46, 4 }
 0x138   : > { %v868_v48 = vmax.f32 %v866_v46, %v867_v47 }
 0x13a   : > { %v869_v49 = vrot.slane %v868_v48, 2 }
 0x13c   : > { %v870_v50 = vmax.f32 %v868_v48, %v869_v49 }
 0x13e   : > { %v871_v51 = vrot.slane %v870_v50, 1 }
 0x140   : > { %v872_v52 = vmax.f32 %v870_v50, %v871_v51  ;;  %v846_v50 = vsub.f32 %v3111_v62, %v3017_v2 }
 0x142   : > { %2519 = vpush %v872_v52 }
 0x173   : > { %s2520_s29 = spop %2519 }
 0x174   : > { %v874_v55 = vstv %s2520_s29  ;;  %s2851_s29 = smov 127  }
 0x175   : > { %v3093_v56 = vmax.f32 %v3090_v54, %v874_v55 }
 0x177   : > { %v876_v57 = vsub.f32 %v3090_v54, %v3093_v56  ;;  %1082 = vst.msk [vmem:[#allocation11] sm:$0x1] %vm515_vm8, %v3093_v56  ;;  %881 = vperm.xlu0 %2627, %v3093_v56  }
 0x1e9   : > { %v882_v16 = vpop.permute.xlu0 %881 }
 0x1ea   : > { %v884_v20 = vperm.slane %v882_v16, 0 }
 0x1ec   : > { %v885_v22 = vsub.f32 %v3051_v19, %v884_v20  ;;  %v886_v23 = vsub.f32 %v3049_v18, %v884_v20  ;;  %v887_v24 = vsub.f32 %v3053_v21, %v884_v20  ;;  %v888_v25 = vsub.f32 %v3058_v27, %v884_v20  ;;  %v1084_v18 = vld [vmem:[%s3575_s4] sm:$0x1]  ;;  %v532_v27 = vld [vmem:[%s500_s16 + $0x8] sm:$0x3] }
 0x1ed   : > { %v889_v26 = vsub.f32 %v3062_v28, %v884_v20  ;;  %1088 = vperm.xlu1 %2628, %v1084_v18   ;;  %v917_v19 = vperm.slane %v531_v33, 1  ;;  %v918_v21 = vperm.slane %v531_v33, 3  ;;  %v844_v28 = vsub.f32 %v3104_v59, %v3013_v0 }
 0x1ee   : > { %v890_v11 = vmul.f32 1.442695, %v885_v22  ;;  %v892_v29 = vmul.f32 1.442695, %v886_v23  ;;  %v894_v30 = vmul.f32 1.442695, %v887_v24  ;;  %v847_v20 = vsub.f32 %v3117_v5, %v3022_v6 }
 0x1ef   : > { %v896_v31 = vmul.f32 1.442695, %v888_v25  ;;  %v898_v32 = vmul.f32 1.442695, %v889_v26  ;;  %v921_v45 = vperm.slane %v532_v27, 1  ;;  %v906_v48 = vperm.slane %v532_v27, 0 }
 0x1f0   : > { %2632 = vpow2.f32 %v890_v11  ;;  %v849_v49 = vmul.f32 %v844_v28, %v844_v28  ;;  %v851_v27 = vmul.f32 %v846_v50, %v846_v50 }
 0x1f1   : > { %2634 = vpow2.f32 %v892_v29 }
 0x1f2   : > { %2636 = vpow2.f32 %v894_v30 }
 0x1f3   : > { %2638 = vpow2.f32 %v896_v31 }
 0x1f4   : > { %2640 = vpow2.f32 %v898_v32 }
 0x1f6   : > { %v2633_v37 = vpop.eup %2632 }
 0x1f7   : > { %v2635_v41 = vpop.eup %2634  ;;  %v927_v42 = vmul.f32 %v2633_v37, %v917_v19  ;;  %v912_v52 = vmul.f32 %v2633_v37, %v902_v34 }
 0x1f8   : > { %v2637_v46 = vpop.eup %2636  ;;  %v928_v47 = vmul.f32 %v2635_v41, %v918_v21  ;;  %v913_v4 = vmul.f32 %v2635_v41, %v903_v39  ;;  %v853_v39 = vmul.f32 %v848_v36, %v848_v36  ;;  %v710_v41 = vpop.f32.mrf.mxu1 }
 0x1f9   : > { %v2639_v51 = vpop.eup %2638  ;;  %v937_v53 = vrot.slane %v927_v42, 7  ;;  %v929_v55 = vmul.f32 %v2637_v46, %v919_v35  ;;  %v914_v23 = vmul.f32 %v2637_v46, %v904_v43  ;;  %v852_v35 = vmul.f32 %v847_v20, %v847_v20  ;;  %v770_v42 = vpop.f32.mrf.mxu0 }
 0x1fa   : > { %v2641_v3 = vpop.eup %2640  ;;  %v938_v13 = vrot.slane %v928_v47, 7  ;;  %v930_v16 = vmul.f32 %v2639_v51, %v920_v40  ;;  %v915_v29 = vmul.f32 %v2639_v51, %v905_v44  ;;  %v3178_v40 = vld [vmem:[%s3574_s3] sm:$0x3]  ;;  %v796_v43 = vmul.f32 0.25, %v770_v42  ;;  %v730_v44 = vpop.f32.mrf.mxu2 }
 0x1fb   : > { %v947_v22 = vsel %vm812_vm1, %v912_v52, %v937_v53  ;;  %v939_v24 = vrot.slane %v929_v55, 7  ;;  %v931_v25 = vmul.f32 %v2641_v3, %v921_v45  ;;  %v916_v33 = vmul.f32 %v2641_v3, %v906_v48  ;;  %v750_v48 = vpop.f32.mrf.mxu3 }
 0x1fc   : > { %v952_v26 = vsel %vm814_vm4, %v947_v22, 1.0  ;;  %v948_v11 = vsel %vm812_vm1, %v913_v4, %v938_v13  ;;  %v940_v30 = vrot.slane %v930_v16, 7  ;;  %v793_v45 = vmul.f32 0.25, %v710_v41 }
 0x1fd   : > { %978 = vmatpush.xpose.msra.mxu2 %v952_v26  ;;  %v953_v31 = vsel %vm814_vm4, %v948_v11, 1.0  ;;  %v949_v32 = vsel %vm812_vm1, %v914_v23, %v939_v24  ;;  %v941_v18 = vrot.slane %v931_v25, 7  ;;  %v794_v46 = vmul.f32 0.25, %v730_v44 }
 0x1fe   : > { %998 = vmatpush.xpose.msra.mxu3 %v953_v31  ;;  %v954_v19 = vsel %vm814_vm4, %v949_v32, 1.0  ;;  %v950_v21 = vsel %vm812_vm1, %v915_v29, %v940_v30  ;;  %v795_v50 = vmul.f32 0.25, %v750_v48  ;;  %v835_v52 = vrot.slane %v796_v43, 5 }
 0x1ff   : > { %1018 = vmatpush.xpose.msrb.mxu0 %v954_v19  ;;  %v955_v28 = vsel %vm814_vm4, %v950_v21, 1.0  ;;  %v951_v34 = vsel %vm812_vm1, %v916_v33, %v941_v18  ;;  %v833_v51 = vrot.slane %v794_v46, 7 }
 0x200   : > { %1038 = vmatpush.xpose.msrb.mxu1 %v955_v28  ;;  %v956_v37 = vsel %vm814_vm4, %v951_v34, 1.0  ;;  %979 = vmatmul.f32.vlgmr.msra.gmra.mxu2 %v849_v49  ;;  %v790_v47 = vpop.f32.mrf.mxu1  ;;  %v834_v55 = vrot.slane %v795_v50, 6 }
 0x201   : > { %2489 = vmatpush.xpose.msk.msrb.mxu2 %vm561_vm9, %v956_v37  ;;  %999 = vmatmul.f32.vlgmr.msra.gmra.mxu3 %v850_v60  ;;  %v797_v49 = vmul.f32 0.25, %v790_v47  ;;  %v837_v60 = vsel %vm812_vm1, %v793_v45, %v833_v51 }
 0x202   : > { %1110 = vmatpush.msrb.mxu3 %v3104_v59  ;;  %1019 = vmatmul.f32.vlgmr.msrb.gmra.mxu0 %v851_v27  ;;  %v838_v4 = vsel %vm814_vm4, %v837_v60, %v834_v55 }
 0x203   : > { %1039 = vmatmul.f32.vlgmr.msrb.gmra.mxu1 %v852_v35  ;;  %1130 = vmatpush.msra.mxu0 %v3108_v61  ;;  %v802_v53 = vsel %vm546_vm2, %v797_v49, -1e+30 }
 0x204   : > { %1190 = vmatpush.msra.mxu3 %v3101_v58  ;;  %1150 = vmatpush.msra.mxu1 %v3111_v62  ;;  %v836_v3 = vrot.slane %v802_v53, 4 }
 0x205   : > { %1170 = vmatpush.msra.mxu2 %v3117_v5 }
 0x206   : > { %v839_v13 = vsel %vm816_vm5, %v835_v52, %v836_v3  ;;  %v2849_v3 = vmov 0.0  }
 0x207   : > { %v840_v16 = vsel %vm818_vm6, %v838_v4, %v839_v13  ;;  %519 = vst.msk [vmem:[#allocation13] sm:$0x1] %vm515_vm8, %v2849_v3  ;;  %v3224_v4 = vld [vmem:[#allocation12] sm:$0x1]  ;;  %vm2074_vm6 = vcmask 3072  }
 0x208   : > { %2490 = vmatmul.msk.f32.vlgmr.msrb.gmra.mxu2 %vm561_vm9, %v853_v39  ;;  %843 = vst.msk [vmem:[#allocation3] sm:$0x1f] %vm3078_vm7, %v840_v16 }
 0x209   : > { %2491 = vmatmul.msk.f32.vlgmr.msrb.gmra.mxu3 %vm579_vm0, %v3178_v40  ;;  %520 = vst.msk [vmem:[#allocation15] sm:$0x1] %vm515_vm8, %v2849_v3 }
 0x20a   : > { %2492 = vmatmul.msk.f32.vlgmr.msra.gmra.mxu0 %vm579_vm0, %v3178_v40  ;;  %512 = vst.msk [vmem:[#allocation8] sm:$0xff] %vm506_vm10, %v2849_v3 }
 0x20b   : > { %2493 = vmatmul.msk.f32.vlgmr.msra.gmra.mxu1 %vm579_vm0, %v3178_v40  ;;  %507 = vst.msk [vmem:[#allocation4] sm:$0xff] %vm506_vm10, %v2849_v3 }
 0x20c   : > { %508 = vst.msk [vmem:[#allocation5] sm:$0xff] %vm506_vm10, %v2849_v3 }
 0x20d   : > { %511 = vst.msk [vmem:[#allocation7] sm:$0xff] %vm506_vm10, %v2849_v3 }
 0x20e   : > { %513 = vst.msk [vmem:[#allocation9] sm:$0xff] %vm506_vm10, %v2849_v3 }
 0x20f   : > { %514 = vst.msk [vmem:[#allocation10] sm:$0xff] %vm506_vm10, %v2849_v3 }
 0x210   : > { %2494 = vmatmul.msk.f32.vlgmr.msra.gmra.mxu2 %vm579_vm0, %v3178_v40 }
 0x211   : > { %2495 = vmatmul.msk.f32.vlgmr.msra.gmra.mxu3 %vm579_vm0, %v3178_v40 }
 0x25f   : > { %v1089_v32 = vpop.permute.xlu1 %1088 }
 0x260   : > { %v1091_v33 = vperm.slane %v1089_v32, 0 }
 0x27f   : > { %v1020_v23 = vpop.f32.mrf.mxu0 }
 0x280   : > { %v1040_v25 = vpop.f32.mrf.mxu1 }
 0x283   : > { %v980_v20 = vpop.f32.mrf.mxu2 }
 0x284   : > { %v1000_v22 = vpop.f32.mrf.mxu3 }
 0x285   : > { %v1001_v24 = vadd.f32 %v1000_v22, %v980_v20  ;;  %v1085_v22 = vld [vmem:[%s3575_s4 + $0x1] sm:$0x1] }
 0x287   : > { %v1021_v26 = vadd.f32 %v1020_v23, %v1001_v24  ;;  %v1132_v19 = vpop.f32.mrf.mxu0 }
 0x288   : > { %v1152_v18 = vpop.f32.mrf.mxu1  ;;  %v1133_v36 = vadd.f32 %v1132_v19, %v1091_v33 }
 0x289   : > { %v1041_v11 = vadd.f32 %v1040_v25, %v1021_v26  ;;  %v1153_v28 = vadd.f32 %v1152_v18, %v1091_v33 }
 0x28a   : > { %v1202_v45 = vsel %vm812_vm1, %v1133_v36, -inf }
 0x28b   : > { %v1060_v29 = vpop.f32.mrf.mxu2  ;;  %v1203_v41 = vsel %vm812_vm1, %v1153_v28, -inf }
 0x28c   : > { %v3199_v30 = vadd.f32 %v1060_v29, %v1041_v11  ;;  %v1112_v31 = vpop.f32.mrf.mxu3 }
 0x28d   : > { %v1113_v27 = vadd.f32 %v1112_v31, %v1091_v33 }
 0x28f   : > { %v1201_v39 = vsel %vm812_vm1, %v1113_v27, -inf }
 0x293   : > { %v1172_v21 = vpop.f32.mrf.mxu2 }
 0x294   : > { %v1173_v38 = vadd.f32 %v1172_v21, %v1091_v33  ;;  %v1192_v34 = vpop.f32.mrf.mxu3 }
 0x295   : > { %v1193_v35 = vadd.f32 %v1192_v34, %v1091_v33 }
 0x296   : > { %v1204_v42 = vsel %vm812_vm1, %v1173_v38, -inf }
 0x297   : > { %v1199_v37 = vsel %vm546_vm2, %v1193_v35, -1e+30  ;;  %v1208_v47 = vmax.f32 %v1203_v41, %v1204_v42 }
 0x298   : > { %v1205_v43 = vsel %vm859_vm3, %v1199_v37, -inf }
 0x299   : > { %v1206_v44 = vmax.f32 %v1201_v39, %v1205_v43 }
 0x29b   : > { %v1207_v46 = vmax.f32 %v1206_v44, %v1202_v45 }
 0x29d   : > { %v1209_v48 = vmax.f32 %v1207_v46, %v1208_v47 }
 0x29f   : > { %1210 = vmax.xlane.f32.xlu1 %v1209_v48 }
 0x312   : > { %v1211_v49 = vpop.xlane.xlu1 %1210 }
 0x313   : > { %v1212_v50 = vrot.slane %v1211_v49, 4 }
 0x315   : > { %v1213_v51 = vmax.f32 %v1211_v49, %v1212_v50 }
 0x317   : > { %v1214_v52 = vrot.slane %v1213_v51, 2 }
 0x319   : > { %v1215_v53 = vmax.f32 %v1213_v51, %v1214_v52 }
 0x31b   : > { %v1216_v55 = vrot.slane %v1215_v53, 1 }
 0x31d   : > { %v1217_v60 = vmax.f32 %v1215_v53, %v1216_v55 }
 0x31f   : > { %2521 = vpush %v1217_v60 }
 0x350   : > { %s2522_s26 = spop %2521 }
 0x351   : > { %v1219_v13 = vstv %s2522_s26 }
 0x352   : > { %v3227_v16 = vmax.f32 %v3224_v4, %v1219_v13 }
 0x354   : > { %v1221_v20 = vsub.f32 %v3224_v4, %v3227_v16  ;;  %1386 = vst.msk [vmem:[#allocation12] sm:$0x1] %vm515_vm8, %v3227_v16  ;;  %1226 = vperm.xlu2 %2629, %v3227_v16   ;;  %v1379_v16 = vld [vmem:[#allocation8] sm:$0xff] }
 0x35c   : > { %1389 = vperm.xlu2 %2629, %v1085_v22  }
 0x3ae   : > { %v1227_v23 = vpop.permute.xlu2 %1226 }
 0x3af   : > { %v1229_v24 = vperm.slane %v1227_v23, 0 }
 0x3b1   : > { %v1234_v25 = vsub.f32 %v1199_v37, %v1229_v24  ;;  %v1230_v26 = vsub.f32 %v1113_v27, %v1229_v24  ;;  %v1231_v11 = vsub.f32 %v1133_v36, %v1229_v24  ;;  %v1232_v29 = vsub.f32 %v1153_v28, %v1229_v24 }
 0x3b2   : > { %v1233_v31 = vsub.f32 %v1173_v38, %v1229_v24 }
 0x3b3   : > { %v1235_v32 = vmul.f32 1.442695, %v1230_v26  ;;  %v1237_v33 = vmul.f32 1.442695, %v1231_v11  ;;  %v1239_v18 = vmul.f32 1.442695, %v1232_v29 }
 0x3b4   : > { %v1241_v19 = vmul.f32 1.442695, %v1233_v31  ;;  %v1243_v21 = vmul.f32 1.442695, %v1234_v25 }
 0x3b5   : > { %2642 = vpow2.f32 %v1235_v32 }
 0x3b6   : > { %2644 = vpow2.f32 %v1237_v33 }
 0x3b7   : > { %2646 = vpow2.f32 %v1239_v18 }
 0x3b8   : > { %2648 = vpow2.f32 %v1241_v19 }
 0x3b9   : > { %2650 = vpow2.f32 %v1243_v21 }
 0x3bb   : > { %v2643_v34 = vpop.eup %2642 }
 0x3bc   : > { %v2645_v35 = vpop.eup %2644  ;;  %v1268_v39 = vsel %vm812_vm1, %v2643_v34, 1.0  ;;  %v1247_v37 = vsel %vm812_vm1, %v2643_v34, 0.0 }
 0x3bd   : > { %v2647_v27 = vpop.eup %2646  ;;  %1294 = vmatpush.xpose.msrb.mxu0 %v1268_v39  ;;  %v1269_v28 = vsel %vm812_vm1, %v2645_v35, 1.0  ;;  %v1248_v38 = vsel %vm812_vm1, %v2645_v35, 0.0 }
 0x3be   : > { %v2649_v36 = vpop.eup %2648  ;;  %1314 = vmatpush.xpose.msrb.mxu1 %v1269_v28  ;;  %v1270_v41 = vsel %vm812_vm1, %v2647_v27, 1.0  ;;  %v1249_v42 = vadd.f32 %v1248_v38, %v1247_v37  ;;  %v1250_v45 = vsel %vm812_vm1, %v2647_v27, 0.0 }
 0x3bf   : > { %v2651_v43 = vpop.eup %2650  ;;  %1334 = vmatpush.xpose.msrb.mxu2 %v1270_v41  ;;  %v1271_v44 = vsel %vm812_vm1, %v2649_v36, 1.0  ;;  %v1252_v48 = vsel %vm812_vm1, %v2649_v36, 0.0 }
 0x3c0   : > { %1354 = vmatpush.xpose.msrb.mxu3 %v1271_v44  ;;  %v1272_v46 = vsel %vm812_vm1, %v2651_v43, 1.0  ;;  %1295 = vmatmul.f32.vlgmr.msrb.gmra.mxu0 %v3104_v59  ;;  %v1251_v47 = vadd.f32 %v1250_v45, %v1249_v42  ;;  %v1254_v50 = vsel %vm859_vm3, %v2651_v43, 0.0  ;;  %v1393_v59 = vrot.slane %v3178_v40, 1 }
 0x3c1   : > { %2496 = vmatpush.xpose.msk.msra.mxu0 %vm561_vm9, %v1272_v46  ;;  %1315 = vmatmul.f32.vlgmr.msrb.gmra.mxu1 %v3108_v61  ;;  %v1390_v61 = vpop.permute.xlu2 %1389 }
 0x3c2   : > { %1411 = vmatpush.msra.mxu1 %v3013_v0  ;;  %1335 = vmatmul.f32.vlgmr.msrb.gmra.mxu2 %v3111_v62  ;;  %v1253_v49 = vadd.f32 %v1252_v48, %v1251_v47  ;;  %v1222_v62 = vmul.f32 1.442695, %v1221_v20  ;;  %v1392_v21 = vperm.slane %v1390_v61, 0 }
 0x3c3   : > { %1355 = vmatmul.f32.vlgmr.msrb.gmra.mxu3 %v3117_v5  ;;  %1431 = vmatpush.msra.mxu2 %v3015_v1 }
 0x3c4   : > { %1451 = vmatpush.msra.mxu3 %v3017_v2  ;;  %v1255_v51 = vadd.f32 %v1254_v50, %v1253_v49  ;;  %1491 = vmatpush.msrb.mxu1 %v3024_v7  ;;  %2652 = vpow2.f32 %v1222_v62 }
 0x3c5   : > { %1471 = vmatpush.msrb.mxu0 %v3022_v6 }
 0x3c6   : > { %1256 = vadd.xlane.f32.xlu2 %v1255_v51 }
 0x3c8   : > { %2497 = vmatmul.msk.f32.vlgmr.msra.gmra.mxu0 %vm561_vm9, %v3101_v58 }
 0x3c9   : > { %2498 = vmatmul.msk.f32.vlgmr.msra.gmra.mxu1 %vm579_vm0, %v1393_v59 }
 0x3ca   : > { %2499 = vmatmul.msk.f32.vlgmr.msra.gmra.mxu2 %vm579_vm0, %v1393_v59  ;;  %v2653_v24 = vpop.eup %2652 }
 0x3cb   : > { %2500 = vmatmul.msk.f32.vlgmr.msra.gmra.mxu3 %vm579_vm0, %v1393_v59  ;;  %v1381_v33 = vperm.slane %v2653_v24, 0 }
 0x3cd   : > { %v1383_v19 = vmul.f32 %v1381_v33, %v1379_v16 }
 0x3d0   : > { %2501 = vmatmul.msk.f32.vlgmr.msrb.gmra.mxu0 %vm579_vm0, %v1393_v59 }
 0x3d1   : > { %2502 = vmatmul.msk.f32.vlgmr.msrb.gmra.mxu1 %vm579_vm0, %v1393_v59  ;;  %v1245_v59 = vld [vmem:[#allocation13] sm:$0x1] }
 0x3d2   : > { %v1246_v61 = vmul.f32 %v2653_v24, %v1245_v59 }
 0x439   : > { %v1257_v40 = vpop.xlane.xlu2 %1256 }
 0x43a   : > { %v1258_v52 = vrot.slane %v1257_v40, 4 }
 0x43c   : > { %v1259_v53 = vadd.f32 %v1258_v52, %v1257_v40 }
 0x43d   : > { %v1296_v55 = vpop.f32.mrf.mxu0 }
 0x43e   : > { %v1260_v60 = vrot.slane %v1259_v53, 2  ;;  %v1316_v13 = vpop.f32.mrf.mxu1 }
 0x43f   : > { %v1317_v25 = vadd.f32 %v1316_v13, %v1296_v55 }
 0x440   : > { %v1261_v22 = vadd.f32 %v1260_v60, %v1259_v53 }
 0x442   : > { %v1262_v23 = vrot.slane %v1261_v22, 1 }
 0x444   : > { %v1263_v26 = vadd.f32 %v1262_v23, %v1261_v22 }
 0x445   : > { %v1336_v11 = vpop.f32.mrf.mxu2  ;;  %v1376_v29 = vpop.f32.mrf.mxu0 }
 0x446   : > { %v1337_v31 = vadd.f32 %v1336_v11, %v1317_v25  ;;  %v1356_v32 = vpop.f32.mrf.mxu3  ;;  %2523 = vpush %v1263_v26  ;;  %v1413_v4 = vpop.f32.mrf.mxu1  ;;  %v3295_v25 = vld [vmem:[#allocation14] sm:$0x1] }
 0x447   : > { %v3272_v37 = vadd.f32 %v1413_v4, %v1392_v21 }
 0x448   : > { %v1357_v20 = vadd.f32 %v1356_v32, %v1337_v31 }
 0x449   : > { %v1502_v44 = vsel %vm812_vm1, %v3272_v37, -inf }
 0x44a   : > { %v3268_v18 = vadd.f32 %v1376_v29, %v1357_v20  ;;  %v3305_v29 = vld [vmem:[#allocation3] sm:$0x1f] }
 0x44b   : > { %v1834_v31 = vperm.slane %v3305_v29, 0  ;;  %v1838_v32 = vperm.slane %v3305_v29, 4  ;;  %v1835_v33 = vperm.slane %v3305_v29, 1  ;;  %v1836_v4 = vperm.slane %v3305_v29, 2 }
 0x44c   : > { %v1384_v34 = vadd.f32 %v1383_v19, %v3268_v18  ;;  %v1837_v16 = vperm.slane %v3305_v29, 3 }
 0x44d   : > { %v1433_v35 = vpop.f32.mrf.mxu2  ;;  %v1473_v39 = vpop.f32.mrf.mxu0  ;;  %v1844_v20 = vsel %vm812_vm1, %v1834_v31, -inf  ;;  %v1848_v19 = vsel %vm859_vm3, %v1838_v32, -inf }
 0x44e   : > { %1385 = vst.msk [vmem:[#allocation8] sm:$0xff] %vm506_vm10, %v1384_v34  ;;  %v1453_v27 = vpop.f32.mrf.mxu3  ;;  %v3274_v28 = vadd.f32 %v1473_v39, %v1392_v21  ;;  %v1493_v38 = vpop.f32.mrf.mxu1  ;;  %v3276_v41 = vadd.f32 %v1433_v35, %v1392_v21  ;;  %v1845_v34 = vsel %vm812_vm1, %v1835_v33, -inf  ;;  %v1846_v35 = vsel %vm812_vm1, %v1836_v4, -inf }
 0x44f   : > { %v1494_v36 = vadd.f32 %v1493_v38, %v1392_v21  ;;  %v3278_v42 = vadd.f32 %v1453_v27, %v1392_v21  ;;  %v1849_v21 = vmax.f32 %v1844_v20, %v1848_v19  ;;  %v1847_v39 = vsel %vm812_vm1, %v1837_v16, -inf }
 0x450   : > { %v1505_v45 = vsel %vm812_vm1, %v3274_v28, -inf  ;;  %v1503_v48 = vsel %vm812_vm1, %v3276_v41, -inf  ;;  %v1851_v38 = vmax.f32 %v1846_v35, %v1847_v39 }
 0x451   : > { %v3282_v43 = vsel %vm546_vm2, %v1494_v36, -1e+30  ;;  %v1504_v49 = vsel %vm812_vm1, %v3278_v42, -inf  ;;  %v1850_v27 = vmax.f32 %v1849_v21, %v1845_v34 }
 0x452   : > { %v1506_v46 = vsel %vm859_vm3, %v3282_v43, -inf  ;;  %v1509_v17 = vmax.f32 %v1504_v49, %v1505_v45 }
 0x453   : > { %v1507_v47 = vmax.f32 %v1502_v44, %v1506_v46  ;;  %v1852_v36 = vmax.f32 %v1850_v27, %v1851_v38 }
 0x455   : > { %v1508_v50 = vmax.f32 %v1507_v47, %v1503_v48  ;;  %v2031_v32 = vld [vmem:[#allocation8] sm:$0xff] }
 0x457   : > { %v1510_v51 = vmax.f32 %v1508_v50, %v1509_v17 }
 0x459   : > { %1511 = vmax.xlane.f32.xlu0 %v1510_v51 }
 0x477   : > { %s2524_s21 = spop %2523 }
 0x478   : > { %v1265_v62 = vstv %s2524_s21  ;;  %s3612_s21 = sld [smem:[#allocation33_spill]] }
 0x479   : > { %v1266_v40 = vadd.f32 %v1265_v62, %v1246_v61 }
 0x47b   : > { %1267 = vst.msk [vmem:[#allocation13] sm:$0x1] %vm515_vm8, %v1266_v40 }
 0x47e   : > { %s2342_s0 = scalar_lea.hbm %s3612_s21, %s2836_s20  ;;  %s2334_s20 = scalar_lea.sflag [#allocation18], %s2998_s25 }
 0x482   : > { %v2630_v44 = vld [vmem:[#allocation13] ss:$0 sm:$0xff] }
 0x483   : > { %2654 = vrcp.f32 %v2630_v44  ;;  %vm2041_vm12 = vweird.f32 %v2630_v44 }
 0x489   : > { %v2655_v45 = vpop.eup %2654 }
 0x48a   : > { %v2037_v46 = vmul.f32 %v2655_v45, %v2630_v44  ;;  %vm2042_vm11 = vweird.f32 %v2655_v45 }
 0x48b   : > { %vm2043_vm13 = vmor %vm2041_vm12, %vm2042_vm11 }
 0x48c   : > { %v2038_v47 = vsub.f32 1.0, %v2037_v46 }
 0x48e   : > { %v2039_v50 = vmul.f32 %v2655_v45, %v2038_v47 }
 0x4cc   : > { %v1512_v52 = vpop.xlane.xlu0 %1511 }
 0x4cd   : > { %v1513_v53 = vrot.slane %v1512_v52, 4 }
 0x4cf   : > { %v1514_v55 = vmax.f32 %v1512_v52, %v1513_v53 }
 0x4d1   : > { %v1515_v60 = vrot.slane %v1514_v55, 2 }
 0x4d3   : > { %v1516_v13 = vmax.f32 %v1514_v55, %v1515_v60  ;;  %v2040_v55 = vadd.f32 %v2655_v45, %v2039_v50 }
 0x4d5   : > { %v1517_v22 = vrot.slane %v1516_v13, 1 }
 0x4d7   : > { %v1518_v23 = vmax.f32 %v1516_v13, %v1517_v22  ;;  %v2047_v13 = vand.u32 2147483648, %v2630_v44 }
 0x4d9   : > { %2525 = vpush %v1518_v23  ;;  %v2045_v23 = vand.u32 2147483647, %v2630_v44 }
 0x4db   : > { %vm2046_vm14 = vcmp.eq.f32.partialorder %v2045_v23, 8.507059e+37 }
 0x50a   : > { %s2526_s11 = spop %2525 }
 0x50b   : > { %v1520_v26 = vstv %s2526_s11 }
 0x50c   : > { %v3298_v11 = vmax.f32 %v3295_v25, %v1520_v26 }
 0x50e   : > { %v1522_v24 = vsub.f32 %v3295_v25, %v3298_v11  ;;  %1687 = vst.msk [vmem:[#allocation14] sm:$0x1] %vm515_vm8, %v3298_v11  ;;  %1527 = vperm.xlu1 %2628, %v3298_v11  }
 0x538   : > { %1853 = vmax.xlane.f32.xlu1 %v1852_v36 }
 0x551   : > { %1076 = vrot.lane.b32.xlu1 %v3199_v30, %s2850_s17 }
 0x580   : > { %v1528_v48 = vpop.permute.xlu1 %1527 }
 0x581   : > { %v1530_v49 = vperm.slane %v1528_v48, 0 }
 0x583   : > { %v1535_v17 = vsub.f32 %v3282_v43, %v1530_v49  ;;  %v1531_v51 = vsub.f32 %v3272_v37, %v1530_v49  ;;  %v1532_v59 = vsub.f32 %v3276_v41, %v1530_v49  ;;  %v1533_v61 = vsub.f32 %v3278_v42, %v1530_v49 }
 0x584   : > { %v1534_v62 = vsub.f32 %v3274_v28, %v1530_v49  ;;  %v2044_v37 = vsel %vm2043_vm13, %v2655_v45, %v2040_v55  ;;  %v2048_v41 = vor.u32 1.1754944e-38, %v2047_v13  ;;  %v3323_v28 = vld [vmem:[#allocation2] sm:$0x1f] }
 0x585   : > { %v1536_v40 = vmul.f32 1.442695, %v1531_v51  ;;  %v1538_v52 = vmul.f32 1.442695, %v1532_v59  ;;  %v1540_v53 = vmul.f32 1.442695, %v1533_v61 }
 0x586   : > { %v1542_v60 = vmul.f32 1.442695, %v1534_v62  ;;  %v1544_v22 = vmul.f32 1.442695, %v1535_v17  ;;  %v2049_v42 = vsel %vm2046_vm14, %v2048_v41, %v2044_v37  ;;  %v1772_v4 = vperm.slane %v3323_v28, 0  ;;  %v1074_v13 = vld [vmem:[#allocation10] sm:$0xff] }
 0x587   : > { %2656 = vpow2.f32 %v1536_v40  ;;  %v2050_v19 = vmul.f32 %v2049_v42, %v2031_v32  ;;  %v1776_v34 = vperm.slane %v3323_v28, 4  ;;  %v1774_v51 = vperm.slane %v3323_v28, 2 }
 0x588   : > { %2658 = vpow2.f32 %v1538_v52  ;;  %v1782_v48 = vsel %vm812_vm1, %v1772_v4, -inf  ;;  %v1775_v59 = vperm.slane %v3323_v28, 3  ;;  %v572_v37 = vadd.f32 %v3124_v14, %v550_v8 }
 0x589   : > { %2660 = vpow2.f32 %v1540_v53  ;;  %v1786_v49 = vsel %vm859_vm3, %v1776_v34, -inf  ;;  %v1784_v40 = vsel %vm812_vm1, %v1774_v51, -inf  ;;  %v573_v41 = vsel %vm561_vm9, %v551_v63, 0.0 }
 0x58a   : > { %2662 = vpow2.f32 %v1542_v60  ;;  %v1787_v61 = vmax.f32 %v1782_v48, %v1786_v49  ;;  %v1785_v52 = vsel %vm812_vm1, %v1775_v59, -inf  ;;  %v574_v42 = vadd.f32 %v573_v41, %v572_v37 }
 0x58b   : > { %2664 = vpow2.f32 %v1544_v22  ;;  %v1789_v53 = vmax.f32 %v1784_v40, %v1785_v52 }
 0x58c   : > { %575 = vadd.xlane.f32.xlu0 %v574_v42 }
 0x58d   : > { %v2657_v43 = vpop.eup %2656 }
 0x58e   : > { %v2659_v26 = vpop.eup %2658  ;;  %v1569_v31 = vsel %vm812_vm1, %v2657_v43, 1.0  ;;  %v1548_v33 = vsel %vm812_vm1, %v2657_v43, 0.0 }
 0x58f   : > { %v2661_v16 = vpop.eup %2660  ;;  %1595 = vmatpush.xpose.msrb.mxu2 %v1569_v31  ;;  %v1570_v20 = vsel %vm812_vm1, %v2659_v26, 1.0  ;;  %v1549_v21 = vsel %vm812_vm1, %v2659_v26, 0.0  ;;  %v1523_v31 = vmul.f32 1.442695, %v1522_v24 }
 0x590   : > { %v2663_v35 = vpop.eup %2662  ;;  %1615 = vmatpush.xpose.msrb.mxu3 %v1570_v20  ;;  %v1571_v39 = vsel %vm812_vm1, %v2661_v16, 1.0  ;;  %v1550_v27 = vadd.f32 %v1549_v21, %v1548_v33  ;;  %v1551_v44 = vsel %vm812_vm1, %v2661_v16, 0.0 }
 0x591   : > { %v2665_v38 = vpop.eup %2664  ;;  %1635 = vmatpush.xpose.msra.mxu0 %v1571_v39  ;;  %v1572_v36 = vsel %vm812_vm1, %v2663_v35, 1.0  ;;  %v1553_v47 = vsel %vm812_vm1, %v2663_v35, 0.0  ;;  %2666 = vpow2.f32 %v1523_v31 }
 0x592   : > { %1655 = vmatpush.xpose.msra.mxu1 %v1572_v36  ;;  %v1573_v45 = vsel %vm812_vm1, %v2665_v38, 1.0  ;;  %1596 = vmatmul.f32.vlgmr.msrb.gmra.mxu2 %v3013_v0  ;;  %v1552_v46 = vadd.f32 %v1551_v44, %v1550_v27  ;;  %v1555_v17 = vsel %vm859_vm3, %v2665_v38, 0.0  ;;  %v1773_v0 = vperm.slane %v3323_v28, 1  ;;  %v1680_v38 = vld [vmem:[#allocation9] sm:$0xff] }
 0x593   : > { %2503 = vmatpush.xpose.msk.msra.mxu2 %vm561_vm9, %v1573_v45  ;;  %1616 = vmatmul.f32.vlgmr.msrb.gmra.mxu3 %v3015_v1 }
 0x594   : > { %2069 = vmatpush.msra.mxu3 %v2050_v19  ;;  %v1554_v50 = vadd.f32 %v1553_v47, %v1552_v46  ;;  %1636 = vmatmul.f32.vlgmr.msra.gmra.mxu0 %v3017_v2  ;;  %v1783_v62 = vsel %vm812_vm1, %v1773_v0, -inf  ;;  %v2019_v0 = vld [vmem:[%s3576_s5] sm:$0xf] }
 0x595   : > { %1656 = vmatmul.f32.vlgmr.msra.gmra.mxu1 %v3022_v6  ;;  %v1788_v2 = vmax.f32 %v1787_v61, %v1783_v62  ;;  %v877_v6 = vmul.f32 1.442695, %v876_v57 }
 0x596   : > { %v1556_v1 = vadd.f32 %v1555_v17, %v1554_v50  ;;  %v1546_v50 = vld [vmem:[#allocation15] sm:$0x1] }
 0x597   : > { %v1790_v55 = vmax.f32 %v1788_v2, %v1789_v53  ;;  %v2667_v21 = vpop.eup %2666 }
 0x598   : > { %1557 = vadd.xlane.f32.xlu2 %v1556_v1  ;;  %v1682_v25 = vperm.slane %v2667_v21, 0  ;;  %v1547_v17 = vmul.f32 %v2667_v21, %v1546_v50 }
 0x59a   : > { %2504 = vmatmul.msk.f32.vlgmr.msra.gmra.mxu2 %vm561_vm9, %v3024_v7  ;;  %v1684_v46 = vmul.f32 %v1682_v25, %v1680_v38  ;;  %v1688_v25 = vld [vmem:[#allocation7] sm:$0xff]  ;;  %v2852_v38 = vmov 4.0  }
 0x59b   : > { %2505 = vmatmul.msk.f32.vlgmr.msra.gmra.mxu3 %vm579_vm0, %v2019_v0 }
 0x5a0   : > { %1791 = vmax.xlane.f32.xlu2 %v1790_v55 }
 0x5ab   : > { %v3352_v60 = vpop.xlane.xlu1 %1853 }
 0x5ac   : > { %v1855_v50 = vrot.slane %v3352_v60, 4 }
 0x5c3   : > { %v1077_v22 = vpop.permute.xlu1 %1076 }
 0x5c4   : > { %v1079_v23 = vadd.f32 %v1077_v22, %v1074_v13 }
 0x5c6   : > { %1080 = vst.msk [vmem:[#allocation10] sm:$0xff] %vm506_vm10, %v1079_v23 }
 0x60b   : > { %v1558_v43 = vpop.xlane.xlu2 %1557 }
 0x60c   : > { %v1559_v26 = vrot.slane %v1558_v43, 4 }
 0x60e   : > { %v1560_v32 = vadd.f32 %v1559_v26, %v1558_v43 }
 0x610   : > { %v1561_v33 = vrot.slane %v1560_v32, 2 }
 0x611   : > { %v1637_v63 = vpop.f32.mrf.mxu0 }
 0x612   : > { %v1562_v4 = vadd.f32 %v1561_v33, %v1560_v32  ;;  %v1657_v39 = vpop.f32.mrf.mxu1 }
 0x613   : > { %v1792_v16 = vpop.xlane.xlu2 %1791 }
 0x614   : > { %v1793_v5 = vrot.slane %v1792_v16, 4  ;;  %v1563_v20 = vrot.slane %v1562_v4, 1 }
 0x615   : > { %v1597_v8 = vpop.f32.mrf.mxu2 }
 0x616   : > { %v1794_v14 = vmax.f32 %v1792_v16, %v1793_v5  ;;  %v1564_v58 = vadd.f32 %v1563_v20, %v1562_v4  ;;  %v1617_v19 = vpop.f32.mrf.mxu3  ;;  %v569_v16 = vld [vmem:[#allocation5] sm:$0xff] }
 0x617   : > { %v1618_v34 = vadd.f32 %v1617_v19, %v1597_v8 }
 0x618   : > { %v1795_v35 = vrot.slane %v1794_v14, 2  ;;  %2527 = vpush %v1564_v58  ;;  %v576_v58 = vpop.xlane.xlu0 %575 }
 0x619   : > { %v1638_v27 = vadd.f32 %v1637_v63, %v1618_v34  ;;  %v577_v34 = vadd.f32 %v576_v58, %v569_v16 }
 0x61a   : > { %v1796_v11 = vmax.f32 %v1794_v14, %v1795_v35 }
 0x61b   : > { %v1658_v24 = vadd.f32 %v1657_v39, %v1638_v27  ;;  %v2020_v27 = vld [vmem:[%s3576_s5 + $0x4] sm:$0xf]  ;;  %578 = vst.msk [vmem:[#allocation5] sm:$0xff] %vm506_vm10, %v577_v34 }
 0x61c   : > { %v1797_v36 = vrot.slane %v1796_v11, 1 }
 0x61d   : > { %v1677_v44 = vpop.f32.mrf.mxu2 }
 0x61e   : > { %v1678_v45 = vadd.f32 %v1677_v44, %v1658_v24  ;;  %v1798_v47 = vmax.f32 %v1796_v11, %v1797_v36 }
 0x620   : > { %v1685_v48 = vadd.f32 %v1684_v46, %v1678_v45  ;;  %v1689_v49 = vsub.f32 %v3268_v18, %v1678_v45  ;;  %2529 = vpush %v1798_v47  ;;  %v2021_v45 = vld [vmem:[%s3577_s6] sm:$0xf]  ;;  %v2071_v46 = vpop.f32.mrf.mxu3 }
 0x621   : > { %v2072_v47 = vadd.f32 %v2071_v46, %v2021_v45 }
 0x622   : > { %1686 = vst.msk [vmem:[#allocation9] sm:$0xff] %vm506_vm10, %v1685_v48  ;;  %1691 = vrot.lane.b32.xlu0 %v1689_v49, %s2851_s29 }
 0x623   : > { %v2075_v49 = vsel %vm2074_vm6, %v2072_v47, 0.0 }
 0x629   : > { %v2159_v63 = vld [vmem:[#allocation9] sm:$0xff] }
 0x649   : > { %s2528_s30 = spop %2527 }
 0x64a   : > { %v1566_v51 = vstv %s2528_s30 }
 0x64b   : > { %v1567_v59 = vadd.f32 %v1566_v51, %v1547_v17  ;;  %v2076_v17 = vrot.slane %v2075_v49, 4 }
 0x64d   : > { %1568 = vst.msk [vmem:[#allocation15] sm:$0x1] %vm515_vm8, %v1567_v59  ;;  %v2077_v0 = vadd.f32 %v2076_v17, %v2075_v49  ;;  %v1856_v59 = vmax.f32 %v3352_v60, %v1855_v50 }
 0x651   : > { %s2530_s15 = spop %2529 }
 0x652   : > { %v1800_v18 = vstv %s2530_s15 }
 0x653   : > { %v1801_v1 = vsub.f32 %v3323_v28, %v1800_v18  ;;  %v2078_v18 = vrot.slane %v2077_v0, 2 }
 0x654   : > { %v2631_v61 = vld [vmem:[#allocation15] ss:$0 sm:$0xff] }
 0x655   : > { %v1802_v62 = vmul.f32 1.442695, %v1801_v1  ;;  %2668 = vrcp.f32 %v2631_v61  ;;  %v2175_v41 = vand.u32 2147483648, %v2631_v61  ;;  %v2173_v26 = vand.u32 2147483647, %v2631_v61 }
 0x656   : > { %vm2169_vm2 = vweird.f32 %v2631_v61  ;;  %v2079_v1 = vadd.f32 %v2078_v18, %v2077_v0 }
 0x657   : > { %2670 = vpow2.f32 %v1802_v62  ;;  %v2176_v20 = vor.u32 1.1754944e-38, %v2175_v41  ;;  %vm2174_vm5 = vcmp.eq.f32.partialorder %v2173_v26, 8.507059e+37  ;;  %v1857_v62 = vrot.slane %v1856_v59, 2  ;;  %v2022_v26 = vld [vmem:[%s3577_s6 + $0x4] sm:$0xf] }
 0x658   : > { %2672 = vrcp.f32 %v2852_v38 }
 0x65b   : > { %v2669_v40 = vpop.eup %2668 }
 0x65c   : > { %v2165_v2 = vmul.f32 %v2669_v40, %v2631_v61  ;;  %vm2170_vm15 = vweird.f32 %v2669_v40 }
 0x65d   : > { %v3373_v52 = vpop.eup %2670  ;;  %vm2171_vm4 = vmor %vm2169_vm2, %vm2170_vm15 }
 0x65e   : > { %v1805_v53 = vperm.slane %v3373_v52, 0  ;;  %v1806_v55 = vperm.slane %v3373_v52, 1  ;;  %v1807_v13 = vperm.slane %v3373_v52, 2  ;;  %v2166_v22 = vsub.f32 1.0, %v2165_v2  ;;  %v2673_v36 = vpop.eup %2672 }
 0x65f   : > { %v1808_v23 = vperm.slane %v3373_v52, 3  ;;  %v1809_v31 = vperm.slane %v3373_v52, 4  ;;  %v2083_v44 = vmul.f32 4.0, %v2673_v36  ;;  %v2080_v2 = vrot.slane %v2079_v1, 1 }
 0x660   : > { %v1815_v37 = vsel %vm812_vm1, %v1805_v53, 0.0  ;;  %v1816_v28 = vsel %vm812_vm1, %v1806_v55, 0.0  ;;  %v2167_v43 = vmul.f32 %v2669_v40, %v2166_v22  ;;  %v1818_v32 = vsel %vm812_vm1, %v1807_v13, 0.0 }
 0x661   : > { %v1817_v42 = vadd.f32 %v1816_v28, %v1815_v37  ;;  %v1820_v5 = vsel %vm812_vm1, %v1808_v23, 0.0  ;;  %v1822_v19 = vsel %vm859_vm3, %v1809_v31, 0.0  ;;  %v2084_v48 = vsub.f32 1.0, %v2083_v44 }
 0x662   : > { %v2168_v4 = vadd.f32 %v2669_v40, %v2167_v43  ;;  %v2081_v55 = vadd.f32 %v2080_v2, %v2079_v1  ;;  %v1858_v23 = vmax.f32 %v1856_v59, %v1857_v62 }
 0x663   : > { %v1819_v33 = vadd.f32 %v1818_v32, %v1817_v42  ;;  %v2085_v51 = vmul.f32 %v2673_v36, %v2084_v48 }
 0x664   : > { %v2172_v14 = vsel %vm2171_vm4, %v2669_v40, %v2168_v4  ;;  %v1859_v43 = vrot.slane %v1858_v23, 1  ;;  %vm2135_vm4 = vcmask 1043456  }
 0x665   : > { %v1821_v8 = vadd.f32 %v1820_v5, %v1819_v33  ;;  %v2177_v21 = vsel %vm2174_vm5, %v2176_v20, %v2172_v14  ;;  %v2086_v61 = vadd.f32 %v2673_v36, %v2085_v51  ;;  %vm2131_vm5 = vcmask 31744  }
 0x666   : > { %v2178_v39 = vmul.f32 %v2177_v21, %v2159_v63  ;;  %v1860_v20 = vmax.f32 %v1858_v23, %v1859_v43 }
 0x667   : > { %v1823_v35 = vadd.f32 %v1822_v19, %v1821_v8 }
 0x668   : > { %2197 = vmatpush.msrb.mxu1 %v2178_v39 }
 0x669   : > { %1824 = vadd.xlane.f32.xlu2 %v1823_v35  ;;  %2508 = vmatmul.msk.f32.vlgmr.msrb.gmra.mxu1 %vm579_vm0, %v2020_v27  ;;  %vm2087_vm0 = vweird.f32 %v2673_v36 }
 0x66a   : > { %v2088_v22 = vsel %vm2087_vm0, %v2673_v36, %v2086_v61 }
 0x66b   : > { %v2089_v37 = vmul.f32 %v2088_v22, %v2081_v55 }
 0x66d   : > { %v3397_v41 = vsub.f32 %v2072_v47, %v2089_v37 }
 0x66f   : > { %v2091_v60 = vmul.f32 %v3397_v41, %v3397_v41 }
 0x671   : > { %v2092_v32 = vsel %vm2074_vm6, %v2091_v60, 0.0 }
 0x672   : > { %v2093_v16 = vrot.slane %v2092_v32, 4 }
 0x674   : > { %v2094_v8 = vadd.f32 %v2093_v16, %v2092_v32 }
 0x676   : > { %v2095_v19 = vrot.slane %v2094_v8, 2 }
 0x678   : > { %v2096_v21 = vadd.f32 %v2095_v19, %v2094_v8 }
 0x67a   : > { %v2097_v35 = vrot.slane %v2096_v21, 1 }
 0x67c   : > { %v2098_v27 = vadd.f32 %v2097_v35, %v2096_v21 }
 0x694   : > { %v1692_v11 = vpop.permute.xlu0 %1691 }
 0x695   : > { %v1694_v24 = vadd.f32 %v1692_v11, %v1688_v25  ;;  %v2099_v11 = vmul.f32 %v2098_v27, %v2088_v22 }
 0x697   : > { %1695 = vst.msk [vmem:[#allocation7] sm:$0xff] %vm506_vm10, %v1694_v24  ;;  %v2100_v38 = vadd.f32 1e-05, %v2099_v11 }
 0x699   : > { %2674 = vrsqrt.f32 %v2100_v38  ;;  %vm2108_vm7 = vcmp.eq.f32.partialorder %v2100_v38, inf  ;;  %v2111_v2 = vand.u32 2147483648, %v2100_v38  ;;  %vm2110_vm8 = vcmp.eq.f32.partialorder %v2100_v38, 0.0 }
 0x69f   : > { %v2675_v46 = vpop.eup %2674 }
 0x6a0   : > { %v2102_v49 = vmul.f32 %v2675_v46, %v2100_v38 }
 0x6a2   : > { %v2103_v17 = vmul.f32 %v2675_v46, %v2102_v49 }
 0x6a4   : > { %v2104_v51 = vmul.f32 0.5, %v2103_v17 }
 0x6a6   : > { %v2105_v18 = vsub.f32 1.5, %v2104_v51 }
 0x6a8   : > { %v2106_v61 = vmul.f32 %v2675_v46, %v2105_v18 }
 0x6dc   : > { %v1825_v40 = vpop.xlane.xlu2 %1824 }
 0x6dd   : > { %v1826_v53 = vrot.slane %v1825_v40, 4 }
 0x6df   : > { %v1827_v13 = vadd.f32 %v1826_v53, %v1825_v40  ;;  %v2107_v40 = vmul.f32 %v2106_v61, %v2100_v38 }
 0x6e1   : > { %v1828_v28 = vrot.slane %v1827_v13, 2  ;;  %v2109_v55 = vsel %vm2108_vm7, %v2100_v38, %v2107_v40 }
 0x6e3   : > { %v1829_v42 = vadd.f32 %v1828_v28, %v1827_v13  ;;  %v2112_v13 = vsel %vm2110_vm8, %v2111_v2, %v2109_v55 }
 0x6e4   : > { %2676 = vrcp.f32 %v2112_v13  ;;  %v2124_v32 = vand.u32 2147483648, %v2112_v13  ;;  %vm2118_vm11 = vweird.f32 %v2112_v13 }
 0x6e5   : > { %v1830_v31 = vrot.slane %v1829_v42, 1 }
 0x6e6   : > { %v2199_v33 = vpop.f32.mrf.mxu1 }
 0x6e7   : > { %v1831_v4 = vadd.f32 %v1830_v31, %v1829_v42  ;;  %v2200_v5 = vadd.f32 %v2199_v33, %v2022_v26 }
 0x6e9   : > { %2531 = vpush %v1831_v4  ;;  %v2202_v14 = vsel %vm2074_vm6, %v2200_v5, 0.0 }
 0x6ea   : > { %2533 = vpush %v1860_v20  ;;  %v2203_v58 = vrot.slane %v2202_v14, 4  ;;  %v2677_v37 = vpop.eup %2676  ;;  %v2125_v20 = vor.u32 1.1754944e-38, %v2124_v32  ;;  %v2026_v32 = vld [vmem:[%s3579_s8 + $0x4] sm:$0xf] }
 0x6eb   : > { %v2114_v28 = vmul.f32 %v2677_v37, %v2112_v13  ;;  %vm2119_vm12 = vweird.f32 %v2677_v37 }
 0x6ec   : > { %v2204_v63 = vadd.f32 %v2203_v58, %v2202_v14  ;;  %vm2120_vm13 = vmor %vm2118_vm11, %vm2119_vm12  ;;  %v2023_v14 = vld [vmem:[%s3578_s7] sm:$0xf] }
 0x6ed   : > { %v2115_v60 = vsub.f32 1.0, %v2114_v28 }
 0x6ee   : > { %v2205_v34 = vrot.slane %v2204_v63, 2 }
 0x6ef   : > { %v2116_v31 = vmul.f32 %v2677_v37, %v2115_v60 }
 0x6f0   : > { %v2206_v39 = vadd.f32 %v2205_v34, %v2204_v63 }
 0x6f1   : > { %v2117_v4 = vadd.f32 %v2677_v37, %v2116_v31  ;;  %v560_v31 = vadd.f32 %v3030_v12, %v555_v9 }
 0x6f2   : > { %v2207_v25 = vrot.slane %v2206_v39, 1 }
 0x6f4   : > { %v2208_v24 = vadd.f32 %v2207_v25, %v2206_v39  ;;  %v2025_v39 = vld [vmem:[%s3579_s8] sm:$0xf] }
 0x6f6   : > { %v2209_v36 = vmul.f32 %v2208_v24, %v2088_v22 }
 0x6f8   : > { %v3406_v44 = vsub.f32 %v2200_v5, %v2209_v36  ;;  %v2121_v5 = vsel %vm2120_vm13, %v2677_v37, %v2117_v4 }
 0x6fa   : > { %v2211_v45 = vmul.f32 %v3406_v44, %v3406_v44 }
 0x6fc   : > { %v2212_v47 = vsel %vm2074_vm6, %v2211_v45, 0.0 }
 0x6fd   : > { %v2213_v48 = vrot.slane %v2212_v47, 4 }
 0x6ff   : > { %v2214_v50 = vadd.f32 %v2213_v48, %v2212_v47 }
 0x701   : > { %v2215_v0 = vrot.slane %v2214_v50, 2 }
 0x703   : > { %v2216_v59 = vadd.f32 %v2215_v0, %v2214_v50 }
 0x705   : > { %v2217_v1 = vrot.slane %v2216_v59, 1 }
 0x707   : > { %v2218_v62 = vadd.f32 %v2217_v1, %v2216_v59 }
 0x709   : > { %v2219_v53 = vmul.f32 %v2218_v62, %v2088_v22  ;;  %v2122_v22 = vand.u32 2147483647, %v2112_v13 }
 0x70b   : > { %v2220_v23 = vadd.f32 1e-05, %v2219_v53  ;;  %vm2123_vm14 = vcmp.eq.f32.partialorder %v2122_v22, 8.507059e+37 }
 0x70c   : > { %v2126_v58 = vsel %vm2123_vm14, %v2125_v20, %v2121_v5 }
 0x70d   : > { %2678 = vrsqrt.f32 %v2220_v23  ;;  %vm2228_vm15 = vcmp.eq.f32.partialorder %v2220_v23, inf  ;;  %v2231_v63 = vand.u32 2147483648, %v2220_v23  ;;  %v2127_v21 = vmul.f32 %v2126_v58, %v3397_v41  ;;  %v2027_v41 = vld [vmem:[%s3580_s9] sm:$0xff] }
 0x70e   : > { %vm2230_vm2 = vcmp.eq.f32.partialorder %v2220_v23, 0.0 }
 0x70f   : > { %v2128_v27 = vmul.f32 %v2127_v21, %v2023_v14 }
 0x711   : > { %v2129_v38 = vadd.f32 %v2128_v27, %v2025_v39 }
 0x713   : > { %v2679_v42 = vpop.eup %2678  ;;  %v2130_v36 = vmax.f32 %v2129_v38, 0.0 }
 0x714   : > { %v2222_v43 = vmul.f32 %v2679_v42, %v2220_v23 }
 0x715   : > { %2506 = vmatpush.msk.msrb.mxu0 %vm2135_vm4, %v2130_v36 }
 0x716   : > { %v2223_v26 = vmul.f32 %v2679_v42, %v2222_v43  ;;  %2507 = vmatmul.msk.f32.vlgmr.msrb.gmra.mxu0 %vm2131_vm5, %v2027_v41  ;;  %v2024_v43 = vld [vmem:[%s3578_s7 + $0x4] sm:$0xf] }
 0x718   : > { %v2224_v33 = vmul.f32 0.5, %v2223_v26 }
 0x71a   : > { %s3411_s19 = spop %2531  ;;  %v2225_v16 = vsub.f32 1.5, %v2224_v33  ;;  %v562_v33 = vsel %vm561_vm9, %v556_v10, 0.0  ;;  %vm509_vm9 = vcmask 15360   ;;  %v1734_v10 = vld [vmem:[#allocation5] sm:$0xff] }
 0x71b   : > { %s2534_s12 = spop %2533  ;;  %510 = vst.msk [vmem:[#allocation6] sm:$0xff] %vm509_vm9, %v2849_v3  ;;  %v1735_v12 = vmul.f32 0.0032, %v1734_v10 }
 0x71c   : > { %v2226_v8 = vmul.f32 %v2679_v42, %v2225_v16  ;;  %v1862_v19 = vstv %s2534_s12  ;;  %v563_v16 = vadd.f32 %v562_v33, %v560_v31 }
 0x71d   : > { %v1863_v34 = vsub.f32 %v3305_v29, %v1862_v19  ;;  %v1736_v20 = vsel %vm506_vm10, %v1735_v12, -inf }
 0x71e   : > { %v2227_v35 = vmul.f32 %v2226_v8, %v2220_v23  ;;  %v1737_v8 = vrot.slane %v1736_v20, 4 }
 0x71f   : > { %v1864_v25 = vmul.f32 1.442695, %v1863_v34 }
 0x720   : > { %v2229_v11 = vsel %vm2228_vm15, %v2220_v23, %v2227_v35  ;;  %v1738_v14 = vmax.f32 %v1736_v20, %v1737_v8  ;;  %v557_v35 = vld [vmem:[#allocation4] sm:$0xff] }
 0x721   : > { %v2232_v24 = vsel %vm2230_vm2, %v2231_v63, %v2229_v11  ;;  %2680 = vpow2.f32 %v1864_v25 }
 0x722   : > { %2682 = vrcp.f32 %v2232_v24  ;;  %vm2238_vm6 = vweird.f32 %v2232_v24  ;;  %v2244_v50 = vand.u32 2147483648, %v2232_v24  ;;  %v2242_v18 = vand.u32 2147483647, %v2232_v24  ;;  %v1063_v36 = vld [vmem:[#allocation6] sm:$0xff] }
 0x723   : > { %2684 = vpow2.f32 %v877_v6  ;;  %v1739_v58 = vrot.slane %v1738_v14, 2 }
 0x724   : > { %v2245_v53 = vor.u32 1.1754944e-38, %v2244_v50  ;;  %vm2243_vm8 = vcmp.eq.f32.partialorder %v2242_v18, 8.507059e+37 }
 0x725   : > { %v1740_v63 = vmax.f32 %v1738_v14, %v1739_v58 }
 0x727   : > { %v3426_v29 = vpop.eup %2680  ;;  %v1741_v54 = vrot.slane %v1740_v63, 1 }
 0x728   : > { %v2683_v45 = vpop.eup %2682  ;;  %v1867_v46 = vperm.slane %v3426_v29, 0  ;;  %v1868_v47 = vperm.slane %v3426_v29, 1  ;;  %v1869_v48 = vperm.slane %v3426_v29, 2  ;;  %v1870_v17 = vperm.slane %v3426_v29, 3 }
 0x729   : > { %v2234_v49 = vmul.f32 %v2683_v45, %v2232_v24  ;;  %vm2239_vm0 = vweird.f32 %v2683_v45  ;;  %v1871_v61 = vperm.slane %v3426_v29, 4  ;;  %v2685_v7 = vpop.eup %2684  ;;  %v1742_v57 = vmax.f32 %v1740_v63, %v1741_v54  ;;  %v2278_v54 = vld [vmem:[#allocation10] sm:$0xff] }
 0x72a   : > { %v1877_v0 = vsel %vm812_vm1, %v1867_v46, 0.0  ;;  %v1878_v51 = vsel %vm812_vm1, %v1868_v47, 0.0  ;;  %v1880_v62 = vsel %vm812_vm1, %v1869_v48, 0.0  ;;  %vm2240_vm7 = vmor %vm2238_vm6, %vm2239_vm0  ;;  %v1882_v55 = vsel %vm812_vm1, %v1870_v17, 0.0 }
 0x72b   : > { %v2235_v59 = vsub.f32 1.0, %v2234_v49  ;;  %v1879_v1 = vadd.f32 %v1878_v51, %v1877_v0  ;;  %v1884_v37 = vsel %vm859_vm3, %v1871_v61, 0.0  ;;  %v1065_v9 = vperm.slane %v2685_v7, 0 }
 0x72c   : > { %v1743_v39 = vsub.f32 %v1735_v12, %v1742_v57 }
 0x72d   : > { %v2236_v40 = vmul.f32 %v2683_v45, %v2235_v59  ;;  %v1881_v2 = vadd.f32 %v1880_v62, %v1879_v1 }
 0x72e   : > { %v1744_v11 = vmul.f32 1.442695, %v1743_v39 }
 0x72f   : > { %v2237_v13 = vadd.f32 %v2683_v45, %v2236_v40  ;;  %v1883_v23 = vadd.f32 %v1882_v55, %v1881_v2 }
 0x730   : > { %2686 = vpow2.f32 %v1744_v11 }
 0x731   : > { %v2241_v28 = vsel %vm2240_vm7, %v2683_v45, %v2237_v13  ;;  %v1885_v42 = vadd.f32 %v1884_v37, %v1883_v23 }
 0x732   : > { %v2246_v60 = vsel %vm2243_vm8, %v2245_v53, %v2241_v28 }
 0x733   : > { %v2247_v26 = vmul.f32 %v2246_v60, %v3406_v44  ;;  %1886 = vadd.xlane.f32.xlu2 %v1885_v42  ;;  %v2028_v44 = vld [vmem:[%s3580_s9 + $0x8] sm:$0xff] }
 0x735   : > { %v2248_v4 = vmul.f32 %v2247_v26, %v2024_v43  ;;  %v3476_v43 = vstv %s3411_s19 }
 0x736   : > { %v3463_v41 = vpop.eup %2686 }
 0x737   : > { %v2249_v22 = vadd.f32 %v2248_v4, %v2026_v32  ;;  %v1747_v47 = vsel %vm506_vm10, %v3463_v41, 0.0 }
 0x738   : > { %v1748_v49 = vrot.slane %v1747_v47, 4 }
 0x739   : > { %v2250_v5 = vmax.f32 %v2249_v22, 0.0 }
 0x73a   : > { %v1749_v59 = vadd.f32 %v1748_v49, %v1747_v47 }
 0x73b   : > { %564 = vadd.xlane.f32.xlu2 %v563_v16  ;;  %2509 = vmatpush.msk.msrb.mxu2 %vm2135_vm4, %v2250_v5  ;;  %vm1902_vm4 = vweird.f32 %v3476_v43 }
 0x73c   : > { %2510 = vmatmul.msk.f32.vlgmr.msrb.gmra.mxu2 %vm2131_vm5, %v2028_v44  ;;  %v1750_v61 = vrot.slane %v1749_v59, 2 }
 0x73e   : > { %v1751_v53 = vadd.f32 %v1750_v61, %v1749_v59 }
 0x740   : > { %v1752_v13 = vrot.slane %v1751_v53, 1 }
 0x742   : > { %v1753_v37 = vadd.f32 %v1752_v13, %v1751_v53 }
 0x744   : > { %vm1759_vm11 = vweird.f32 %v1753_v37  ;;  %v1765_v10 = vand.u32 2147483648, %v1753_v37  ;;  %v1763_v8 = vand.u32 2147483647, %v1753_v37 }
 0x746   : > { %vm1764_vm14 = vcmp.eq.f32.partialorder %v1763_v8, 8.507059e+37 }
 0x753   : > { %1067 = vperm.xlu2 %2629, %v1065_v9  }
 0x793   : > { %v2156_v58 = vpop.f32.mrf.mxu0 }
 0x7a6   : > { %v1887_v19 = vpop.xlane.xlu2 %1886 }
 0x7a7   : > { %v1888_v21 = vrot.slane %v1887_v19, 4 }
 0x7a9   : > { %v1889_v56 = vadd.f32 %v1888_v21, %v1887_v19  ;;  %v1766_v21 = vor.u32 1.1754944e-38, %v1765_v10 }
 0x7ab   : > { %v1890_v34 = vrot.slane %v1889_v56, 2 }
 0x7ad   : > { %v1891_v27 = vadd.f32 %v1890_v34, %v1889_v56 }
 0x7ae   : > { %v565_v25 = vpop.xlane.xlu2 %564 }
 0x7af   : > { %v566_v3 = vadd.f32 %v565_v25, %v557_v35  ;;  %v1892_v24 = vrot.slane %v1891_v27, 1 }
 0x7b1   : > { %568 = vst.msk [vmem:[#allocation4] sm:$0xff] %vm506_vm10, %v566_v3  ;;  %v1893_v38 = vadd.f32 %v1892_v24, %v1891_v27  ;;  %v1746_v27 = vmul.f32 8.0, %v3463_v41  ;;  %v2279_v3 = vsel %vm506_vm10, %v2278_v54, 0.0 }
 0x7b3   : > { %2535 = vpush %v1893_v38 }
 0x7b6   : > { %v1068_v45 = vpop.permute.xlu2 %1067 }
 0x7b7   : > { %v1070_v46 = vmul.f32 %v1068_v45, %v1063_v36  ;;  %v1906_v45 = vand.u32 2147483647, %v3476_v43 }
 0x7b8   : > { %v1699_v48 = vld [vmem:[#allocation4] sm:$0xff] }
 0x7b9   : > { %v1071_v50 = vadd.f32 %v1070_v46, %v3199_v30  ;;  %v1700_v17 = vmul.f32 0.0032, %v1699_v48  ;;  %v1908_v46 = vand.u32 2147483648, %v3476_v43 }
 0x7bb   : > { %1073 = vst.msk [vmem:[#allocation6] sm:$0xff] %vm509_vm9, %v1071_v50  ;;  %v1701_v0 = vsel %vm506_vm10, %v1700_v17, -inf  ;;  %vm1907_vm9 = vcmp.eq.f32.partialorder %v1906_v45, 8.507059e+37 }
 0x7bc   : > { %v1702_v51 = vrot.slane %v1701_v0, 4 }
 0x7be   : > { %v1703_v18 = vmax.f32 %v1701_v0, %v1702_v51 }
 0x7c0   : > { %v1704_v1 = vrot.slane %v1703_v18, 2 }
 0x7c2   : > { %v3470_v62 = vld [vmem:[#allocation6] sm:$0xff]  ;;  %v1705_v40 = vmax.f32 %v1703_v18, %v1704_v1 }
 0x7c3   : > { %2004 = vrot.lane.b32.xlu0 %v3470_v62, %s2851_s29 }
 0x7c4   : > { %v1706_v2 = vrot.slane %v1705_v40, 1 }
 0x7c6   : > { %v1707_v30 = vmax.f32 %v1705_v40, %v1706_v2  ;;  %v1909_v40 = vor.u32 1.1754944e-38, %v1908_v46 }
 0x7c8   : > { %v1708_v55 = vsub.f32 %v1700_v17, %v1707_v30 }
 0x7ca   : > { %v1709_v23 = vmul.f32 1.442695, %v1708_v55  ;;  %v1895_v55 = vmul.f32 625.0, %v3373_v52 }
 0x7cc   : > { %2688 = vpow2.f32 %v1709_v23  ;;  %v1912_v23 = vmul.f32 625.0, %v3426_v29 }
 0x7cd   : > { %2690 = vrcp.f32 %v1753_v37 }
 0x7ce   : > { %2692 = vrcp.f32 %v3476_v43 }
 0x7d2   : > { %v2689_v28 = vpop.eup %2688 }
 0x7d3   : > { %v1712_v42 = vsel %vm506_vm10, %v2689_v28, 0.0  ;;  %v2691_v26 = vpop.eup %2690  ;;  %v1711_v47 = vmul.f32 8.0, %v2689_v28 }
 0x7d4   : > { %v1713_v60 = vrot.slane %v1712_v42, 4  ;;  %v1755_v33 = vmul.f32 %v2691_v26, %v1753_v37  ;;  %v3479_v16 = vpop.eup %2692  ;;  %vm1760_vm12 = vweird.f32 %v2691_v26 }
 0x7d5   : > { %v1898_v6 = vmul.f32 %v3479_v16, %v3476_v43  ;;  %vm3483_vm13 = vmor %vm1759_vm11, %vm1760_vm12  ;;  %vm1903_vm2 = vweird.f32 %v3479_v16 }
 0x7d6   : > { %v1714_v31 = vadd.f32 %v1713_v60, %v1712_v42  ;;  %v1756_v5 = vsub.f32 1.0, %v1755_v33  ;;  %vm3498_vm0 = vmor %vm1902_vm4, %vm1903_vm2 }
 0x7d7   : > { %v1899_v9 = vsub.f32 1.0, %v1898_v6 }
 0x7d8   : > { %v1715_v32 = vrot.slane %v1714_v31, 2  ;;  %v1757_v7 = vmul.f32 %v2691_v26, %v1756_v5 }
 0x7d9   : > { %v1900_v63 = vmul.f32 %v3479_v16, %v1899_v9 }
 0x7da   : > { %v1716_v4 = vadd.f32 %v1715_v32, %v1714_v31  ;;  %v1758_v20 = vadd.f32 %v2691_v26, %v1757_v7 }
 0x7db   : > { %v1901_v11 = vadd.f32 %v3479_v16, %v1900_v63  ;;  %v2274_v63 = vpop.f32.mrf.mxu2 }
 0x7dc   : > { %v1717_v22 = vrot.slane %v1716_v4, 1  ;;  %v1762_v57 = vsel %vm3483_vm13, %v2691_v26, %v1758_v20 }
 0x7dd   : > { %v1767_v24 = vsel %vm1764_vm14, %v1766_v21, %v1762_v57  ;;  %v1905_v0 = vsel %vm3498_vm0, %v3479_v16, %v1901_v11  ;;  %vm2327_vm14 = vcmp.eq.s32.totalorder %v3044_v15, 3 }
 0x7de   : > { %v1718_v44 = vadd.f32 %v1717_v22, %v1716_v4  ;;  %v1768_v17 = vmul.f32 %v1767_v24, %v1746_v27  ;;  %v3507_v13 = vsel %vm1907_vm9, %v1909_v40, %v1905_v0 }
 0x7df   : > { %v1911_v26 = vmul.f32 %v3507_v13, %v1895_v55 }
 0x7e0   : > { %2694 = vrcp.f32 %v1718_v44  ;;  %v1730_v34 = vand.u32 2147483648, %v1718_v44  ;;  %v1728_v39 = vand.u32 2147483647, %v1718_v44  ;;  %vm1724_vm5 = vweird.f32 %v1718_v44 }
 0x7e2   : > { %v1731_v41 = vor.u32 1.1754944e-38, %v1730_v34  ;;  %vm1729_vm7 = vcmp.eq.f32.partialorder %v1728_v39, 8.507059e+37 }
 0x7e4   : > { %s2536_s29 = spop %2535 }
 0x7e5   : > { %v1913_v12 = vstv %s2536_s29 }
 0x7e6   : > { %v2695_v14 = vpop.eup %2694  ;;  %2696 = vrcp.f32 %v1913_v12  ;;  %v1925_v51 = vand.u32 2147483648, %v1913_v12  ;;  %v1923_v1 = vand.u32 2147483647, %v1913_v12  ;;  %vm1919_vm11 = vweird.f32 %v1913_v12 }
 0x7e7   : > { %v1720_v19 = vmul.f32 %v2695_v14, %v1718_v44  ;;  %vm1725_vm15 = vweird.f32 %v2695_v14 }
 0x7e8   : > { %vm1726_vm6 = vmor %vm1724_vm5, %vm1725_vm15  ;;  %v1926_v37 = vor.u32 1.1754944e-38, %v1925_v51  ;;  %vm1924_vm13 = vcmp.eq.f32.partialorder %v1923_v1, 8.507059e+37  ;;  %vm2331_vm15 = vcmask 24576  }
 0x7e9   : > { %v1721_v56 = vsub.f32 1.0, %v1720_v19  ;;  %v2030_v19 = vld [vmem:[%s3581_s10 + $0x8] sm:$0xff] }
 0x7ea   : > { %v2275_v54 = vadd.f32 %v2274_v63, %v2030_v19 }
 0x7eb   : > { %v1722_v35 = vmul.f32 %v2695_v14, %v1721_v56 }
 0x7ec   : > { %v2697_v25 = vpop.eup %2696 }
 0x7ed   : > { %v1915_v38 = vmul.f32 %v2697_v25, %v1913_v12  ;;  %2280 = vadd.xlane.f32.xlu0 %v2279_v3  ;;  %v1723_v36 = vadd.f32 %v2695_v14, %v1722_v35  ;;  %vm1920_vm8 = vweird.f32 %v2697_v25 }
 0x7ee   : > { %vm1921_vm12 = vmor %vm1919_vm11, %vm1920_vm8 }
 0x7ef   : > { %v1916_v49 = vsub.f32 1.0, %v1915_v38  ;;  %v1727_v50 = vsel %vm1726_vm6, %v2695_v14, %v1723_v36  ;;  %v2029_v14 = vld [vmem:[%s3581_s10] sm:$0xff] }
 0x7f0   : > { %v1732_v59 = vsel %vm1729_vm7, %v1731_v41, %v1727_v50  ;;  %v2157_v21 = vadd.f32 %v2156_v58, %v2029_v14 }
 0x7f1   : > { %v1917_v18 = vmul.f32 %v2697_v25, %v1916_v49  ;;  %v1733_v61 = vmul.f32 %v1732_v59, %v1711_v47 }
 0x7f2   : > { %v2277_v56 = vsub.f32 %v2157_v21, %v2275_v54 }
 0x7f3   : > { %v1918_v2 = vadd.f32 %v2697_v25, %v1917_v18  ;;  %v1991_v53 = vmul.f32 %v3470_v62, %v1733_v61  ;;  %v1929_v30 = vsub.f32 %v1768_v17, %v1733_v61 }
 0x7f4   : > { %v2303_v57 = vmul.f32 %v2277_v56, %v2277_v56 }
 0x7f5   : > { %v1922_v28 = vsel %vm1921_vm12, %v2697_v25, %v1918_v2  ;;  %v1992_v42 = vsel %vm506_vm10, %v1991_v53, 0.0  ;;  %v1930_v43 = vand.u32 2147483647, %v1929_v30  ;;  %v2289_v25 = vld [vmem:[#allocation7] sm:$0xff] }
 0x7f6   : > { %v1927_v60 = vsel %vm1924_vm13, %v1926_v37, %v1922_v28  ;;  %1993 = vadd.xlane.f32.xlu1 %v1992_v42  ;;  %v2304_v34 = vsel %vm506_vm10, %v2303_v57, 0.0  ;;  %v2290_v11 = vmul.f32 %v2289_v25, %v2277_v56 }
 0x7f7   : > { %v1928_v31 = vmul.f32 %v1927_v60, %v1912_v23  ;;  %v1931_v62 = vsel %vm506_vm10, %v1930_v43, 0.0 }
 0x7f8   : > { %1932 = vadd.xlane.f32.xlu2 %v1931_v62  ;;  %v2291_v3 = vsel %vm506_vm10, %v2290_v11, 0.0 }
 0x7f9   : > { %v1941_v52 = vsub.f32 %v1928_v31, %v1911_v26 }
 0x7fb   : > { %v1942_v32 = vand.u32 2147483647, %v1941_v52 }
 0x7fd   : > { %v1944_v33 = vperm.slane %v1942_v32, 0  ;;  %v1945_v4 = vperm.slane %v1942_v32, 1  ;;  %v1946_v29 = vperm.slane %v1942_v32, 2  ;;  %v1947_v22 = vperm.slane %v1942_v32, 3 }
 0x7fe   : > { %v1948_v6 = vperm.slane %v1942_v32, 4 }
 0x7ff   : > { %v1954_v16 = vsel %vm812_vm1, %v1944_v33, 0.0  ;;  %v1955_v5 = vsel %vm812_vm1, %v1945_v4, 0.0  ;;  %v1957_v7 = vsel %vm812_vm1, %v1946_v29, 0.0  ;;  %v1959_v10 = vsel %vm812_vm1, %v1947_v22, 0.0 }
 0x800   : > { %v1956_v44 = vadd.f32 %v1955_v5, %v1954_v16  ;;  %v1961_v20 = vsel %vm859_vm3, %v1948_v6, 0.0  ;;  %vm2319_vm1 = vcmp.eq.s32.totalorder %v3044_v15, 1  ;;  %vm2316_vm3 = vcmp.eq.s32.totalorder %v3044_v15, 0 }
 0x802   : > { %v1958_v9 = vadd.f32 %v1957_v7, %v1956_v44 }
 0x804   : > { %v1960_v12 = vadd.f32 %v1959_v10, %v1958_v9 }
 0x806   : > { %v1962_v8 = vadd.f32 %v1961_v20, %v1960_v12 }
 0x808   : > { %1963 = vadd.xlane.f32.xlu0 %v1962_v8 }
 0x810   : > { %2305 = vadd.xlane.f32.xlu0 %v2304_v34 }
 0x835   : > { %v2005_v35 = vpop.permute.xlu0 %2004 }
 0x836   : > { %v2007_v39 = vmul.f32 %v2005_v35, %v1733_v61 }
 0x838   : > { %v2008_v27 = vsel %vm506_vm10, %v2007_v39, 0.0  ;;  %vm2323_vm10 = vcmp.eq.s32.totalorder %v3044_v15, 2 }
 0x839   : > { %2009 = vadd.xlane.f32.xlu2 %v2008_v27 }
 0x841   : > { %2292 = vadd.xlane.f32.xlu2 %v2291_v3 }
 0x860   : > { %v2281_v41 = vpop.xlane.xlu0 %2280 }
 0x861   : > { %v2282_v23 = vrot.slane %v2281_v41, 4 }
 0x863   : > { %v2283_v37 = vadd.f32 %v2282_v23, %v2281_v41 }
 0x865   : > { %v2284_v42 = vrot.slane %v2283_v37, 2 }
 0x867   : > { %v2285_v52 = vadd.f32 %v2284_v42, %v2283_v37 }
 0x869   : > { %v1994_v46 = vpop.xlane.xlu1 %1993  ;;  %v2286_v22 = vrot.slane %v2285_v52, 1 }
 0x86a   : > { %v1995_v48 = vrot.slane %v1994_v46, 4 }
 0x86b   : > { %v1933_v24 = vpop.xlane.xlu2 %1932  ;;  %v2287_v7 = vadd.f32 %v2286_v22, %v2285_v52 }
 0x86c   : > { %v1934_v38 = vrot.slane %v1933_v24, 4  ;;  %v1996_v17 = vadd.f32 %v1995_v48, %v1994_v46 }
 0x86e   : > { %v1935_v36 = vadd.f32 %v1934_v38, %v1933_v24  ;;  %v1997_v51 = vrot.slane %v1996_v17, 2 }
 0x870   : > { %v1936_v45 = vrot.slane %v1935_v36, 2  ;;  %v1998_v1 = vadd.f32 %v1997_v51, %v1996_v17 }
 0x872   : > { %v1937_v47 = vadd.f32 %v1936_v45, %v1935_v36  ;;  %v1999_v53 = vrot.slane %v1998_v1, 1 }
 0x874   : > { %v1938_v49 = vrot.slane %v1937_v47, 1  ;;  %v2000_v55 = vadd.f32 %v1999_v53, %v1998_v1 }
 0x876   : > { %v1939_v50 = vadd.f32 %v1938_v49, %v1937_v47 }
 0x878   : > { %2537 = vpush %v1939_v50 }
 0x87b   : > { %v1964_v0 = vpop.xlane.xlu0 %1963 }
 0x87c   : > { %v1965_v59 = vrot.slane %v1964_v0, 4 }
 0x87e   : > { %v1966_v18 = vadd.f32 %v1965_v59, %v1964_v0 }
 0x880   : > { %v1967_v61 = vrot.slane %v1966_v18, 2 }
 0x882   : > { %v1968_v40 = vadd.f32 %v1967_v61, %v1966_v18 }
 0x883   : > { %v2306_v28 = vpop.xlane.xlu0 %2305 }
 0x884   : > { %v1969_v2 = vrot.slane %v1968_v40, 1  ;;  %v2307_v60 = vrot.slane %v2306_v28, 4 }
 0x886   : > { %v1970_v30 = vadd.f32 %v1969_v2, %v1968_v40  ;;  %v2308_v62 = vadd.f32 %v2307_v60, %v2306_v28 }
 0x888   : > { %2539 = vpush %v1970_v30  ;;  %v2309_v4 = vrot.slane %v2308_v62, 2 }
 0x889   : > { %2541 = vpush %v3507_v13 }
 0x88a   : > { %2543 = vpush %v2000_v55  ;;  %v2310_v6 = vadd.f32 %v2309_v4, %v2308_v62 }
 0x88c   : > { %v2311_v12 = vrot.slane %v2310_v6, 1 }
 0x88e   : > { %v2312_v14 = vadd.f32 %v2311_v12, %v2310_v6 }
 0x8a9   : > { %s2538_s11 = spop %2537 }
 0x8ac   : > { %v2010_v43 = vpop.xlane.xlu2 %2009 }
 0x8ad   : > { %v2011_v26 = vrot.slane %v2010_v43, 4 }
 0x8af   : > { %v2012_v31 = vadd.f32 %v2011_v26, %v2010_v43 }
 0x8b1   : > { %v2013_v32 = vrot.slane %v2012_v31, 2 }
 0x8b3   : > { %v2014_v33 = vadd.f32 %v2013_v32, %v2012_v31 }
 0x8b4   : > { %v2293_v29 = vpop.xlane.xlu2 %2292 }
 0x8b5   : > { %v2294_v16 = vrot.slane %v2293_v29, 4  ;;  %v2015_v5 = vrot.slane %v2014_v33, 1 }
 0x8b7   : > { %v2295_v44 = vadd.f32 %v2294_v16, %v2293_v29  ;;  %v2016_v13 = vadd.f32 %v2015_v5, %v2014_v33 }
 0x8b9   : > { %v2296_v9 = vrot.slane %v2295_v44, 2  ;;  %2545 = vpush %v2016_v13  ;;  %s2540_s17 = spop %2539 }
 0x8ba   : > { %2547 = vpush %v2287_v7  ;;  %s2542_s30 = spop %2541  ;;  %s1972_s28 = sadd.f32 %s2540_s17, %s2538_s11 }
 0x8bb   : > { %v2297_v10 = vadd.f32 %v2296_v9, %v2295_v44  ;;  %s1989_s13 = smul.f32 625.0, %s2542_s30  ;;  %s2544_s14 = spop %2543 }
 0x8bc   : > { %s3613_s30 = smov %s3612_s21  ;;  %v2324_v54 = vstv %s1972_s28 }
 0x8bd   : > { %v2298_v20 = vrot.slane %v2297_v10, 1  ;;  %s2002_s23 = smul.f32 %s2544_s14, %s1989_s13  ;;  %v2325_v57 = vsel %vm2323_vm10, %v2324_v54, 0.0  ;;  %s489_s14 = scalar_lea.vmem [#allocation21], %s2998_s25 }
 0x8bf   : > { %v2299_v8 = vadd.f32 %v2298_v20, %v2297_v10  ;;  %v2317_v19 = vstv %s2002_s23  ;;  %s2346_s23 = sshll.u32 %s2342_s0, 4  ;;  %s2778_s0 = scalar_lea.hbm %s3613_s30, 2  ;;  %s2347_s23 = int_to_ptr.hbm [resolvable:$true] %s2346_s23 }
 0x8c0   : > { %v2318_v21 = vsel %vm2316_vm3, %v2317_v19, 0.0  ;;  %s2772_s28 = sshra.s32 %s2347_s23, 4  ;;  %s2773_s28 = int_to_ptr.hbm [resolvable:$true] %s2772_s28 }
 0x8c1   : > { %2549 = vpush %v2299_v8  ;;  %p2779_p8 = scmp.lt.s32.totalorder %s2773_s28, %s3613_s30 }
 0x8c2   : > { %2551 = vpush %v2312_v14 }
 0x8ea   : > { %s2546_s15 = spop %2545 }
 0x8eb   : > { %s2018_s16 = smul.f32 %s2546_s15, %s1989_s13  ;;  %s2548_s27 = spop %2547 }
 0x8ed   : > { %v2320_v58 = vstv %s2018_s16  ;;  %s2344_s16 = sshll.u32 %s489_s14, 4  ;;  %s2345_s16 = int_to_ptr.vmem [resolvable:$true] %s2344_s16 }
 0x8ee   : > { %v2321_v63 = vsel %vm2319_vm1, %v2320_v58, 0.0 }
 0x8ef   : > { %v2322_v56 = vadd.f32 %v2321_v63, %v2318_v21 }
 0x8f1   : > { %v2326_v34 = vadd.f32 %v2325_v57, %v2322_v56 }
 0x8f2   : > { %s2550_s24 = spop %2549 }
 0x8f3   : > { %s2301_s29 = smul.f32 2.0, %s2550_s24  ;;  %s2552_s26 = spop %2551 }
 0x8f4   : > { %s2314_s11 = smul.f32 625.0, %s2552_s26 }
 0x8f5   : > { %s2302_s13 = sadd.f32 %s2548_s27, %s2301_s29  ;;  %s2774_s27 = scalar_lea.hbm %s2773_s28, 1 }
 0x8f6   : > { %p2775_p5 = scmp.ne.s32.totalorder %s2773_s28, %s2774_s27  ;;  %p2780_p10 = scmp.lt.s32.totalorder %s2778_s0, %s2774_s27 }
 0x8f7   : > { %s2315_s17 = sadd.f32 %s2314_s11, %s2302_s13 }
 0x8f8   : > { %p2776_p6 = pnand %p2775_p5, %p2964_p9  ;;  %p2781_p13 = por %p2780_p10, %p2779_p8 }
 0x8f9   : > { %v2328_v35 = vstv %s2315_s17 }
 0x8fa   : > { %v2329_v39 = vsel %vm2327_vm14, %v2328_v35, 0.0  ;;  %p2777_p7 = pneg %p2776_p6 }
 0x8fb   : > { %v2330_v27 = vadd.f32 %v2329_v39, %v2326_v34 }
 0x8fc   : > { %p2782_p0 = pnand %p2781_p13, %p2777_p7 }
 0x8fd   : > { %2332 = vst.msk [vmem:[%s489_s14] sm:$0x1] %vm2331_vm15, %v2330_v27 }
 0x8fe   : > { %2785 = shalt.err (!%p2782_p0)
}
 0x8ff   : > { %2557 = dma.vmem_to_hbm [thread:$0]  (%p2964_p9), %s2345_s16, 16, %s2347_s23, %s2334_s20  }
 0x900 PF: > { %s3615_s25 = sld [smem:[#allocation25_spill]]  ;;  %p2567_p1 = pnand %p2474_p12, %p2971_p11 }
 0x902   : > { %p2568_p2 = pneg %p2567_p1 }
 0x906   : > { %s2358_s21 = sand.u32 1, %s3615_s25  }
 0x907   : > { %s2359_s13 = scalar_lea.sflag [#allocation18], %s2358_s21 }
 0x908   : > { %2819 = dma.done.wait (%p2568_p2), %s2359_s13, 16  }
 0x909   : > { %2821 = vsyncadd (%p2568_p2), %s2359_s13, 4294967280  ;;  %s30_s22 = sadd.s32 1, %s2844_s22   ;;  %s3617_s11 = sld [smem:[#allocation26_spill]] }
 0x90a   : > { %p27_p3 = scmp.ge.s32.totalorder %s30_s22, 4   ;;  %s3618_s19 = sld [smem:[#allocation30_spill]] }
 0x90b   : > { %s3619_s20 = sld [smem:[#allocation27_spill]]  ;;  %s3621_s17 = smov %s2828_s18 }
 0x90c   : > { %s3620_s21 = sld [smem:[#allocation28_spill]]  ;;  %29 = sbr.rel (!%p27_p3) target bundleno = 11 (0xb), region = 135 }
 0x90f   : > { %s3622_s18 = smov %s3617_s11 }
 0x911   :  { %2364 = vsyncpa [#allocation17], 1 }
 0x912   :  { %2366 = vsyncpa [#allocation17 + $0x1], 1 }
 0x913   :  { %2367 = vsyncpa [#allocation20], 1 }
 0x914   :  { %2369 = vsyncpa [#allocation20 + $0x1], 1 }
 0x915   :  { %2370 = vsyncpa [#allocation18], 1 }
 0x916   :  { %2372 = vsyncpa [#allocation18 + $0x1], 1 }

</bundles_post_ra>
